<compile_context>
chip_gen: v7x
topology: tpu7x:2x2x1
jax: 0.10.0
libtpu: 0.0.40
codegen_flags: <defaults>
</compile_context>

<pallas_src>
import math
import numpy as np
import jax
import jax.numpy as jnp
from jax.experimental import pallas as pl
from jax.experimental.pallas import tpu as pltpu

LANE = 128


def gaussian_1d(window_size, sigma=1.5):
    g = np.array(
        [math.exp(-((x - window_size // 2) ** 2) / (2.0 * sigma ** 2))
         for x in range(window_size)],
        dtype=np.float64,
    )
    g = g / g.sum()
    return g.astype(np.float32)


def _choose_row_tile(H, pad):
    """Largest divisor of H in [pad, 32] that yields >= 2 row tiles."""
    hi = min(32, H // 2)
    lo = max(pad, 1)
    for ht in range(hi, lo - 1, -1):
        if H % ht == 0:
            return ht, H // ht
    # TODO(synk): non-divisible / tiny H falls back to a single full-height tile.
    return H, 1


def make_ssim_kernel(H, W, Ht, T, P_blk, g1d):
    ks = int(g1d.shape[0])
    pad = ks // 2
    Hp_t = Ht + 2 * pad                  # padded rows per row tile
    LPAD = ((pad + 7) // 8) * 8          # sublane-aligned column of image col 0
    COL0 = LPAD - pad                    # scratch column of padded-image col 0
    Wp = W + 2 * pad                     # padded width (true conv extent)
    Wv = ((Wp + 7) // 8) * 8             # vertical-pass width (full sublane tiles)
    Ws = ((COL0 + Wv + 7) // 8) * 8      # padded-scratch width
    Wr = ((W + 7) // 8) * 8              # partial-sum width
    C1 = 0.01 ** 2
    C2 = 0.03 ** 2
    w = [float(v) for v in g1d]

    def kernel(a_ref, b_ref, out_ref, pmaps, mid, psum):
        t = pl.program_id(1)
        row0 = t * Ht

        # ---- zero only the padding border (re-done every step: per-core
        #      scratch => megacore-safe; interior is always fully overwritten).
        if pad > 0:
            zrow = jnp.zeros((pad, Ws, P_blk), jnp.float32)
        if LPAD > 0:
            zleft = jnp.zeros((Hp_t, LPAD, P_blk), jnp.float32)
        if Ws - (LPAD + W) > 0:
            zright = jnp.zeros((Hp_t, Ws - (LPAD + W), P_blk), jnp.float32)
        for m in range(2):
            if pad > 0:
                pmaps[m, 0:pad, :, :] = zrow
                pmaps[m, pad + Ht:Hp_t, :, :] = zrow
            if LPAD > 0:
                pmaps[m, :, 0:LPAD, :] = zleft
            if Ws - (LPAD + W) > 0:
                pmaps[m, :, LPAD + W:Ws, :] = zright

        # ---- copy this row tile (+ in-image halo rows) into the padded
        #      scratch.  Only a and b are materialised; products are formed on
        #      the fly in the fused vertical pass.
        pmaps[0, pad:pad + Ht, LPAD:LPAD + W, :] = a_ref[pl.ds(row0, Ht), :, :]
        pmaps[1, pad:pad + Ht, LPAD:LPAD + W, :] = b_ref[pl.ds(row0, Ht), :, :]

        if T > 1 and pad > 0:
            @pl.when(t > 0)
            def _():
                pmaps[0, 0:pad, LPAD:LPAD + W, :] = a_ref[pl.ds(row0 - pad, pad), :, :]
                pmaps[1, 0:pad, LPAD:LPAD + W, :] = b_ref[pl.ds(row0 - pad, pad), :, :]

            @pl.when(t < T - 1)
            def _():
                pmaps[0, pad + Ht:Hp_t, LPAD:LPAD + W, :] = a_ref[pl.ds(row0 + Ht, pad), :, :]
                pmaps[1, pad + Ht:Hp_t, LPAD:LPAD + W, :] = b_ref[pl.ds(row0 + Ht, pad), :, :]

        psum[...] = jnp.zeros_like(psum)

        # ---- per output row: fused vertical Gaussian (5 accumulators from
        #      the 2 padded maps), then horizontal Gaussian + SSIM + row sum.
        #      pl.loop keeps bundle count and vreg live ranges bounded; only
        #      the ks-tap loops stay Python-unrolled.
        @pl.loop(0, Ht)
        def _(r0):
            a0 = pmaps[0, pl.ds(r0, 1), COL0:COL0 + Wv, :].reshape(Wv, P_blk)
            b0 = pmaps[1, pl.ds(r0, 1), COL0:COL0 + Wv, :].reshape(Wv, P_blk)
            wa = w[0] * a0
            wb = w[0] * b0
            acc_a, acc_b = wa, wb
            acc_aa, acc_bb, acc_ab = wa * a0, wb * b0, wa * b0
            for dy in range(1, ks):
                a_s = pmaps[0, pl.ds(r0 + dy, 1), COL0:COL0 + Wv, :].reshape(Wv, P_blk)
                b_s = pmaps[1, pl.ds(r0 + dy, 1), COL0:COL0 + Wv, :].reshape(Wv, P_blk)
                wa = w[dy] * a_s
                wb = w[dy] * b_s
                acc_a = acc_a + wa
                acc_b = acc_b + wb
                acc_aa = acc_aa + wa * a_s
                acc_bb = acc_bb + wb * b_s
                acc_ab = acc_ab + wa * b_s
            # stash the per-row chunk so the horizontal taps are plain
            # address-offset ref slices (no cross-lane shifts).
            mid[0, :, :] = acc_a
            mid[1, :, :] = acc_b
            mid[2, :, :] = acc_aa
            mid[3, :, :] = acc_bb
            mid[4, :, :] = acc_ab

            blur = []
            for m in range(5):
                acc = w[0] * mid[m, 0:W, :]
                for dx in range(1, ks):
                    acc = acc + w[dx] * mid[m, dx:dx + W, :]
                blur.append(acc)
            mu1, mu2, e11, e22, e12 = blur

            mu1_mu2 = mu1 * mu2
            num = (2.0 * mu1_mu2 + C1) * (2.0 * (e12 - mu1_mu2) + C2)
            mu1_sq = mu1 * mu1
            mu2_sq = mu2 * mu2
            den = (mu1_sq + mu2_sq + C1) * ((e11 - mu1_sq) + (e22 - mu2_sq) + C2)
            # EUP approx reciprocal + one Newton step (f32-accurate, VALU-free).
            r = pl.reciprocal(den, approx=True)
            r = r * (2.0 - den * r)
            ssim = num * r                       # (W, P_blk)
            psum[0:W, :] += ssim

        # one cross-sublane reduce per grid step; lane (plane) axis preserved,
        # lane-dense (1, 1, 128) output row => unmasked stores.
        out_ref[...] = jnp.sum(psum[...], axis=0).reshape(1, 1, P_blk)

    scratch = [
        pltpu.VMEM((2, Hp_t, Ws, P_blk), jnp.float32),   # zero-padded a, b tile
        pltpu.VMEM((5, Wv, P_blk), jnp.float32),         # per-row vertical maps
        pltpu.VMEM((Wr, P_blk), jnp.float32),            # per-plane partial sums
    ]
    scratch_bytes = 4 * P_blk * (2 * Hp_t * Ws + 5 * Wv + Wr)
    return kernel, scratch, scratch_bytes


def mssim_pallas(img1, img2, window_size=11):
    """Forward pass of MSSIM(window_size, size_average=True) for NCHW inputs."""
    B, C, H, W = img1.shape
    P0 = B * C
    P_blk = LANE
    G = max(1, -(-P0 // P_blk))          # cdiv(P0, 128) plane blocks
    P_pad = G * P_blk
    g1d = gaussian_1d(window_size)
    pad = window_size // 2
    Ht, T = _choose_row_tile(H, pad)

    # Batch-last lane-dense layout: (H, W, planes), plane axis padded to G*128.
    # (No spatial padding in HBM -- that happens in VMEM scratch in-kernel.)
    # TODO(synk): if the producer can emit planes-last directly this relayout
    # pass over HBM disappears.
    a = img1.astype(jnp.float32).reshape(P0, H, W)
    b = img2.astype(jnp.float32).reshape(P0, H, W)
    a = jnp.pad(jnp.transpose(a, (1, 2, 0)), ((0, 0), (0, 0), (0, P_pad - P0)))
    b = jnp.pad(jnp.transpose(b, (1, 2, 0)), ((0, 0), (0, 0), (0, P_pad - P0)))

    kernel, scratch, scratch_bytes = make_ssim_kernel(H, W, Ht, T, P_blk, g1d)

    # Explicit scoped-VMEM budget: scratch + 2 double-buffered inputs + outputs.
    in_bytes = 2 * 2 * (H * W * P_blk * 4)
    out_bytes = 2 * (P_blk * 4)
    needed = scratch_bytes + in_bytes + out_bytes
    vmem_limit = int(min(max(needed * 2, 32 << 20), 127 << 20))

    tile_sums = pl.pallas_call(
        kernel,
        out_shape=jax.ShapeDtypeStruct((G * T, 1, P_blk), jnp.float32),
        grid_spec=pltpu.PrefetchScalarGridSpec(
            num_scalar_prefetch=0,
            grid=(G, T),
            in_specs=[
                # full-height block per plane group; the same block index is
                # revisited across the row-tile axis, so it is not re-DMA'd.
                pl.BlockSpec((H, W, P_blk), lambda g, t: (0, 0, g)),
                pl.BlockSpec((H, W, P_blk), lambda g, t: (0, 0, g)),
            ],
            out_specs=pl.BlockSpec((1, 1, P_blk), lambda g, t: (g * T + t, 0, 0)),
            scratch_shapes=scratch,
        ),
        compiler_params=pltpu.CompilerParams(
            dimension_semantics=("parallel", "parallel"),
            vmem_limit_bytes=vmem_limit),
    )(a, b)

    # size_average=True -> mean over every element of the SSIM map.
    # Padded (all-zero) planes are dropped before the sum.
    per_plane = tile_sums.reshape(G, T, P_blk).sum(axis=1).reshape(-1)[:P0]
    return jnp.sum(per_plane) / (P0 * H * W)


def mssim_reference(img1, img2, window_size=11):
    """Pure-JAX reference mirroring F.conv2d(groups=C) semantics."""
    B, C, H, W = img1.shape
    pad = window_size // 2
    g1d = gaussian_1d(window_size)
    w2d = jnp.asarray(np.outer(g1d, g1d).astype(np.float32))
    w = jnp.broadcast_to(w2d, (C, 1, window_size, window_size))

    def conv(x):
        return jax.lax.conv_general_dilated(
            x, w, window_strides=(1, 1),
            padding=[(pad, pad), (pad, pad)],
            dimension_numbers=("NCHW", "OIHW", "NCHW"),
            feature_group_count=C)

    img1 = img1.astype(jnp.float32)
    img2 = img2.astype(jnp.float32)
    mu1 = conv(img1)
    mu2 = conv(img2)
    mu1_sq = mu1 ** 2
    mu2_sq = mu2 ** 2
    mu1_mu2 = mu1 * mu2
    sigma1_sq = conv(img1 * img1) - mu1_sq
    sigma2_sq = conv(img2 * img2) - mu2_sq
    sigma12 = conv(img1 * img2) - mu1_mu2
    C1 = 0.01 ** 2
    C2 = 0.03 ** 2
    ssim_map = (2 * mu1_mu2 + C1) * (2 * sigma12 + C2) / (
        (mu1_sq + mu2_sq + C1) * (sigma1_sq + sigma2_sq + C2))
    return ssim_map.mean()


if __name__ == "__main__":
    key = jax.random.PRNGKey(0)
    k1, k2 = jax.random.split(key)
    img1 = jax.random.normal(k1, (2, 4, 16, 16), dtype=jnp.float32)
    img2 = img1 + 0.1 * jax.random.normal(k2, (2, 4, 16, 16), dtype=jnp.float32)

    out = mssim_pallas(img1, img2, window_size=11)
    out = jax.block_until_ready(out)

    ref = jax.block_until_ready(mssim_reference(img1, img2, window_size=11))
    assert np.allclose(np.asarray(out), np.asarray(ref), rtol=1e-4, atol=1e-4), (
        f"mismatch: pallas={float(out)} ref={float(ref)}")

    print("KERNEL_OK")
</pallas_src>

<mosaic_0001>
module attributes {stable_mosaic.version = 11 : i64} {
  func.func @kernel(%arg0: i32, %arg1: i32, %arg2: memref<16x16x128xf32, #tpu.memory_space<vmem>>, %arg3: memref<16x16x128xf32, #tpu.memory_space<vmem>>, %arg4: memref<1x1x128xf32, #tpu.memory_space<vmem>>, %arg5: memref<2x18x40x128xf32, #tpu.memory_space<vmem>>, %arg6: memref<5x32x128xf32, #tpu.memory_space<vmem>>, %arg7: memref<16x128xf32, #tpu.memory_space<vmem>>) attributes {dimension_semantics = [#tpu.dimension_semantics<parallel>, #tpu.dimension_semantics<parallel>], iteration_bounds = array<i64: 1, 2>, scalar_prefetch = 0 : i64, scratch_operands = 3 : i64, tpu.core_type = #tpu.core_type<tc>, window_params = [{transform_indices = @transform_0, window_bounds = array<i64: 16, 16, 128>}, {transform_indices = @transform_1, window_bounds = array<i64: 16, 16, 128>}, {transform_indices = @transform_2, window_bounds = array<i64: 1, 1, 128>}]} {
    %c8_i32 = arith.constant 8 : i32
    %0 = arith.muli %arg1, %c8_i32 : i32
    %cst = arith.constant 0.000000e+00 : f32
    %1 = vector.broadcast %cst : f32 to vector<5x40x128xf32>
    %cst_0 = arith.constant 0.000000e+00 : f32
    %2 = vector.broadcast %cst_0 : f32 to vector<18x8x128xf32>
    %cst_1 = arith.constant 0.000000e+00 : f32
    %3 = vector.broadcast %cst_1 : f32 to vector<18x16x128xf32>
    %c0 = arith.constant 0 : index
    %c0_2 = arith.constant 0 : index
    %c0_3 = arith.constant 0 : index
    %c0_4 = arith.constant 0 : index
    %4 = vector.load %arg5[%c0, %c0_2, %c0_3, %c0_4] : memref<2x18x40x128xf32, #tpu.memory_space<vmem>>, vector<1x5x40x128xf32>
    %5 = vector.shape_cast %4 : vector<1x5x40x128xf32> to vector<5x40x128xf32>
    %6 = vector.shape_cast %1 : vector<5x40x128xf32> to vector<1x5x40x128xf32>
    tpu.vector_store %arg5[%c0, %c0_2, %c0_3, %c0_4], %6 {strides = array<i32>} : memref<2x18x40x128xf32, #tpu.memory_space<vmem>>, vector<1x5x40x128xf32>,
    %c0_5 = arith.constant 0 : index
    %c13 = arith.constant 13 : index
    %c0_6 = arith.constant 0 : index
    %c0_7 = arith.constant 0 : index
    %7 = vector.load %arg5[%c0_5, %c13, %c0_6, %c0_7] : memref<2x18x40x128xf32, #tpu.memory_space<vmem>>, vector<1x5x40x128xf32>
    %8 = vector.shape_cast %7 : vector<1x5x40x128xf32> to vector<5x40x128xf32>
    %9 = vector.shape_cast %1 : vector<5x40x128xf32> to vector<1x5x40x128xf32>
    tpu.vector_store %arg5[%c0_5, %c13, %c0_6, %c0_7], %9 {strides = array<i32>} : memref<2x18x40x128xf32, #tpu.memory_space<vmem>>, vector<1x5x40x128xf32>,
    %c0_8 = arith.constant 0 : index
    %c0_9 = arith.constant 0 : index
    %c0_10 = arith.constant 0 : index
    %c0_11 = arith.constant 0 : index
    %10 = vector.load %arg5[%c0_8, %c0_9, %c0_10, %c0_11] : memref<2x18x40x128xf32, #tpu.memory_space<vmem>>, vector<1x18x8x128xf32>
    %11 = vector.shape_cast %10 : vector<1x18x8x128xf32> to vector<18x8x128xf32>
    %12 = vector.shape_cast %2 : vector<18x8x128xf32> to vector<1x18x8x128xf32>
    tpu.vector_store %arg5[%c0_8, %c0_9, %c0_10, %c0_11], %12 {strides = array<i32>} : memref<2x18x40x128xf32, #tpu.memory_space<vmem>>, vector<1x18x8x128xf32>,
    %c0_12 = arith.constant 0 : index
    %c0_13 = arith.constant 0 : index
    %c24 = arith.constant 24 : index
    %c0_14 = arith.constant 0 : index
    %13 = vector.load %arg5[%c0_12, %c0_13, %c24, %c0_14] : memref<2x18x40x128xf32, #tpu.memory_space<vmem>>, vector<1x18x16x128xf32>
    %14 = vector.shape_cast %13 : vector<1x18x16x128xf32> to vector<18x16x128xf32>
    %15 = vector.shape_cast %3 : vector<18x16x128xf32> to vector<1x18x16x128xf32>
    tpu.vector_store %arg5[%c0_12, %c0_13, %c24, %c0_14], %15 {strides = array<i32>} : memref<2x18x40x128xf32, #tpu.memory_space<vmem>>, vector<1x18x16x128xf32>,
    %c1 = arith.constant 1 : index
    %c0_15 = arith.constant 0 : index
    %c0_16 = arith.constant 0 : index
    %c0_17 = arith.constant 0 : index
    %16 = vector.load %arg5[%c1, %c0_15, %c0_16, %c0_17] : memref<2x18x40x128xf32, #tpu.memory_space<vmem>>, vector<1x5x40x128xf32>
    %17 = vector.shape_cast %16 : vector<1x5x40x128xf32> to vector<5x40x128xf32>
    %18 = vector.shape_cast %1 : vector<5x40x128xf32> to vector<1x5x40x128xf32>
    tpu.vector_store %arg5[%c1, %c0_15, %c0_16, %c0_17], %18 {strides = array<i32>} : memref<2x18x40x128xf32, #tpu.memory_space<vmem>>, vector<1x5x40x128xf32>,
    %c1_18 = arith.constant 1 : index
    %c13_19 = arith.constant 13 : index
    %c0_20 = arith.constant 0 : index
    %c0_21 = arith.constant 0 : index
    %19 = vector.load %arg5[%c1_18, %c13_19, %c0_20, %c0_21] : memref<2x18x40x128xf32, #tpu.memory_space<vmem>>, vector<1x5x40x128xf32>
    %20 = vector.shape_cast %19 : vector<1x5x40x128xf32> to vector<5x40x128xf32>
    %21 = vector.shape_cast %1 : vector<5x40x128xf32> to vector<1x5x40x128xf32>
    tpu.vector_store %arg5[%c1_18, %c13_19, %c0_20, %c0_21], %21 {strides = array<i32>} : memref<2x18x40x128xf32, #tpu.memory_space<vmem>>, vector<1x5x40x128xf32>,
    %c1_22 = arith.constant 1 : index
    %c0_23 = arith.constant 0 : index
    %c0_24 = arith.constant 0 : index
    %c0_25 = arith.constant 0 : index
    %22 = vector.load %arg5[%c1_22, %c0_23, %c0_24, %c0_25] : memref<2x18x40x128xf32, #tpu.memory_space<vmem>>, vector<1x18x8x128xf32>
    %23 = vector.shape_cast %22 : vector<1x18x8x128xf32> to vector<18x8x128xf32>
    %24 = vector.shape_cast %2 : vector<18x8x128xf32> to vector<1x18x8x128xf32>
    tpu.vector_store %arg5[%c1_22, %c0_23, %c0_24, %c0_25], %24 {strides = array<i32>} : memref<2x18x40x128xf32, #tpu.memory_space<vmem>>, vector<1x18x8x128xf32>,
    %c1_26 = arith.constant 1 : index
    %c0_27 = arith.constant 0 : index
    %c24_28 = arith.constant 24 : index
    %c0_29 = arith.constant 0 : index
    %25 = vector.load %arg5[%c1_26, %c0_27, %c24_28, %c0_29] : memref<2x18x40x128xf32, #tpu.memory_space<vmem>>, vector<1x18x16x128xf32>
    %26 = vector.shape_cast %25 : vector<1x18x16x128xf32> to vector<18x16x128xf32>
    %27 = vector.shape_cast %3 : vector<18x16x128xf32> to vector<1x18x16x128xf32>
    tpu.vector_store %arg5[%c1_26, %c0_27, %c24_28, %c0_29], %27 {strides = array<i32>} : memref<2x18x40x128xf32, #tpu.memory_space<vmem>>, vector<1x18x16x128xf32>,
    %28 = arith.index_cast %0 : i32 to index
    %c0_30 = arith.constant 0 : index
    %c0_31 = arith.constant 0 : index
    %29 = vector.load %arg2[%28, %c0_30, %c0_31] : memref<16x16x128xf32, #tpu.memory_space<vmem>>, vector<8x16x128xf32>
    %c0_32 = arith.constant 0 : index
    %c5 = arith.constant 5 : index
    %c8 = arith.constant 8 : index
    %c0_33 = arith.constant 0 : index
    %30 = vector.load %arg5[%c0_32, %c5, %c8, %c0_33] : memref<2x18x40x128xf32, #tpu.memory_space<vmem>>, vector<1x8x16x128xf32>
    %31 = vector.shape_cast %30 : vector<1x8x16x128xf32> to vector<8x16x128xf32>
    %32 = vector.shape_cast %29 : vector<8x16x128xf32> to vector<1x8x16x128xf32>
    tpu.vector_store %arg5[%c0_32, %c5, %c8, %c0_33], %32 {strides = array<i32>} : memref<2x18x40x128xf32, #tpu.memory_space<vmem>>, vector<1x8x16x128xf32>,
    %33 = arith.index_cast %0 : i32 to index
    %c0_34 = arith.constant 0 : index
    %c0_35 = arith.constant 0 : index
    %34 = vector.load %arg3[%33, %c0_34, %c0_35] : memref<16x16x128xf32, #tpu.memory_space<vmem>>, vector<8x16x128xf32>
    %c1_36 = arith.constant 1 : index
    %c5_37 = arith.constant 5 : index
    %c8_38 = arith.constant 8 : index
    %c0_39 = arith.constant 0 : index
    %35 = vector.load %arg5[%c1_36, %c5_37, %c8_38, %c0_39] : memref<2x18x40x128xf32, #tpu.memory_space<vmem>>, vector<1x8x16x128xf32>
    %36 = vector.shape_cast %35 : vector<1x8x16x128xf32> to vector<8x16x128xf32>
    %37 = vector.shape_cast %34 : vector<8x16x128xf32> to vector<1x8x16x128xf32>
    tpu.vector_store %arg5[%c1_36, %c5_37, %c8_38, %c0_39], %37 {strides = array<i32>} : memref<2x18x40x128xf32, #tpu.memory_space<vmem>>, vector<1x8x16x128xf32>,
    %c0_i32 = arith.constant 0 : i32
    %38 = arith.cmpi sgt, %arg1, %c0_i32 : i32
    %39 = arith.extui %38 : i1 to i32
    %c0_i32_40 = arith.constant 0 : i32
    %40 = arith.cmpi ne, %39, %c0_i32_40 : i32
    scf.if %40 {
      %c5_i32 = arith.constant 5 : i32
      %51 = arith.subi %0, %c5_i32 : i32
      %52 = arith.index_cast %51 : i32 to index
      %c0_55 = arith.constant 0 : index
      %c0_56 = arith.constant 0 : index
      %53 = vector.load %arg2[%52, %c0_55, %c0_56] : memref<16x16x128xf32, #tpu.memory_space<vmem>>, vector<5x16x128xf32>
      %c0_57 = arith.constant 0 : index
      %c0_58 = arith.constant 0 : index
      %c8_59 = arith.constant 8 : index
      %c0_60 = arith.constant 0 : index
      %54 = vector.load %arg5[%c0_57, %c0_58, %c8_59, %c0_60] : memref<2x18x40x128xf32, #tpu.memory_space<vmem>>, vector<1x5x16x128xf32>
      %55 = vector.shape_cast %54 : vector<1x5x16x128xf32> to vector<5x16x128xf32>
      %56 = vector.shape_cast %53 : vector<5x16x128xf32> to vector<1x5x16x128xf32>
      tpu.vector_store %arg5[%c0_57, %c0_58, %c8_59, %c0_60], %56 {strides = array<i32>} : memref<2x18x40x128xf32, #tpu.memory_space<vmem>>, vector<1x5x16x128xf32>,
      %c5_i32_61 = arith.constant 5 : i32
      %57 = arith.subi %0, %c5_i32_61 : i32
      %58 = arith.index_cast %57 : i32 to index
      %c0_62 = arith.constant 0 : index
      %c0_63 = arith.constant 0 : index
      %59 = vector.load %arg3[%58, %c0_62, %c0_63] : memref<16x16x128xf32, #tpu.memory_space<vmem>>, vector<5x16x128xf32>
      %c1_64 = arith.constant 1 : index
      %c0_65 = arith.constant 0 : index
      %c8_66 = arith.constant 8 : index
      %c0_67 = arith.constant 0 : index
      %60 = vector.load %arg5[%c1_64, %c0_65, %c8_66, %c0_67] : memref<2x18x40x128xf32, #tpu.memory_space<vmem>>, vector<1x5x16x128xf32>
      %61 = vector.shape_cast %60 : vector<1x5x16x128xf32> to vector<5x16x128xf32>
      %62 = vector.shape_cast %59 : vector<5x16x128xf32> to vector<1x5x16x128xf32>
      tpu.vector_store %arg5[%c1_64, %c0_65, %c8_66, %c0_67], %62 {strides = array<i32>} : memref<2x18x40x128xf32, #tpu.memory_space<vmem>>, vector<1x5x16x128xf32>,
    } else {
    }
    %c1_i32 = arith.constant 1 : i32
    %41 = arith.cmpi slt, %arg1, %c1_i32 : i32
    %42 = arith.extui %41 : i1 to i32
    %c0_i32_41 = arith.constant 0 : i32
    %43 = arith.cmpi ne, %42, %c0_i32_41 : i32
    scf.if %43 {
      %c8_i32_55 = arith.constant 8 : i32
      %51 = arith.addi %0, %c8_i32_55 : i32
      %52 = arith.index_cast %51 : i32 to index
      %c0_56 = arith.constant 0 : index
      %c0_57 = arith.constant 0 : index
      %53 = vector.load %arg2[%52, %c0_56, %c0_57] : memref<16x16x128xf32, #tpu.memory_space<vmem>>, vector<5x16x128xf32>
      %c0_58 = arith.constant 0 : index
      %c13_59 = arith.constant 13 : index
      %c8_60 = arith.constant 8 : index
      %c0_61 = arith.constant 0 : index
      %54 = vector.load %arg5[%c0_58, %c13_59, %c8_60, %c0_61] : memref<2x18x40x128xf32, #tpu.memory_space<vmem>>, vector<1x5x16x128xf32>
      %55 = vector.shape_cast %54 : vector<1x5x16x128xf32> to vector<5x16x128xf32>
      %56 = vector.shape_cast %53 : vector<5x16x128xf32> to vector<1x5x16x128xf32>
      tpu.vector_store %arg5[%c0_58, %c13_59, %c8_60, %c0_61], %56 {strides = array<i32>} : memref<2x18x40x128xf32, #tpu.memory_space<vmem>>, vector<1x5x16x128xf32>,
      %c8_i32_62 = arith.constant 8 : i32
      %57 = arith.addi %0, %c8_i32_62 : i32
      %58 = arith.index_cast %57 : i32 to index
      %c0_63 = arith.constant 0 : index
      %c0_64 = arith.constant 0 : index
      %59 = vector.load %arg3[%58, %c0_63, %c0_64] : memref<16x16x128xf32, #tpu.memory_space<vmem>>, vector<5x16x128xf32>
      %c1_65 = arith.constant 1 : index
      %c13_66 = arith.constant 13 : index
      %c8_67 = arith.constant 8 : index
      %c0_68 = arith.constant 0 : index
      %60 = vector.load %arg5[%c1_65, %c13_66, %c8_67, %c0_68] : memref<2x18x40x128xf32, #tpu.memory_space<vmem>>, vector<1x5x16x128xf32>
      %61 = vector.shape_cast %60 : vector<1x5x16x128xf32> to vector<5x16x128xf32>
      %62 = vector.shape_cast %59 : vector<5x16x128xf32> to vector<1x5x16x128xf32>
      tpu.vector_store %arg5[%c1_65, %c13_66, %c8_67, %c0_68], %62 {strides = array<i32>} : memref<2x18x40x128xf32, #tpu.memory_space<vmem>>, vector<1x5x16x128xf32>,
    } else {
    }
    %cst_42 = arith.constant 0.000000e+00 : f32
    %44 = vector.broadcast %cst_42 : f32 to vector<16x128xf32>
    %c0_43 = arith.constant 0 : index
    %c0_44 = arith.constant 0 : index
    %45 = vector.load %arg7[%c0_43, %c0_44] : memref<16x128xf32, #tpu.memory_space<vmem>>, vector<16x128xf32>
    tpu.vector_store %arg7[%c0_43, %c0_44], %44 {strides = array<i32>} : memref<16x128xf32, #tpu.memory_space<vmem>>, vector<16x128xf32>,
    %c0_i32_45 = arith.constant 0 : i32
    %c8_i32_46 = arith.constant 8 : i32
    %46 = arith.addi %c0_i32_45, %c8_i32_46 : i32
    %c1_i32_47 = arith.constant 1 : i32
    scf.for %arg8 = %c0_i32_45 to %46 step %c1_i32_47  : i32 {
      %c1_i32_55 = arith.constant 1 : i32
      %51 = arith.muli %arg8, %c1_i32_55 : i32
      %c0_i32_56 = arith.constant 0 : i32
      %52 = arith.addi %c0_i32_56, %51 : i32
      %c0_57 = arith.constant 0 : index
      %53 = arith.index_cast %52 : i32 to index
      %c3 = arith.constant 3 : index
      %c0_58 = arith.constant 0 : index
      %54 = vector.load %arg5[%c0_57, %53, %c3, %c0_58] : memref<2x18x40x128xf32, #tpu.memory_space<vmem>>, vector<1x1x32x128xf32>
      %55 = vector.shape_cast %54 : vector<1x1x32x128xf32> to vector<1x32x128xf32>
      %56 = vector.shape_cast %55 : vector<1x32x128xf32> to vector<32x128xf32>
      %c1_59 = arith.constant 1 : index
      %57 = arith.index_cast %52 : i32 to index
      %c3_60 = arith.constant 3 : index
      %c0_61 = arith.constant 0 : index
      %58 = vector.load %arg5[%c1_59, %57, %c3_60, %c0_61] : memref<2x18x40x128xf32, #tpu.memory_space<vmem>>, vector<1x1x32x128xf32>
      %59 = vector.shape_cast %58 : vector<1x1x32x128xf32> to vector<1x32x128xf32>
      %60 = vector.shape_cast %59 : vector<1x32x128xf32> to vector<32x128xf32>
      %cst_62 = arith.constant 0.00102838012 : f32
      %61 = vector.broadcast %cst_62 : f32 to vector<32x128xf32>
      %62 = arith.mulf %61, %56 : vector<32x128xf32>
      %cst_63 = arith.constant 0.00102838012 : f32
      %63 = vector.broadcast %cst_63 : f32 to vector<32x128xf32>
      %64 = arith.mulf %63, %60 : vector<32x128xf32>
      %65 = arith.mulf %62, %56 : vector<32x128xf32>
      %66 = arith.mulf %64, %60 : vector<32x128xf32>
      %67 = arith.mulf %62, %60 : vector<32x128xf32>
      %c1_i32_64 = arith.constant 1 : i32
      %68 = arith.addi %52, %c1_i32_64 : i32
      %c0_65 = arith.constant 0 : index
      %69 = arith.index_cast %68 : i32 to index
      %c3_66 = arith.constant 3 : index
      %c0_67 = arith.constant 0 : index
      %70 = vector.load %arg5[%c0_65, %69, %c3_66, %c0_67] : memref<2x18x40x128xf32, #tpu.memory_space<vmem>>, vector<1x1x32x128xf32>
      %71 = vector.shape_cast %70 : vector<1x1x32x128xf32> to vector<1x32x128xf32>
      %72 = vector.shape_cast %71 : vector<1x32x128xf32> to vector<32x128xf32>
      %c1_i32_68 = arith.constant 1 : i32
      %73 = arith.addi %52, %c1_i32_68 : i32
      %c1_69 = arith.constant 1 : index
      %74 = arith.index_cast %73 : i32 to index
      %c3_70 = arith.constant 3 : index
      %c0_71 = arith.constant 0 : index
      %75 = vector.load %arg5[%c1_69, %74, %c3_70, %c0_71] : memref<2x18x40x128xf32, #tpu.memory_space<vmem>>, vector<1x1x32x128xf32>
      %76 = vector.shape_cast %75 : vector<1x1x32x128xf32> to vector<1x32x128xf32>
      %77 = vector.shape_cast %76 : vector<1x32x128xf32> to vector<32x128xf32>
      %cst_72 = arith.constant 0.00759875821 : f32
      %78 = vector.broadcast %cst_72 : f32 to vector<32x128xf32>
      %79 = arith.mulf %78, %72 : vector<32x128xf32>
      %cst_73 = arith.constant 0.00759875821 : f32
      %80 = vector.broadcast %cst_73 : f32 to vector<32x128xf32>
      %81 = arith.mulf %80, %77 : vector<32x128xf32>
      %82 = arith.addf %62, %79 : vector<32x128xf32>
      %83 = arith.addf %64, %81 : vector<32x128xf32>
      %84 = arith.mulf %79, %72 : vector<32x128xf32>
      %85 = arith.addf %65, %84 : vector<32x128xf32>
      %86 = arith.mulf %81, %77 : vector<32x128xf32>
      %87 = arith.addf %66, %86 : vector<32x128xf32>
      %88 = arith.mulf %79, %77 : vector<32x128xf32>
      %89 = arith.addf %67, %88 : vector<32x128xf32>
      %c2_i32 = arith.constant 2 : i32
      %90 = arith.addi %52, %c2_i32 : i32
      %c0_74 = arith.constant 0 : index
      %91 = arith.index_cast %90 : i32 to index
      %c3_75 = arith.constant 3 : index
      %c0_76 = arith.constant 0 : index
      %92 = vector.load %arg5[%c0_74, %91, %c3_75, %c0_76] : memref<2x18x40x128xf32, #tpu.memory_space<vmem>>, vector<1x1x32x128xf32>
      %93 = vector.shape_cast %92 : vector<1x1x32x128xf32> to vector<1x32x128xf32>
      %94 = vector.shape_cast %93 : vector<1x32x128xf32> to vector<32x128xf32>
      %c2_i32_77 = arith.constant 2 : i32
      %95 = arith.addi %52, %c2_i32_77 : i32
      %c1_78 = arith.constant 1 : index
      %96 = arith.index_cast %95 : i32 to index
      %c3_79 = arith.constant 3 : index
      %c0_80 = arith.constant 0 : index
      %97 = vector.load %arg5[%c1_78, %96, %c3_79, %c0_80] : memref<2x18x40x128xf32, #tpu.memory_space<vmem>>, vector<1x1x32x128xf32>
      %98 = vector.shape_cast %97 : vector<1x1x32x128xf32> to vector<1x32x128xf32>
      %99 = vector.shape_cast %98 : vector<1x32x128xf32> to vector<32x128xf32>
      %cst_81 = arith.constant 0.0360007733 : f32
      %100 = vector.broadcast %cst_81 : f32 to vector<32x128xf32>
      %101 = arith.mulf %100, %94 : vector<32x128xf32>
      %cst_82 = arith.constant 0.0360007733 : f32
      %102 = vector.broadcast %cst_82 : f32 to vector<32x128xf32>
      %103 = arith.mulf %102, %99 : vector<32x128xf32>
      %104 = arith.addf %82, %101 : vector<32x128xf32>
      %105 = arith.addf %83, %103 : vector<32x128xf32>
      %106 = arith.mulf %101, %94 : vector<32x128xf32>
      %107 = arith.addf %85, %106 : vector<32x128xf32>
      %108 = arith.mulf %103, %99 : vector<32x128xf32>
      %109 = arith.addf %87, %108 : vector<32x128xf32>
      %110 = arith.mulf %101, %99 : vector<32x128xf32>
      %111 = arith.addf %89, %110 : vector<32x128xf32>
      %c3_i32 = arith.constant 3 : i32
      %112 = arith.addi %52, %c3_i32 : i32
      %c0_83 = arith.constant 0 : index
      %113 = arith.index_cast %112 : i32 to index
      %c3_84 = arith.constant 3 : index
      %c0_85 = arith.constant 0 : index
      %114 = vector.load %arg5[%c0_83, %113, %c3_84, %c0_85] : memref<2x18x40x128xf32, #tpu.memory_space<vmem>>, vector<1x1x32x128xf32>
      %115 = vector.shape_cast %114 : vector<1x1x32x128xf32> to vector<1x32x128xf32>
      %116 = vector.shape_cast %115 : vector<1x32x128xf32> to vector<32x128xf32>
      %c3_i32_86 = arith.constant 3 : i32
      %117 = arith.addi %52, %c3_i32_86 : i32
      %c1_87 = arith.constant 1 : index
      %118 = arith.index_cast %117 : i32 to index
      %c3_88 = arith.constant 3 : index
      %c0_89 = arith.constant 0 : index
      %119 = vector.load %arg5[%c1_87, %118, %c3_88, %c0_89] : memref<2x18x40x128xf32, #tpu.memory_space<vmem>>, vector<1x1x32x128xf32>
      %120 = vector.shape_cast %119 : vector<1x1x32x128xf32> to vector<1x32x128xf32>
      %121 = vector.shape_cast %120 : vector<1x32x128xf32> to vector<32x128xf32>
      %cst_90 = arith.constant 0.109360687 : f32
      %122 = vector.broadcast %cst_90 : f32 to vector<32x128xf32>
      %123 = arith.mulf %122, %116 : vector<32x128xf32>
      %cst_91 = arith.constant 0.109360687 : f32
      %124 = vector.broadcast %cst_91 : f32 to vector<32x128xf32>
      %125 = arith.mulf %124, %121 : vector<32x128xf32>
      %126 = arith.addf %104, %123 : vector<32x128xf32>
      %127 = arith.addf %105, %125 : vector<32x128xf32>
      %128 = arith.mulf %123, %116 : vector<32x128xf32>
      %129 = arith.addf %107, %128 : vector<32x128xf32>
      %130 = arith.mulf %125, %121 : vector<32x128xf32>
      %131 = arith.addf %109, %130 : vector<32x128xf32>
      %132 = arith.mulf %123, %121 : vector<32x128xf32>
      %133 = arith.addf %111, %132 : vector<32x128xf32>
      %c4_i32 = arith.constant 4 : i32
      %134 = arith.addi %52, %c4_i32 : i32
      %c0_92 = arith.constant 0 : index
      %135 = arith.index_cast %134 : i32 to index
      %c3_93 = arith.constant 3 : index
      %c0_94 = arith.constant 0 : index
      %136 = vector.load %arg5[%c0_92, %135, %c3_93, %c0_94] : memref<2x18x40x128xf32, #tpu.memory_space<vmem>>, vector<1x1x32x128xf32>
      %137 = vector.shape_cast %136 : vector<1x1x32x128xf32> to vector<1x32x128xf32>
      %138 = vector.shape_cast %137 : vector<1x32x128xf32> to vector<32x128xf32>
      %c4_i32_95 = arith.constant 4 : i32
      %139 = arith.addi %52, %c4_i32_95 : i32
      %c1_96 = arith.constant 1 : index
      %140 = arith.index_cast %139 : i32 to index
      %c3_97 = arith.constant 3 : index
      %c0_98 = arith.constant 0 : index
      %141 = vector.load %arg5[%c1_96, %140, %c3_97, %c0_98] : memref<2x18x40x128xf32, #tpu.memory_space<vmem>>, vector<1x1x32x128xf32>
      %142 = vector.shape_cast %141 : vector<1x1x32x128xf32> to vector<1x32x128xf32>
      %143 = vector.shape_cast %142 : vector<1x32x128xf32> to vector<32x128xf32>
      %cst_99 = arith.constant 0.213005543 : f32
      %144 = vector.broadcast %cst_99 : f32 to vector<32x128xf32>
      %145 = arith.mulf %144, %138 : vector<32x128xf32>
      %cst_100 = arith.constant 0.213005543 : f32
      %146 = vector.broadcast %cst_100 : f32 to vector<32x128xf32>
      %147 = arith.mulf %146, %143 : vector<32x128xf32>
      %148 = arith.addf %126, %145 : vector<32x128xf32>
      %149 = arith.addf %127, %147 : vector<32x128xf32>
      %150 = arith.mulf %145, %138 : vector<32x128xf32>
      %151 = arith.addf %129, %150 : vector<32x128xf32>
      %152 = arith.mulf %147, %143 : vector<32x128xf32>
      %153 = arith.addf %131, %152 : vector<32x128xf32>
      %154 = arith.mulf %145, %143 : vector<32x128xf32>
      %155 = arith.addf %133, %154 : vector<32x128xf32>
      %c5_i32 = arith.constant 5 : i32
      %156 = arith.addi %52, %c5_i32 : i32
      %c0_101 = arith.constant 0 : index
      %157 = arith.index_cast %156 : i32 to index
      %c3_102 = arith.constant 3 : index
      %c0_103 = arith.constant 0 : index
      %158 = vector.load %arg5[%c0_101, %157, %c3_102, %c0_103] : memref<2x18x40x128xf32, #tpu.memory_space<vmem>>, vector<1x1x32x128xf32>
      %159 = vector.shape_cast %158 : vector<1x1x32x128xf32> to vector<1x32x128xf32>
      %160 = vector.shape_cast %159 : vector<1x32x128xf32> to vector<32x128xf32>
      %c5_i32_104 = arith.constant 5 : i32
      %161 = arith.addi %52, %c5_i32_104 : i32
      %c1_105 = arith.constant 1 : index
      %162 = arith.index_cast %161 : i32 to index
      %c3_106 = arith.constant 3 : index
      %c0_107 = arith.constant 0 : index
      %163 = vector.load %arg5[%c1_105, %162, %c3_106, %c0_107] : memref<2x18x40x128xf32, #tpu.memory_space<vmem>>, vector<1x1x32x128xf32>
      %164 = vector.shape_cast %163 : vector<1x1x32x128xf32> to vector<1x32x128xf32>
      %165 = vector.shape_cast %164 : vector<1x32x128xf32> to vector<32x128xf32>
      %cst_108 = arith.constant 0.266011715 : f32
      %166 = vector.broadcast %cst_108 : f32 to vector<32x128xf32>
      %167 = arith.mulf %166, %160 : vector<32x128xf32>
      %cst_109 = arith.constant 0.266011715 : f32
      %168 = vector.broadcast %cst_109 : f32 to vector<32x128xf32>
      %169 = arith.mulf %168, %165 : vector<32x128xf32>
      %170 = arith.addf %148, %167 : vector<32x128xf32>
      %171 = arith.addf %149, %169 : vector<32x128xf32>
      %172 = arith.mulf %167, %160 : vector<32x128xf32>
      %173 = arith.addf %151, %172 : vector<32x128xf32>
      %174 = arith.mulf %169, %165 : vector<32x128xf32>
      %175 = arith.addf %153, %174 : vector<32x128xf32>
      %176 = arith.mulf %167, %165 : vector<32x128xf32>
      %177 = arith.addf %155, %176 : vector<32x128xf32>
      %c6_i32 = arith.constant 6 : i32
      %178 = arith.addi %52, %c6_i32 : i32
      %c0_110 = arith.constant 0 : index
      %179 = arith.index_cast %178 : i32 to index
      %c3_111 = arith.constant 3 : index
      %c0_112 = arith.constant 0 : index
      %180 = vector.load %arg5[%c0_110, %179, %c3_111, %c0_112] : memref<2x18x40x128xf32, #tpu.memory_space<vmem>>, vector<1x1x32x128xf32>
      %181 = vector.shape_cast %180 : vector<1x1x32x128xf32> to vector<1x32x128xf32>
      %182 = vector.shape_cast %181 : vector<1x32x128xf32> to vector<32x128xf32>
      %c6_i32_113 = arith.constant 6 : i32
      %183 = arith.addi %52, %c6_i32_113 : i32
      %c1_114 = arith.constant 1 : index
      %184 = arith.index_cast %183 : i32 to index
      %c3_115 = arith.constant 3 : index
      %c0_116 = arith.constant 0 : index
      %185 = vector.load %arg5[%c1_114, %184, %c3_115, %c0_116] : memref<2x18x40x128xf32, #tpu.memory_space<vmem>>, vector<1x1x32x128xf32>
      %186 = vector.shape_cast %185 : vector<1x1x32x128xf32> to vector<1x32x128xf32>
      %187 = vector.shape_cast %186 : vector<1x32x128xf32> to vector<32x128xf32>
      %cst_117 = arith.constant 0.213005543 : f32
      %188 = vector.broadcast %cst_117 : f32 to vector<32x128xf32>
      %189 = arith.mulf %188, %182 : vector<32x128xf32>
      %cst_118 = arith.constant 0.213005543 : f32
      %190 = vector.broadcast %cst_118 : f32 to vector<32x128xf32>
      %191 = arith.mulf %190, %187 : vector<32x128xf32>
      %192 = arith.addf %170, %189 : vector<32x128xf32>
      %193 = arith.addf %171, %191 : vector<32x128xf32>
      %194 = arith.mulf %189, %182 : vector<32x128xf32>
      %195 = arith.addf %173, %194 : vector<32x128xf32>
      %196 = arith.mulf %191, %187 : vector<32x128xf32>
      %197 = arith.addf %175, %196 : vector<32x128xf32>
      %198 = arith.mulf %189, %187 : vector<32x128xf32>
      %199 = arith.addf %177, %198 : vector<32x128xf32>
      %c7_i32 = arith.constant 7 : i32
      %200 = arith.addi %52, %c7_i32 : i32
      %c0_119 = arith.constant 0 : index
      %201 = arith.index_cast %200 : i32 to index
      %c3_120 = arith.constant 3 : index
      %c0_121 = arith.constant 0 : index
      %202 = vector.load %arg5[%c0_119, %201, %c3_120, %c0_121] : memref<2x18x40x128xf32, #tpu.memory_space<vmem>>, vector<1x1x32x128xf32>
      %203 = vector.shape_cast %202 : vector<1x1x32x128xf32> to vector<1x32x128xf32>
      %204 = vector.shape_cast %203 : vector<1x32x128xf32> to vector<32x128xf32>
      %c7_i32_122 = arith.constant 7 : i32
      %205 = arith.addi %52, %c7_i32_122 : i32
      %c1_123 = arith.constant 1 : index
      %206 = arith.index_cast %205 : i32 to index
      %c3_124 = arith.constant 3 : index
      %c0_125 = arith.constant 0 : index
      %207 = vector.load %arg5[%c1_123, %206, %c3_124, %c0_125] : memref<2x18x40x128xf32, #tpu.memory_space<vmem>>, vector<1x1x32x128xf32>
      %208 = vector.shape_cast %207 : vector<1x1x32x128xf32> to vector<1x32x128xf32>
      %209 = vector.shape_cast %208 : vector<1x32x128xf32> to vector<32x128xf32>
      %cst_126 = arith.constant 0.109360687 : f32
      %210 = vector.broadcast %cst_126 : f32 to vector<32x128xf32>
      %211 = arith.mulf %210, %204 : vector<32x128xf32>
      %cst_127 = arith.constant 0.109360687 : f32
      %212 = vector.broadcast %cst_127 : f32 to vector<32x128xf32>
      %213 = arith.mulf %212, %209 : vector<32x128xf32>
      %214 = arith.addf %192, %211 : vector<32x128xf32>
      %215 = arith.addf %193, %213 : vector<32x128xf32>
      %216 = arith.mulf %211, %204 : vector<32x128xf32>
      %217 = arith.addf %195, %216 : vector<32x128xf32>
      %218 = arith.mulf %213, %209 : vector<32x128xf32>
      %219 = arith.addf %197, %218 : vector<32x128xf32>
      %220 = arith.mulf %211, %209 : vector<32x128xf32>
      %221 = arith.addf %199, %220 : vector<32x128xf32>
      %c8_i32_128 = arith.constant 8 : i32
      %222 = arith.addi %52, %c8_i32_128 : i32
      %c0_129 = arith.constant 0 : index
      %223 = arith.index_cast %222 : i32 to index
      %c3_130 = arith.constant 3 : index
      %c0_131 = arith.constant 0 : index
      %224 = vector.load %arg5[%c0_129, %223, %c3_130, %c0_131] : memref<2x18x40x128xf32, #tpu.memory_space<vmem>>, vector<1x1x32x128xf32>
      %225 = vector.shape_cast %224 : vector<1x1x32x128xf32> to vector<1x32x128xf32>
      %226 = vector.shape_cast %225 : vector<1x32x128xf32> to vector<32x128xf32>
      %c8_i32_132 = arith.constant 8 : i32
      %227 = arith.addi %52, %c8_i32_132 : i32
      %c1_133 = arith.constant 1 : index
      %228 = arith.index_cast %227 : i32 to index
      %c3_134 = arith.constant 3 : index
      %c0_135 = arith.constant 0 : index
      %229 = vector.load %arg5[%c1_133, %228, %c3_134, %c0_135] : memref<2x18x40x128xf32, #tpu.memory_space<vmem>>, vector<1x1x32x128xf32>
      %230 = vector.shape_cast %229 : vector<1x1x32x128xf32> to vector<1x32x128xf32>
      %231 = vector.shape_cast %230 : vector<1x32x128xf32> to vector<32x128xf32>
      %cst_136 = arith.constant 0.0360007733 : f32
      %232 = vector.broadcast %cst_136 : f32 to vector<32x128xf32>
      %233 = arith.mulf %232, %226 : vector<32x128xf32>
      %cst_137 = arith.constant 0.0360007733 : f32
      %234 = vector.broadcast %cst_137 : f32 to vector<32x128xf32>
      %235 = arith.mulf %234, %231 : vector<32x128xf32>
      %236 = arith.addf %214, %233 : vector<32x128xf32>
      %237 = arith.addf %215, %235 : vector<32x128xf32>
      %238 = arith.mulf %233, %226 : vector<32x128xf32>
      %239 = arith.addf %217, %238 : vector<32x128xf32>
      %240 = arith.mulf %235, %231 : vector<32x128xf32>
      %241 = arith.addf %219, %240 : vector<32x128xf32>
      %242 = arith.mulf %233, %231 : vector<32x128xf32>
      %243 = arith.addf %221, %242 : vector<32x128xf32>
      %c9_i32 = arith.constant 9 : i32
      %244 = arith.addi %52, %c9_i32 : i32
      %c0_138 = arith.constant 0 : index
      %245 = arith.index_cast %244 : i32 to index
      %c3_139 = arith.constant 3 : index
      %c0_140 = arith.constant 0 : index
      %246 = vector.load %arg5[%c0_138, %245, %c3_139, %c0_140] : memref<2x18x40x128xf32, #tpu.memory_space<vmem>>, vector<1x1x32x128xf32>
      %247 = vector.shape_cast %246 : vector<1x1x32x128xf32> to vector<1x32x128xf32>
      %248 = vector.shape_cast %247 : vector<1x32x128xf32> to vector<32x128xf32>
      %c9_i32_141 = arith.constant 9 : i32
      %249 = arith.addi %52, %c9_i32_141 : i32
      %c1_142 = arith.constant 1 : index
      %250 = arith.index_cast %249 : i32 to index
      %c3_143 = arith.constant 3 : index
      %c0_144 = arith.constant 0 : index
      %251 = vector.load %arg5[%c1_142, %250, %c3_143, %c0_144] : memref<2x18x40x128xf32, #tpu.memory_space<vmem>>, vector<1x1x32x128xf32>
      %252 = vector.shape_cast %251 : vector<1x1x32x128xf32> to vector<1x32x128xf32>
      %253 = vector.shape_cast %252 : vector<1x32x128xf32> to vector<32x128xf32>
      %cst_145 = arith.constant 0.00759875821 : f32
      %254 = vector.broadcast %cst_145 : f32 to vector<32x128xf32>
      %255 = arith.mulf %254, %248 : vector<32x128xf32>
      %cst_146 = arith.constant 0.00759875821 : f32
      %256 = vector.broadcast %cst_146 : f32 to vector<32x128xf32>
      %257 = arith.mulf %256, %253 : vector<32x128xf32>
      %258 = arith.addf %236, %255 : vector<32x128xf32>
      %259 = arith.addf %237, %257 : vector<32x128xf32>
      %260 = arith.mulf %255, %248 : vector<32x128xf32>
      %261 = arith.addf %239, %260 : vector<32x128xf32>
      %262 = arith.mulf %257, %253 : vector<32x128xf32>
      %263 = arith.addf %241, %262 : vector<32x128xf32>
      %264 = arith.mulf %255, %253 : vector<32x128xf32>
      %265 = arith.addf %243, %264 : vector<32x128xf32>
      %c10_i32 = arith.constant 10 : i32
      %266 = arith.addi %52, %c10_i32 : i32
      %c0_147 = arith.constant 0 : index
      %267 = arith.index_cast %266 : i32 to index
      %c3_148 = arith.constant 3 : index
      %c0_149 = arith.constant 0 : index
      %268 = vector.load %arg5[%c0_147, %267, %c3_148, %c0_149] : memref<2x18x40x128xf32, #tpu.memory_space<vmem>>, vector<1x1x32x128xf32>
      %269 = vector.shape_cast %268 : vector<1x1x32x128xf32> to vector<1x32x128xf32>
      %270 = vector.shape_cast %269 : vector<1x32x128xf32> to vector<32x128xf32>
      %c10_i32_150 = arith.constant 10 : i32
      %271 = arith.addi %52, %c10_i32_150 : i32
      %c1_151 = arith.constant 1 : index
      %272 = arith.index_cast %271 : i32 to index
      %c3_152 = arith.constant 3 : index
      %c0_153 = arith.constant 0 : index
      %273 = vector.load %arg5[%c1_151, %272, %c3_152, %c0_153] : memref<2x18x40x128xf32, #tpu.memory_space<vmem>>, vector<1x1x32x128xf32>
      %274 = vector.shape_cast %273 : vector<1x1x32x128xf32> to vector<1x32x128xf32>
      %275 = vector.shape_cast %274 : vector<1x32x128xf32> to vector<32x128xf32>
      %cst_154 = arith.constant 0.00102838012 : f32
      %276 = vector.broadcast %cst_154 : f32 to vector<32x128xf32>
      %277 = arith.mulf %276, %270 : vector<32x128xf32>
      %cst_155 = arith.constant 0.00102838012 : f32
      %278 = vector.broadcast %cst_155 : f32 to vector<32x128xf32>
      %279 = arith.mulf %278, %275 : vector<32x128xf32>
      %280 = arith.addf %258, %277 : vector<32x128xf32>
      %281 = arith.addf %259, %279 : vector<32x128xf32>
      %282 = arith.mulf %277, %270 : vector<32x128xf32>
      %283 = arith.addf %261, %282 : vector<32x128xf32>
      %284 = arith.mulf %279, %275 : vector<32x128xf32>
      %285 = arith.addf %263, %284 : vector<32x128xf32>
      %286 = arith.mulf %277, %275 : vector<32x128xf32>
      %287 = arith.addf %265, %286 : vector<32x128xf32>
      %c0_156 = arith.constant 0 : index
      %c0_157 = arith.constant 0 : index
      %c0_158 = arith.constant 0 : index
      %288 = vector.load %arg6[%c0_156, %c0_157, %c0_158] : memref<5x32x128xf32, #tpu.memory_space<vmem>>, vector<1x32x128xf32>
      %289 = vector.shape_cast %288 : vector<1x32x128xf32> to vector<32x128xf32>
      %290 = vector.shape_cast %280 : vector<32x128xf32> to vector<1x32x128xf32>
      tpu.vector_store %arg6[%c0_156, %c0_157, %c0_158], %290 {strides = array<i32>} : memref<5x32x128xf32, #tpu.memory_space<vmem>>, vector<1x32x128xf32>,
      %c1_159 = arith.constant 1 : index
      %c0_160 = arith.constant 0 : index
      %c0_161 = arith.constant 0 : index
      %291 = vector.load %arg6[%c1_159, %c0_160, %c0_161] : memref<5x32x128xf32, #tpu.memory_space<vmem>>, vector<1x32x128xf32>
      %292 = vector.shape_cast %291 : vector<1x32x128xf32> to vector<32x128xf32>
      %293 = vector.shape_cast %281 : vector<32x128xf32> to vector<1x32x128xf32>
      tpu.vector_store %arg6[%c1_159, %c0_160, %c0_161], %293 {strides = array<i32>} : memref<5x32x128xf32, #tpu.memory_space<vmem>>, vector<1x32x128xf32>,
      %c2 = arith.constant 2 : index
      %c0_162 = arith.constant 0 : index
      %c0_163 = arith.constant 0 : index
      %294 = vector.load %arg6[%c2, %c0_162, %c0_163] : memref<5x32x128xf32, #tpu.memory_space<vmem>>, vector<1x32x128xf32>
      %295 = vector.shape_cast %294 : vector<1x32x128xf32> to vector<32x128xf32>
      %296 = vector.shape_cast %283 : vector<32x128xf32> to vector<1x32x128xf32>
      tpu.vector_store %arg6[%c2, %c0_162, %c0_163], %296 {strides = array<i32>} : memref<5x32x128xf32, #tpu.memory_space<vmem>>, vector<1x32x128xf32>,
      %c3_164 = arith.constant 3 : index
      %c0_165 = arith.constant 0 : index
      %c0_166 = arith.constant 0 : index
      %297 = vector.load %arg6[%c3_164, %c0_165, %c0_166] : memref<5x32x128xf32, #tpu.memory_space<vmem>>, vector<1x32x128xf32>
      %298 = vector.shape_cast %297 : vector<1x32x128xf32> to vector<32x128xf32>
      %299 = vector.shape_cast %285 : vector<32x128xf32> to vector<1x32x128xf32>
      tpu.vector_store %arg6[%c3_164, %c0_165, %c0_166], %299 {strides = array<i32>} : memref<5x32x128xf32, #tpu.memory_space<vmem>>, vector<1x32x128xf32>,
      %c4 = arith.constant 4 : index
      %c0_167 = arith.constant 0 : index
      %c0_168 = arith.constant 0 : index
      %300 = vector.load %arg6[%c4, %c0_167, %c0_168] : memref<5x32x128xf32, #tpu.memory_space<vmem>>, vector<1x32x128xf32>
      %301 = vector.shape_cast %300 : vector<1x32x128xf32> to vector<32x128xf32>
      %302 = vector.shape_cast %287 : vector<32x128xf32> to vector<1x32x128xf32>
      tpu.vector_store %arg6[%c4, %c0_167, %c0_168], %302 {strides = array<i32>} : memref<5x32x128xf32, #tpu.memory_space<vmem>>, vector<1x32x128xf32>,
      %c0_169 = arith.constant 0 : index
      %c0_170 = arith.constant 0 : index
      %c0_171 = arith.constant 0 : index
      %303 = vector.load %arg6[%c0_169, %c0_170, %c0_171] : memref<5x32x128xf32, #tpu.memory_space<vmem>>, vector<1x16x128xf32>
      %304 = vector.shape_cast %303 : vector<1x16x128xf32> to vector<16x128xf32>
      %cst_172 = arith.constant 0.00102838012 : f32
      %305 = vector.broadcast %cst_172 : f32 to vector<16x128xf32>
      %306 = arith.mulf %305, %304 : vector<16x128xf32>
      %c0_173 = arith.constant 0 : index
      %c1_174 = arith.constant 1 : index
      %c0_175 = arith.constant 0 : index
      %307 = vector.load %arg6[%c0_173, %c1_174, %c0_175] : memref<5x32x128xf32, #tpu.memory_space<vmem>>, vector<1x16x128xf32>
      %308 = vector.shape_cast %307 : vector<1x16x128xf32> to vector<16x128xf32>
      %cst_176 = arith.constant 0.00759875821 : f32
      %309 = vector.broadcast %cst_176 : f32 to vector<16x128xf32>
      %310 = arith.mulf %309, %308 : vector<16x128xf32>
      %311 = arith.addf %306, %310 : vector<16x128xf32>
      %c0_177 = arith.constant 0 : index
      %c2_178 = arith.constant 2 : index
      %c0_179 = arith.constant 0 : index
      %312 = vector.load %arg6[%c0_177, %c2_178, %c0_179] : memref<5x32x128xf32, #tpu.memory_space<vmem>>, vector<1x16x128xf32>
      %313 = vector.shape_cast %312 : vector<1x16x128xf32> to vector<16x128xf32>
      %cst_180 = arith.constant 0.0360007733 : f32
      %314 = vector.broadcast %cst_180 : f32 to vector<16x128xf32>
      %315 = arith.mulf %314, %313 : vector<16x128xf32>
      %316 = arith.addf %311, %315 : vector<16x128xf32>
      %c0_181 = arith.constant 0 : index
      %c3_182 = arith.constant 3 : index
      %c0_183 = arith.constant 0 : index
      %317 = vector.load %arg6[%c0_181, %c3_182, %c0_183] : memref<5x32x128xf32, #tpu.memory_space<vmem>>, vector<1x16x128xf32>
      %318 = vector.shape_cast %317 : vector<1x16x128xf32> to vector<16x128xf32>
      %cst_184 = arith.constant 0.109360687 : f32
      %319 = vector.broadcast %cst_184 : f32 to vector<16x128xf32>
      %320 = arith.mulf %319, %318 : vector<16x128xf32>
      %321 = arith.addf %316, %320 : vector<16x128xf32>
      %c0_185 = arith.constant 0 : index
      %c4_186 = arith.constant 4 : index
      %c0_187 = arith.constant 0 : index
      %322 = vector.load %arg6[%c0_185, %c4_186, %c0_187] : memref<5x32x128xf32, #tpu.memory_space<vmem>>, vector<1x16x128xf32>
      %323 = vector.shape_cast %322 : vector<1x16x128xf32> to vector<16x128xf32>
      %cst_188 = arith.constant 0.213005543 : f32
      %324 = vector.broadcast %cst_188 : f32 to vector<16x128xf32>
      %325 = arith.mulf %324, %323 : vector<16x128xf32>
      %326 = arith.addf %321, %325 : vector<16x128xf32>
      %c0_189 = arith.constant 0 : index
      %c5_190 = arith.constant 5 : index
      %c0_191 = arith.constant 0 : index
      %327 = vector.load %arg6[%c0_189, %c5_190, %c0_191] : memref<5x32x128xf32, #tpu.memory_space<vmem>>, vector<1x16x128xf32>
      %328 = vector.shape_cast %327 : vector<1x16x128xf32> to vector<16x128xf32>
      %cst_192 = arith.constant 0.266011715 : f32
      %329 = vector.broadcast %cst_192 : f32 to vector<16x128xf32>
      %330 = arith.mulf %329, %328 : vector<16x128xf32>
      %331 = arith.addf %326, %330 : vector<16x128xf32>
      %c0_193 = arith.constant 0 : index
      %c6 = arith.constant 6 : index
      %c0_194 = arith.constant 0 : index
      %332 = vector.load %arg6[%c0_193, %c6, %c0_194] : memref<5x32x128xf32, #tpu.memory_space<vmem>>, vector<1x16x128xf32>
      %333 = vector.shape_cast %332 : vector<1x16x128xf32> to vector<16x128xf32>
      %cst_195 = arith.constant 0.213005543 : f32
      %334 = vector.broadcast %cst_195 : f32 to vector<16x128xf32>
      %335 = arith.mulf %334, %333 : vector<16x128xf32>
      %336 = arith.addf %331, %335 : vector<16x128xf32>
      %c0_196 = arith.constant 0 : index
      %c7 = arith.constant 7 : index
      %c0_197 = arith.constant 0 : index
      %337 = vector.load %arg6[%c0_196, %c7, %c0_197] : memref<5x32x128xf32, #tpu.memory_space<vmem>>, vector<1x16x128xf32>
      %338 = vector.shape_cast %337 : vector<1x16x128xf32> to vector<16x128xf32>
      %cst_198 = arith.constant 0.109360687 : f32
      %339 = vector.broadcast %cst_198 : f32 to vector<16x128xf32>
      %340 = arith.mulf %339, %338 : vector<16x128xf32>
      %341 = arith.addf %336, %340 : vector<16x128xf32>
      %c0_199 = arith.constant 0 : index
      %c8_200 = arith.constant 8 : index
      %c0_201 = arith.constant 0 : index
      %342 = vector.load %arg6[%c0_199, %c8_200, %c0_201] : memref<5x32x128xf32, #tpu.memory_space<vmem>>, vector<1x16x128xf32>
      %343 = vector.shape_cast %342 : vector<1x16x128xf32> to vector<16x128xf32>
      %cst_202 = arith.constant 0.0360007733 : f32
      %344 = vector.broadcast %cst_202 : f32 to vector<16x128xf32>
      %345 = arith.mulf %344, %343 : vector<16x128xf32>
      %346 = arith.addf %341, %345 : vector<16x128xf32>
      %c0_203 = arith.constant 0 : index
      %c9 = arith.constant 9 : index
      %c0_204 = arith.constant 0 : index
      %347 = vector.load %arg6[%c0_203, %c9, %c0_204] : memref<5x32x128xf32, #tpu.memory_space<vmem>>, vector<1x16x128xf32>
      %348 = vector.shape_cast %347 : vector<1x16x128xf32> to vector<16x128xf32>
      %cst_205 = arith.constant 0.00759875821 : f32
      %349 = vector.broadcast %cst_205 : f32 to vector<16x128xf32>
      %350 = arith.mulf %349, %348 : vector<16x128xf32>
      %351 = arith.addf %346, %350 : vector<16x128xf32>
      %c0_206 = arith.constant 0 : index
      %c10 = arith.constant 10 : index
      %c0_207 = arith.constant 0 : index
      %352 = vector.load %arg6[%c0_206, %c10, %c0_207] : memref<5x32x128xf32, #tpu.memory_space<vmem>>, vector<1x16x128xf32>
      %353 = vector.shape_cast %352 : vector<1x16x128xf32> to vector<16x128xf32>
      %cst_208 = arith.constant 0.00102838012 : f32
      %354 = vector.broadcast %cst_208 : f32 to vector<16x128xf32>
      %355 = arith.mulf %354, %353 : vector<16x128xf32>
      %356 = arith.addf %351, %355 : vector<16x128xf32>
      %c1_209 = arith.constant 1 : index
      %c0_210 = arith.constant 0 : index
      %c0_211 = arith.constant 0 : index
      %357 = vector.load %arg6[%c1_209, %c0_210, %c0_211] : memref<5x32x128xf32, #tpu.memory_space<vmem>>, vector<1x16x128xf32>
      %358 = vector.shape_cast %357 : vector<1x16x128xf32> to vector<16x128xf32>
      %cst_212 = arith.constant 0.00102838012 : f32
      %359 = vector.broadcast %cst_212 : f32 to vector<16x128xf32>
      %360 = arith.mulf %359, %358 : vector<16x128xf32>
      %c1_213 = arith.constant 1 : index
      %c1_214 = arith.constant 1 : index
      %c0_215 = arith.constant 0 : index
      %361 = vector.load %arg6[%c1_213, %c1_214, %c0_215] : memref<5x32x128xf32, #tpu.memory_space<vmem>>, vector<1x16x128xf32>
      %362 = vector.shape_cast %361 : vector<1x16x128xf32> to vector<16x128xf32>
      %cst_216 = arith.constant 0.00759875821 : f32
      %363 = vector.broadcast %cst_216 : f32 to vector<16x128xf32>
      %364 = arith.mulf %363, %362 : vector<16x128xf32>
      %365 = arith.addf %360, %364 : vector<16x128xf32>
      %c1_217 = arith.constant 1 : index
      %c2_218 = arith.constant 2 : index
      %c0_219 = arith.constant 0 : index
      %366 = vector.load %arg6[%c1_217, %c2_218, %c0_219] : memref<5x32x128xf32, #tpu.memory_space<vmem>>, vector<1x16x128xf32>
      %367 = vector.shape_cast %366 : vector<1x16x128xf32> to vector<16x128xf32>
      %cst_220 = arith.constant 0.0360007733 : f32
      %368 = vector.broadcast %cst_220 : f32 to vector<16x128xf32>
      %369 = arith.mulf %368, %367 : vector<16x128xf32>
      %370 = arith.addf %365, %369 : vector<16x128xf32>
      %c1_221 = arith.constant 1 : index
      %c3_222 = arith.constant 3 : index
      %c0_223 = arith.constant 0 : index
      %371 = vector.load %arg6[%c1_221, %c3_222, %c0_223] : memref<5x32x128xf32, #tpu.memory_space<vmem>>, vector<1x16x128xf32>
      %372 = vector.shape_cast %371 : vector<1x16x128xf32> to vector<16x128xf32>
      %cst_224 = arith.constant 0.109360687 : f32
      %373 = vector.broadcast %cst_224 : f32 to vector<16x128xf32>
      %374 = arith.mulf %373, %372 : vector<16x128xf32>
      %375 = arith.addf %370, %374 : vector<16x128xf32>
      %c1_225 = arith.constant 1 : index
      %c4_226 = arith.constant 4 : index
      %c0_227 = arith.constant 0 : index
      %376 = vector.load %arg6[%c1_225, %c4_226, %c0_227] : memref<5x32x128xf32, #tpu.memory_space<vmem>>, vector<1x16x128xf32>
      %377 = vector.shape_cast %376 : vector<1x16x128xf32> to vector<16x128xf32>
      %cst_228 = arith.constant 0.213005543 : f32
      %378 = vector.broadcast %cst_228 : f32 to vector<16x128xf32>
      %379 = arith.mulf %378, %377 : vector<16x128xf32>
      %380 = arith.addf %375, %379 : vector<16x128xf32>
      %c1_229 = arith.constant 1 : index
      %c5_230 = arith.constant 5 : index
      %c0_231 = arith.constant 0 : index
      %381 = vector.load %arg6[%c1_229, %c5_230, %c0_231] : memref<5x32x128xf32, #tpu.memory_space<vmem>>, vector<1x16x128xf32>
      %382 = vector.shape_cast %381 : vector<1x16x128xf32> to vector<16x128xf32>
      %cst_232 = arith.constant 0.266011715 : f32
      %383 = vector.broadcast %cst_232 : f32 to vector<16x128xf32>
      %384 = arith.mulf %383, %382 : vector<16x128xf32>
      %385 = arith.addf %380, %384 : vector<16x128xf32>
      %c1_233 = arith.constant 1 : index
      %c6_234 = arith.constant 6 : index
      %c0_235 = arith.constant 0 : index
      %386 = vector.load %arg6[%c1_233, %c6_234, %c0_235] : memref<5x32x128xf32, #tpu.memory_space<vmem>>, vector<1x16x128xf32>
      %387 = vector.shape_cast %386 : vector<1x16x128xf32> to vector<16x128xf32>
      %cst_236 = arith.constant 0.213005543 : f32
      %388 = vector.broadcast %cst_236 : f32 to vector<16x128xf32>
      %389 = arith.mulf %388, %387 : vector<16x128xf32>
      %390 = arith.addf %385, %389 : vector<16x128xf32>
      %c1_237 = arith.constant 1 : index
      %c7_238 = arith.constant 7 : index
      %c0_239 = arith.constant 0 : index
      %391 = vector.load %arg6[%c1_237, %c7_238, %c0_239] : memref<5x32x128xf32, #tpu.memory_space<vmem>>, vector<1x16x128xf32>
      %392 = vector.shape_cast %391 : vector<1x16x128xf32> to vector<16x128xf32>
      %cst_240 = arith.constant 0.109360687 : f32
      %393 = vector.broadcast %cst_240 : f32 to vector<16x128xf32>
      %394 = arith.mulf %393, %392 : vector<16x128xf32>
      %395 = arith.addf %390, %394 : vector<16x128xf32>
      %c1_241 = arith.constant 1 : index
      %c8_242 = arith.constant 8 : index
      %c0_243 = arith.constant 0 : index
      %396 = vector.load %arg6[%c1_241, %c8_242, %c0_243] : memref<5x32x128xf32, #tpu.memory_space<vmem>>, vector<1x16x128xf32>
      %397 = vector.shape_cast %396 : vector<1x16x128xf32> to vector<16x128xf32>
      %cst_244 = arith.constant 0.0360007733 : f32
      %398 = vector.broadcast %cst_244 : f32 to vector<16x128xf32>
      %399 = arith.mulf %398, %397 : vector<16x128xf32>
      %400 = arith.addf %395, %399 : vector<16x128xf32>
      %c1_245 = arith.constant 1 : index
      %c9_246 = arith.constant 9 : index
      %c0_247 = arith.constant 0 : index
      %401 = vector.load %arg6[%c1_245, %c9_246, %c0_247] : memref<5x32x128xf32, #tpu.memory_space<vmem>>, vector<1x16x128xf32>
      %402 = vector.shape_cast %401 : vector<1x16x128xf32> to vector<16x128xf32>
      %cst_248 = arith.constant 0.00759875821 : f32
      %403 = vector.broadcast %cst_248 : f32 to vector<16x128xf32>
      %404 = arith.mulf %403, %402 : vector<16x128xf32>
      %405 = arith.addf %400, %404 : vector<16x128xf32>
      %c1_249 = arith.constant 1 : index
      %c10_250 = arith.constant 10 : index
      %c0_251 = arith.constant 0 : index
      %406 = vector.load %arg6[%c1_249, %c10_250, %c0_251] : memref<5x32x128xf32, #tpu.memory_space<vmem>>, vector<1x16x128xf32>
      %407 = vector.shape_cast %406 : vector<1x16x128xf32> to vector<16x128xf32>
      %cst_252 = arith.constant 0.00102838012 : f32
      %408 = vector.broadcast %cst_252 : f32 to vector<16x128xf32>
      %409 = arith.mulf %408, %407 : vector<16x128xf32>
      %410 = arith.addf %405, %409 : vector<16x128xf32>
      %c2_253 = arith.constant 2 : index
      %c0_254 = arith.constant 0 : index
      %c0_255 = arith.constant 0 : index
      %411 = vector.load %arg6[%c2_253, %c0_254, %c0_255] : memref<5x32x128xf32, #tpu.memory_space<vmem>>, vector<1x16x128xf32>
      %412 = vector.shape_cast %411 : vector<1x16x128xf32> to vector<16x128xf32>
      %cst_256 = arith.constant 0.00102838012 : f32
      %413 = vector.broadcast %cst_256 : f32 to vector<16x128xf32>
      %414 = arith.mulf %413, %412 : vector<16x128xf32>
      %c2_257 = arith.constant 2 : index
      %c1_258 = arith.constant 1 : index
      %c0_259 = arith.constant 0 : index
      %415 = vector.load %arg6[%c2_257, %c1_258, %c0_259] : memref<5x32x128xf32, #tpu.memory_space<vmem>>, vector<1x16x128xf32>
      %416 = vector.shape_cast %415 : vector<1x16x128xf32> to vector<16x128xf32>
      %cst_260 = arith.constant 0.00759875821 : f32
      %417 = vector.broadcast %cst_260 : f32 to vector<16x128xf32>
      %418 = arith.mulf %417, %416 : vector<16x128xf32>
      %419 = arith.addf %414, %418 : vector<16x128xf32>
      %c2_261 = arith.constant 2 : index
      %c2_262 = arith.constant 2 : index
      %c0_263 = arith.constant 0 : index
      %420 = vector.load %arg6[%c2_261, %c2_262, %c0_263] : memref<5x32x128xf32, #tpu.memory_space<vmem>>, vector<1x16x128xf32>
      %421 = vector.shape_cast %420 : vector<1x16x128xf32> to vector<16x128xf32>
      %cst_264 = arith.constant 0.0360007733 : f32
      %422 = vector.broadcast %cst_264 : f32 to vector<16x128xf32>
      %423 = arith.mulf %422, %421 : vector<16x128xf32>
      %424 = arith.addf %419, %423 : vector<16x128xf32>
      %c2_265 = arith.constant 2 : index
      %c3_266 = arith.constant 3 : index
      %c0_267 = arith.constant 0 : index
      %425 = vector.load %arg6[%c2_265, %c3_266, %c0_267] : memref<5x32x128xf32, #tpu.memory_space<vmem>>, vector<1x16x128xf32>
      %426 = vector.shape_cast %425 : vector<1x16x128xf32> to vector<16x128xf32>
      %cst_268 = arith.constant 0.109360687 : f32
      %427 = vector.broadcast %cst_268 : f32 to vector<16x128xf32>
      %428 = arith.mulf %427, %426 : vector<16x128xf32>
      %429 = arith.addf %424, %428 : vector<16x128xf32>
      %c2_269 = arith.constant 2 : index
      %c4_270 = arith.constant 4 : index
      %c0_271 = arith.constant 0 : index
      %430 = vector.load %arg6[%c2_269, %c4_270, %c0_271] : memref<5x32x128xf32, #tpu.memory_space<vmem>>, vector<1x16x128xf32>
      %431 = vector.shape_cast %430 : vector<1x16x128xf32> to vector<16x128xf32>
      %cst_272 = arith.constant 0.213005543 : f32
      %432 = vector.broadcast %cst_272 : f32 to vector<16x128xf32>
      %433 = arith.mulf %432, %431 : vector<16x128xf32>
      %434 = arith.addf %429, %433 : vector<16x128xf32>
      %c2_273 = arith.constant 2 : index
      %c5_274 = arith.constant 5 : index
      %c0_275 = arith.constant 0 : index
      %435 = vector.load %arg6[%c2_273, %c5_274, %c0_275] : memref<5x32x128xf32, #tpu.memory_space<vmem>>, vector<1x16x128xf32>
      %436 = vector.shape_cast %435 : vector<1x16x128xf32> to vector<16x128xf32>
      %cst_276 = arith.constant 0.266011715 : f32
      %437 = vector.broadcast %cst_276 : f32 to vector<16x128xf32>
      %438 = arith.mulf %437, %436 : vector<16x128xf32>
      %439 = arith.addf %434, %438 : vector<16x128xf32>
      %c2_277 = arith.constant 2 : index
      %c6_278 = arith.constant 6 : index
      %c0_279 = arith.constant 0 : index
      %440 = vector.load %arg6[%c2_277, %c6_278, %c0_279] : memref<5x32x128xf32, #tpu.memory_space<vmem>>, vector<1x16x128xf32>
      %441 = vector.shape_cast %440 : vector<1x16x128xf32> to vector<16x128xf32>
      %cst_280 = arith.constant 0.213005543 : f32
      %442 = vector.broadcast %cst_280 : f32 to vector<16x128xf32>
      %443 = arith.mulf %442, %441 : vector<16x128xf32>
      %444 = arith.addf %439, %443 : vector<16x128xf32>
      %c2_281 = arith.constant 2 : index
      %c7_282 = arith.constant 7 : index
      %c0_283 = arith.constant 0 : index
      %445 = vector.load %arg6[%c2_281, %c7_282, %c0_283] : memref<5x32x128xf32, #tpu.memory_space<vmem>>, vector<1x16x128xf32>
      %446 = vector.shape_cast %445 : vector<1x16x128xf32> to vector<16x128xf32>
      %cst_284 = arith.constant 0.109360687 : f32
      %447 = vector.broadcast %cst_284 : f32 to vector<16x128xf32>
      %448 = arith.mulf %447, %446 : vector<16x128xf32>
      %449 = arith.addf %444, %448 : vector<16x128xf32>
      %c2_285 = arith.constant 2 : index
      %c8_286 = arith.constant 8 : index
      %c0_287 = arith.constant 0 : index
      %450 = vector.load %arg6[%c2_285, %c8_286, %c0_287] : memref<5x32x128xf32, #tpu.memory_space<vmem>>, vector<1x16x128xf32>
      %451 = vector.shape_cast %450 : vector<1x16x128xf32> to vector<16x128xf32>
      %cst_288 = arith.constant 0.0360007733 : f32
      %452 = vector.broadcast %cst_288 : f32 to vector<16x128xf32>
      %453 = arith.mulf %452, %451 : vector<16x128xf32>
      %454 = arith.addf %449, %453 : vector<16x128xf32>
      %c2_289 = arith.constant 2 : index
      %c9_290 = arith.constant 9 : index
      %c0_291 = arith.constant 0 : index
      %455 = vector.load %arg6[%c2_289, %c9_290, %c0_291] : memref<5x32x128xf32, #tpu.memory_space<vmem>>, vector<1x16x128xf32>
      %456 = vector.shape_cast %455 : vector<1x16x128xf32> to vector<16x128xf32>
      %cst_292 = arith.constant 0.00759875821 : f32
      %457 = vector.broadcast %cst_292 : f32 to vector<16x128xf32>
      %458 = arith.mulf %457, %456 : vector<16x128xf32>
      %459 = arith.addf %454, %458 : vector<16x128xf32>
      %c2_293 = arith.constant 2 : index
      %c10_294 = arith.constant 10 : index
      %c0_295 = arith.constant 0 : index
      %460 = vector.load %arg6[%c2_293, %c10_294, %c0_295] : memref<5x32x128xf32, #tpu.memory_space<vmem>>, vector<1x16x128xf32>
      %461 = vector.shape_cast %460 : vector<1x16x128xf32> to vector<16x128xf32>
      %cst_296 = arith.constant 0.00102838012 : f32
      %462 = vector.broadcast %cst_296 : f32 to vector<16x128xf32>
      %463 = arith.mulf %462, %461 : vector<16x128xf32>
      %464 = arith.addf %459, %463 : vector<16x128xf32>
      %c3_297 = arith.constant 3 : index
      %c0_298 = arith.constant 0 : index
      %c0_299 = arith.constant 0 : index
      %465 = vector.load %arg6[%c3_297, %c0_298, %c0_299] : memref<5x32x128xf32, #tpu.memory_space<vmem>>, vector<1x16x128xf32>
      %466 = vector.shape_cast %465 : vector<1x16x128xf32> to vector<16x128xf32>
      %cst_300 = arith.constant 0.00102838012 : f32
      %467 = vector.broadcast %cst_300 : f32 to vector<16x128xf32>
      %468 = arith.mulf %467, %466 : vector<16x128xf32>
      %c3_301 = arith.constant 3 : index
      %c1_302 = arith.constant 1 : index
      %c0_303 = arith.constant 0 : index
      %469 = vector.load %arg6[%c3_301, %c1_302, %c0_303] : memref<5x32x128xf32, #tpu.memory_space<vmem>>, vector<1x16x128xf32>
      %470 = vector.shape_cast %469 : vector<1x16x128xf32> to vector<16x128xf32>
      %cst_304 = arith.constant 0.00759875821 : f32
      %471 = vector.broadcast %cst_304 : f32 to vector<16x128xf32>
      %472 = arith.mulf %471, %470 : vector<16x128xf32>
      %473 = arith.addf %468, %472 : vector<16x128xf32>
      %c3_305 = arith.constant 3 : index
      %c2_306 = arith.constant 2 : index
      %c0_307 = arith.constant 0 : index
      %474 = vector.load %arg6[%c3_305, %c2_306, %c0_307] : memref<5x32x128xf32, #tpu.memory_space<vmem>>, vector<1x16x128xf32>
      %475 = vector.shape_cast %474 : vector<1x16x128xf32> to vector<16x128xf32>
      %cst_308 = arith.constant 0.0360007733 : f32
      %476 = vector.broadcast %cst_308 : f32 to vector<16x128xf32>
      %477 = arith.mulf %476, %475 : vector<16x128xf32>
      %478 = arith.addf %473, %477 : vector<16x128xf32>
      %c3_309 = arith.constant 3 : index
      %c3_310 = arith.constant 3 : index
      %c0_311 = arith.constant 0 : index
      %479 = vector.load %arg6[%c3_309, %c3_310, %c0_311] : memref<5x32x128xf32, #tpu.memory_space<vmem>>, vector<1x16x128xf32>
      %480 = vector.shape_cast %479 : vector<1x16x128xf32> to vector<16x128xf32>
      %cst_312 = arith.constant 0.109360687 : f32
      %481 = vector.broadcast %cst_312 : f32 to vector<16x128xf32>
      %482 = arith.mulf %481, %480 : vector<16x128xf32>
      %483 = arith.addf %478, %482 : vector<16x128xf32>
      %c3_313 = arith.constant 3 : index
      %c4_314 = arith.constant 4 : index
      %c0_315 = arith.constant 0 : index
      %484 = vector.load %arg6[%c3_313, %c4_314, %c0_315] : memref<5x32x128xf32, #tpu.memory_space<vmem>>, vector<1x16x128xf32>
      %485 = vector.shape_cast %484 : vector<1x16x128xf32> to vector<16x128xf32>
      %cst_316 = arith.constant 0.213005543 : f32
      %486 = vector.broadcast %cst_316 : f32 to vector<16x128xf32>
      %487 = arith.mulf %486, %485 : vector<16x128xf32>
      %488 = arith.addf %483, %487 : vector<16x128xf32>
      %c3_317 = arith.constant 3 : index
      %c5_318 = arith.constant 5 : index
      %c0_319 = arith.constant 0 : index
      %489 = vector.load %arg6[%c3_317, %c5_318, %c0_319] : memref<5x32x128xf32, #tpu.memory_space<vmem>>, vector<1x16x128xf32>
      %490 = vector.shape_cast %489 : vector<1x16x128xf32> to vector<16x128xf32>
      %cst_320 = arith.constant 0.266011715 : f32
      %491 = vector.broadcast %cst_320 : f32 to vector<16x128xf32>
      %492 = arith.mulf %491, %490 : vector<16x128xf32>
      %493 = arith.addf %488, %492 : vector<16x128xf32>
      %c3_321 = arith.constant 3 : index
      %c6_322 = arith.constant 6 : index
      %c0_323 = arith.constant 0 : index
      %494 = vector.load %arg6[%c3_321, %c6_322, %c0_323] : memref<5x32x128xf32, #tpu.memory_space<vmem>>, vector<1x16x128xf32>
      %495 = vector.shape_cast %494 : vector<1x16x128xf32> to vector<16x128xf32>
      %cst_324 = arith.constant 0.213005543 : f32
      %496 = vector.broadcast %cst_324 : f32 to vector<16x128xf32>
      %497 = arith.mulf %496, %495 : vector<16x128xf32>
      %498 = arith.addf %493, %497 : vector<16x128xf32>
      %c3_325 = arith.constant 3 : index
      %c7_326 = arith.constant 7 : index
      %c0_327 = arith.constant 0 : index
      %499 = vector.load %arg6[%c3_325, %c7_326, %c0_327] : memref<5x32x128xf32, #tpu.memory_space<vmem>>, vector<1x16x128xf32>
      %500 = vector.shape_cast %499 : vector<1x16x128xf32> to vector<16x128xf32>
      %cst_328 = arith.constant 0.109360687 : f32
      %501 = vector.broadcast %cst_328 : f32 to vector<16x128xf32>
      %502 = arith.mulf %501, %500 : vector<16x128xf32>
      %503 = arith.addf %498, %502 : vector<16x128xf32>
      %c3_329 = arith.constant 3 : index
      %c8_330 = arith.constant 8 : index
      %c0_331 = arith.constant 0 : index
      %504 = vector.load %arg6[%c3_329, %c8_330, %c0_331] : memref<5x32x128xf32, #tpu.memory_space<vmem>>, vector<1x16x128xf32>
      %505 = vector.shape_cast %504 : vector<1x16x128xf32> to vector<16x128xf32>
      %cst_332 = arith.constant 0.0360007733 : f32
      %506 = vector.broadcast %cst_332 : f32 to vector<16x128xf32>
      %507 = arith.mulf %506, %505 : vector<16x128xf32>
      %508 = arith.addf %503, %507 : vector<16x128xf32>
      %c3_333 = arith.constant 3 : index
      %c9_334 = arith.constant 9 : index
      %c0_335 = arith.constant 0 : index
      %509 = vector.load %arg6[%c3_333, %c9_334, %c0_335] : memref<5x32x128xf32, #tpu.memory_space<vmem>>, vector<1x16x128xf32>
      %510 = vector.shape_cast %509 : vector<1x16x128xf32> to vector<16x128xf32>
      %cst_336 = arith.constant 0.00759875821 : f32
      %511 = vector.broadcast %cst_336 : f32 to vector<16x128xf32>
      %512 = arith.mulf %511, %510 : vector<16x128xf32>
      %513 = arith.addf %508, %512 : vector<16x128xf32>
      %c3_337 = arith.constant 3 : index
      %c10_338 = arith.constant 10 : index
      %c0_339 = arith.constant 0 : index
      %514 = vector.load %arg6[%c3_337, %c10_338, %c0_339] : memref<5x32x128xf32, #tpu.memory_space<vmem>>, vector<1x16x128xf32>
      %515 = vector.shape_cast %514 : vector<1x16x128xf32> to vector<16x128xf32>
      %cst_340 = arith.constant 0.00102838012 : f32
      %516 = vector.broadcast %cst_340 : f32 to vector<16x128xf32>
      %517 = arith.mulf %516, %515 : vector<16x128xf32>
      %518 = arith.addf %513, %517 : vector<16x128xf32>
      %c4_341 = arith.constant 4 : index
      %c0_342 = arith.constant 0 : index
      %c0_343 = arith.constant 0 : index
      %519 = vector.load %arg6[%c4_341, %c0_342, %c0_343] : memref<5x32x128xf32, #tpu.memory_space<vmem>>, vector<1x16x128xf32>
      %520 = vector.shape_cast %519 : vector<1x16x128xf32> to vector<16x128xf32>
      %cst_344 = arith.constant 0.00102838012 : f32
      %521 = vector.broadcast %cst_344 : f32 to vector<16x128xf32>
      %522 = arith.mulf %521, %520 : vector<16x128xf32>
      %c4_345 = arith.constant 4 : index
      %c1_346 = arith.constant 1 : index
      %c0_347 = arith.constant 0 : index
      %523 = vector.load %arg6[%c4_345, %c1_346, %c0_347] : memref<5x32x128xf32, #tpu.memory_space<vmem>>, vector<1x16x128xf32>
      %524 = vector.shape_cast %523 : vector<1x16x128xf32> to vector<16x128xf32>
      %cst_348 = arith.constant 0.00759875821 : f32
      %525 = vector.broadcast %cst_348 : f32 to vector<16x128xf32>
      %526 = arith.mulf %525, %524 : vector<16x128xf32>
      %527 = arith.addf %522, %526 : vector<16x128xf32>
      %c4_349 = arith.constant 4 : index
      %c2_350 = arith.constant 2 : index
      %c0_351 = arith.constant 0 : index
      %528 = vector.load %arg6[%c4_349, %c2_350, %c0_351] : memref<5x32x128xf32, #tpu.memory_space<vmem>>, vector<1x16x128xf32>
      %529 = vector.shape_cast %528 : vector<1x16x128xf32> to vector<16x128xf32>
      %cst_352 = arith.constant 0.0360007733 : f32
      %530 = vector.broadcast %cst_352 : f32 to vector<16x128xf32>
      %531 = arith.mulf %530, %529 : vector<16x128xf32>
      %532 = arith.addf %527, %531 : vector<16x128xf32>
      %c4_353 = arith.constant 4 : index
      %c3_354 = arith.constant 3 : index
      %c0_355 = arith.constant 0 : index
      %533 = vector.load %arg6[%c4_353, %c3_354, %c0_355] : memref<5x32x128xf32, #tpu.memory_space<vmem>>, vector<1x16x128xf32>
      %534 = vector.shape_cast %533 : vector<1x16x128xf32> to vector<16x128xf32>
      %cst_356 = arith.constant 0.109360687 : f32
      %535 = vector.broadcast %cst_356 : f32 to vector<16x128xf32>
      %536 = arith.mulf %535, %534 : vector<16x128xf32>
      %537 = arith.addf %532, %536 : vector<16x128xf32>
      %c4_357 = arith.constant 4 : index
      %c4_358 = arith.constant 4 : index
      %c0_359 = arith.constant 0 : index
      %538 = vector.load %arg6[%c4_357, %c4_358, %c0_359] : memref<5x32x128xf32, #tpu.memory_space<vmem>>, vector<1x16x128xf32>
      %539 = vector.shape_cast %538 : vector<1x16x128xf32> to vector<16x128xf32>
      %cst_360 = arith.constant 0.213005543 : f32
      %540 = vector.broadcast %cst_360 : f32 to vector<16x128xf32>
      %541 = arith.mulf %540, %539 : vector<16x128xf32>
      %542 = arith.addf %537, %541 : vector<16x128xf32>
      %c4_361 = arith.constant 4 : index
      %c5_362 = arith.constant 5 : index
      %c0_363 = arith.constant 0 : index
      %543 = vector.load %arg6[%c4_361, %c5_362, %c0_363] : memref<5x32x128xf32, #tpu.memory_space<vmem>>, vector<1x16x128xf32>
      %544 = vector.shape_cast %543 : vector<1x16x128xf32> to vector<16x128xf32>
      %cst_364 = arith.constant 0.266011715 : f32
      %545 = vector.broadcast %cst_364 : f32 to vector<16x128xf32>
      %546 = arith.mulf %545, %544 : vector<16x128xf32>
      %547 = arith.addf %542, %546 : vector<16x128xf32>
      %c4_365 = arith.constant 4 : index
      %c6_366 = arith.constant 6 : index
      %c0_367 = arith.constant 0 : index
      %548 = vector.load %arg6[%c4_365, %c6_366, %c0_367] : memref<5x32x128xf32, #tpu.memory_space<vmem>>, vector<1x16x128xf32>
      %549 = vector.shape_cast %548 : vector<1x16x128xf32> to vector<16x128xf32>
      %cst_368 = arith.constant 0.213005543 : f32
      %550 = vector.broadcast %cst_368 : f32 to vector<16x128xf32>
      %551 = arith.mulf %550, %549 : vector<16x128xf32>
      %552 = arith.addf %547, %551 : vector<16x128xf32>
      %c4_369 = arith.constant 4 : index
      %c7_370 = arith.constant 7 : index
      %c0_371 = arith.constant 0 : index
      %553 = vector.load %arg6[%c4_369, %c7_370, %c0_371] : memref<5x32x128xf32, #tpu.memory_space<vmem>>, vector<1x16x128xf32>
      %554 = vector.shape_cast %553 : vector<1x16x128xf32> to vector<16x128xf32>
      %cst_372 = arith.constant 0.109360687 : f32
      %555 = vector.broadcast %cst_372 : f32 to vector<16x128xf32>
      %556 = arith.mulf %555, %554 : vector<16x128xf32>
      %557 = arith.addf %552, %556 : vector<16x128xf32>
      %c4_373 = arith.constant 4 : index
      %c8_374 = arith.constant 8 : index
      %c0_375 = arith.constant 0 : index
      %558 = vector.load %arg6[%c4_373, %c8_374, %c0_375] : memref<5x32x128xf32, #tpu.memory_space<vmem>>, vector<1x16x128xf32>
      %559 = vector.shape_cast %558 : vector<1x16x128xf32> to vector<16x128xf32>
      %cst_376 = arith.constant 0.0360007733 : f32
      %560 = vector.broadcast %cst_376 : f32 to vector<16x128xf32>
      %561 = arith.mulf %560, %559 : vector<16x128xf32>
      %562 = arith.addf %557, %561 : vector<16x128xf32>
      %c4_377 = arith.constant 4 : index
      %c9_378 = arith.constant 9 : index
      %c0_379 = arith.constant 0 : index
      %563 = vector.load %arg6[%c4_377, %c9_378, %c0_379] : memref<5x32x128xf32, #tpu.memory_space<vmem>>, vector<1x16x128xf32>
      %564 = vector.shape_cast %563 : vector<1x16x128xf32> to vector<16x128xf32>
      %cst_380 = arith.constant 0.00759875821 : f32
      %565 = vector.broadcast %cst_380 : f32 to vector<16x128xf32>
      %566 = arith.mulf %565, %564 : vector<16x128xf32>
      %567 = arith.addf %562, %566 : vector<16x128xf32>
      %c4_381 = arith.constant 4 : index
      %c10_382 = arith.constant 10 : index
      %c0_383 = arith.constant 0 : index
      %568 = vector.load %arg6[%c4_381, %c10_382, %c0_383] : memref<5x32x128xf32, #tpu.memory_space<vmem>>, vector<1x16x128xf32>
      %569 = vector.shape_cast %568 : vector<1x16x128xf32> to vector<16x128xf32>
      %cst_384 = arith.constant 0.00102838012 : f32
      %570 = vector.broadcast %cst_384 : f32 to vector<16x128xf32>
      %571 = arith.mulf %570, %569 : vector<16x128xf32>
      %572 = arith.addf %567, %571 : vector<16x128xf32>
      %573 = arith.mulf %356, %410 : vector<16x128xf32>
      %cst_385 = arith.constant 2.000000e+00 : f32
      %574 = vector.broadcast %cst_385 : f32 to vector<16x128xf32>
      %575 = arith.mulf %574, %573 : vector<16x128xf32>
      %cst_386 = arith.constant 9.99999974E-5 : f32
      %576 = vector.broadcast %cst_386 : f32 to vector<16x128xf32>
      %577 = arith.addf %575, %576 : vector<16x128xf32>
      %578 = arith.subf %572, %573 : vector<16x128xf32>
      %cst_387 = arith.constant 2.000000e+00 : f32
      %579 = vector.broadcast %cst_387 : f32 to vector<16x128xf32>
      %580 = arith.mulf %579, %578 : vector<16x128xf32>
      %cst_388 = arith.constant 8.99999984E-4 : f32
      %581 = vector.broadcast %cst_388 : f32 to vector<16x128xf32>
      %582 = arith.addf %580, %581 : vector<16x128xf32>
      %583 = arith.mulf %577, %582 : vector<16x128xf32>
      %584 = arith.mulf %356, %356 : vector<16x128xf32>
      %585 = arith.mulf %410, %410 : vector<16x128xf32>
      %586 = arith.addf %584, %585 : vector<16x128xf32>
      %cst_389 = arith.constant 9.99999974E-5 : f32
      %587 = vector.broadcast %cst_389 : f32 to vector<16x128xf32>
      %588 = arith.addf %586, %587 : vector<16x128xf32>
      %589 = arith.subf %464, %584 : vector<16x128xf32>
      %590 = arith.subf %518, %585 : vector<16x128xf32>
      %591 = arith.addf %589, %590 : vector<16x128xf32>
      %cst_390 = arith.constant 8.99999984E-4 : f32
      %592 = vector.broadcast %cst_390 : f32 to vector<16x128xf32>
      %593 = arith.addf %591, %592 : vector<16x128xf32>
      %594 = arith.mulf %588, %593 : vector<16x128xf32>
      %595 = tpu.reciprocal %594 {approx = true} : vector<16x128xf32> -> vector<16x128xf32>
      %596 = arith.mulf %594, %595 : vector<16x128xf32>
      %cst_391 = arith.constant 2.000000e+00 : f32
      %597 = vector.broadcast %cst_391 : f32 to vector<16x128xf32>
      %598 = arith.subf %597, %596 : vector<16x128xf32>
      %599 = arith.mulf %595, %598 : vector<16x128xf32>
      %600 = arith.mulf %583, %599 : vector<16x128xf32>
      %c0_392 = arith.constant 0 : index
      %c0_393 = arith.constant 0 : index
      %601 = vector.load %arg7[%c0_392, %c0_393] : memref<16x128xf32, #tpu.memory_space<vmem>>, vector<16x128xf32>
      %602 = arith.addf %601, %600 : vector<16x128xf32>
      %c0_394 = arith.constant 0 : index
      %c0_395 = arith.constant 0 : index
      %603 = vector.load %arg7[%c0_394, %c0_395] : memref<16x128xf32, #tpu.memory_space<vmem>>, vector<16x128xf32>
      tpu.vector_store %arg7[%c0_394, %c0_395], %602 {strides = array<i32>} : memref<16x128xf32, #tpu.memory_space<vmem>>, vector<16x128xf32>,
    }
    %c8_i32_48 = arith.constant 8 : i32
    %c0_49 = arith.constant 0 : index
    %c0_50 = arith.constant 0 : index
    %47 = vector.load %arg7[%c0_49, %c0_50] : memref<16x128xf32, #tpu.memory_space<vmem>>, vector<16x128xf32>
    %cst_51 = arith.constant dense<0.000000e+00> : vector<128xf32>
    %48 = vector.multi_reduction <add>, %47, %cst_51 [0] : vector<16x128xf32> to vector<128xf32>
    %49 = vector.shape_cast %48 : vector<128xf32> to vector<1x1x128xf32>
    %c0_52 = arith.constant 0 : index
    %c0_53 = arith.constant 0 : index
    %c0_54 = arith.constant 0 : index
    %50 = vector.load %arg4[%c0_52, %c0_53, %c0_54] : memref<1x1x128xf32, #tpu.memory_space<vmem>>, vector<1x1x128xf32>
    tpu.vector_store %arg4[%c0_52, %c0_53, %c0_54], %49 {strides = array<i32>} : memref<1x1x128xf32, #tpu.memory_space<vmem>>, vector<1x1x128xf32>,
    return
  }
  func.func @transform_0(%arg0: i32, %arg1: i32) -> (i32, i32, i32) {
    %c0_i32 = arith.constant 0 : i32
    %c0_i32_0 = arith.constant 0 : i32
    %c0_i32_1 = arith.constant 0 : i32
    return %c0_i32, %c0_i32_0, %arg0 : i32, i32, i32
  }
  func.func @transform_1(%arg0: i32, %arg1: i32) -> (i32, i32, i32) {
    %c0_i32 = arith.constant 0 : i32
    %c0_i32_0 = arith.constant 0 : i32
    %c0_i32_1 = arith.constant 0 : i32
    return %c0_i32, %c0_i32_0, %arg0 : i32, i32, i32
  }
  func.func @transform_2(%arg0: i32, %arg1: i32) -> (i32, i32, i32) {
    %c2_i32 = arith.constant 2 : i32
    %0 = arith.muli %arg0, %c2_i32 : i32
    %1 = arith.addi %0, %arg1 : i32
    %c0_i32 = arith.constant 0 : i32
    %c0_i32_0 = arith.constant 0 : i32
    %c0_i32_1 = arith.constant 0 : i32
    return %1, %c0_i32, %c0_i32_0 : i32, i32, i32
  }
}

</mosaic_0001>

<bundles_post_ra>
// kernel: tpu_custom_call.1
= control target key start
LH: loop header
LB: loop body
LE: loop exit
PB: predicated region body
PF: predicated region fallthrough
CT: control target
= control target key end

     0   :  { %7 = vsyncpa [#allocation6], 0  ;;  %s3468_s0 = inlined_call_operand.hbm [shape: f32[16,16,128], index: 0, kind: input, shape index: {}]   ;;  %s3469_s1 = inlined_call_operand.hbm [shape: f32[16,16,128], index: 1, kind: input, shape index: {}]   ;;  %s3470_s2 = inlined_call_operand.hbm [shape: f32[2,1,128], index: 2, kind: output, shape index: {}]  }
   0x1   :  { %8 = vsyncpa [#allocation9], 0 }
   0x2   :  { %9 = vsyncpa [#allocation7], 0 }
   0x3   :  { %11 = vsyncpa [#allocation7 + $0x1], 0  ;;  %s2084_s9 = smov 0   ;;  %s2086_s10 = smov 0  }
   0x4   :  { %s2088_s11 = smov 0   ;;  %s2090_s12 = smov 0  }
   0x5   :  { %s2092_s13 = smov 0   ;;  %s2094_s14 = smov 0  }
   0x6 LB: > { %s1692_s15 = sadd.s32 4294967295, %s2057_s14   ;;  %s1693_s16 = sadd.s32 4294967294, %s2057_s14   ;;  %s2057_s14 = sphi %s2094_s14, %s17_s14   ;;  %s2053_s13 = sphi %s2092_s13, %s3884_s13   ;;  %s2049_s12 = sphi %s2090_s12, %s3883_s12   ;;  %s2045_s11 = sphi %s2088_s11, %s3882_s11   ;;  %s2041_s10 = sphi %s2086_s10, %s3881_s10   ;;  %s2037_s9 = sphi %s2084_s9, %s3880_s9  }
   0x7   : > { %s26_s17 = sadd.s32 1, %s2053_s13  ;;  %s92_s18 = sadd.s32 1, %s2045_s11 }
   0x8   : > { %p27_p0 = scmp.ge.s32.totalorder %s26_s17, 2  ;;  %p102_p1 = scmp.ne.s32.totalorder %s2045_s11, %s2041_s10 }
   0x9   : > { %p103_p2 = scmp.eq.s32.totalorder %s1692_s15, 1  ;;  %p108_p3 = scmp.ne.s32.totalorder %s2041_s10, %s2037_s9 }
   0xa   : > { %s3886_s17 = smov (%p27_p0, %s26_s17), 0  ;;  %p109_p5 = scmp.eq.s32.totalorder %s1693_s16, 1 }
   0xb   : > { %p2124_p4 = por %p103_p2, %p102_p1  ;;  %s89_s20 = ssub.s32 %s2053_s13, %s3886_s17 }
   0xc   : > { %p1694_p6 = scmp.ge.s32.totalorder %s2057_s14, 1  ;;  %p90_p7 = scmp.eq.s32.totalorder %s89_s20, 0 }
   0xd   : > { %s3629_s19 = scalar_select %p2124_p4, 1, 0 }
   0xe   : > { %p2131_p8 = por %p109_p5, %p108_p3  ;;  %p116_p9 = scmp.lt.s32.totalorder %s2057_s14, 3 }
   0xf   : > { %s2137_s22 = scalar_select %p90_p7, %s2045_s11, %s92_s18  }
  0x10   : > { %s3630_s21 = scalar_select %p2131_p8, 1, 0 }
  0x11   : > { %p2139_p10 = pnand %p1694_p6, %p116_p9  ;;  %p2143_p11 = scmp.eq.s32.totalorder %s1692_s15, 0 }
  0x12   : > { %s2063_s25 = smov [#allocation5]   ;;  %s2064_s28 = smov [#allocation8]  }
  0x13   : > { %s3631_s23 = scalar_select %p2139_p10, 1, 0 }
  0x14   : > { %s3632_s24 = scalar_select %p2143_p11, 1, 0 }
  0x15   : > { %p1830_p12 = pneg %p2139_p10  ;;  %s130_s26 = sshll.u32 %s2063_s25, 4  ;;  %s131_s26 = int_to_ptr.vmem [resolvable:$true] %s130_s26 }
  0x16   : > { %s145_s29 = sshll.u32 %s2064_s28, 4  ;;  %s1911_s4 = scalar_lea.hbm %s3468_s0, 4096  ;;  %s2155_s29 = int_to_ptr.vmem [resolvable:$true] %s145_s29 }
  0x17   : > { %p2151_p13 = pnand %p2143_p11, %p1830_p12  ;;  %p1912_p0 = scmp.ne.s32.totalorder %s3468_s0, %s1911_s4 }
  0x18   : > { %p1918_p5 = scmp.lt.u32.totalorder %s1911_s4, %s3468_s0 }
  0x19   : > { %p1913_p1 = pneg %p2151_p13 }
  0x1b   : > { %p1914_p2 = pnand %p1913_p1, %p1912_p0 }
  0x1d   : > { %p1915_p3 = pneg %p1914_p2 }
  0x1f   : > { %p1920_p6 = pnand %p1918_p5, %p1915_p3 }
  0x21   : > { %1923 = shalt.err (!%p1920_p6)
}
  0x22   : > { %s1924_s15 = scalar_lea.vmem %s131_s26, 4096  ;;  %p1932_p8 = scmp.lt.s32.totalorder %s131_s26, %s131_s26 }
  0x23   : > { %p1925_p7 = scmp.ne.s32.totalorder %s131_s26, %s1924_s15  ;;  %p1933_p4 = scmp.lt.s32.totalorder %s1924_s15, %s1924_s15 }
  0x25   : > { %p1927_p9 = pnand %p1925_p7, %p1913_p1  ;;  %p1934_p11 = por %p1933_p4, %p1932_p8 }
  0x27   : > { %p1928_p12 = pneg %p1927_p9 }
  0x29   : > { %p1935_p10 = pnand %p1934_p11, %p1928_p12 }
  0x2b   : > { %1938 = shalt.err (!%p1935_p10)
}
  0x2c   : > { %s2065_s16 = smov 128   ;;  %s2066_s18 = smov 8  }
  0x2d   : > { %1833 = dma.hbm_to_vmem [thread:$0]  (!%p2151_p13), %s3468_s0, 4096, %s131_s26, [#allocation6], %s2065_s16, %s2065_s16, %s2066_s18  }
  0x2e   : > { %s1939_s3 = scalar_lea.hbm %s3469_s1, 4096 }
  0x2f   : > { %p1940_p0 = scmp.ne.s32.totalorder %s3469_s1, %s1939_s3  ;;  %p1946_p10 = scmp.lt.u32.totalorder %s1939_s3, %s3469_s1 }
  0x31   : > { %p1942_p4 = pnand %p1940_p0, %p1913_p1 }
  0x33   : > { %p1943_p8 = pneg %p1942_p4 }
  0x35   : > { %p1948_p11 = pnand %p1946_p10, %p1943_p8 }
  0x37   : > { %1951 = shalt.err (!%p1948_p11)
}
  0x38   : > { %s1952_s26 = scalar_lea.vmem %s2155_s29, 4096  ;;  %p1960_p6 = scmp.lt.s32.totalorder %s2155_s29, %s2155_s29 }
  0x39   : > { %p1953_p2 = scmp.ne.s32.totalorder %s2155_s29, %s1952_s26  ;;  %p1961_p7 = scmp.lt.s32.totalorder %s1952_s26, %s1952_s26 }
  0x3b   : > { %p1955_p3 = pnand %p1953_p2, %p1913_p1  ;;  %p1962_p9 = por %p1961_p7, %p1960_p6 }
  0x3d   : > { %p1956_p5 = pneg %p1955_p3 }
  0x3f   : > { %p1963_p12 = pnand %p1962_p9, %p1956_p5 }
  0x41   : > { %1966 = shalt.err (!%p1963_p12)
}
  0x42   : > { %1836 = dma.hbm_to_vmem [thread:$0]  (!%p2151_p13), %s3469_s1, 4096, %s2155_s29, [#allocation9], %s2065_s16, %s2065_s16, %s2066_s18  }
  0x43   : > { %p3634_p0 = scmp.ne.s32.totalorder %s3631_s23, 0 }
  0x44   : > { %p3635_p4 = scmp.ne.s32.totalorder (!%p3634_p0), %s3632_s24, 0 }
  0x45   : > { %161 = sbr.rel (%p3634_p0) target bundleno = 440 (0x1b8), region = 28 }
  0x4c   : > { %2024 = dma.done.wait (%p3635_p4), [#allocation6], 4096  }
  0x4d   : > { %2026 = vsyncadd (%p3635_p4), [#allocation6], 4294963200 }
  0x4e   : > { %2028 = dma.done.wait (%p3635_p4), [#allocation9], 4096  }
  0x4f   : > { %2030 = vsyncadd (%p3635_p4), [#allocation9], 4294963200  ;;  %s179_s27 = sand.u32 1, %s2041_s10   ;;  %s1700_s20 = sshll.u32 %s2049_s12, 3  ;;  %v2067_v0 = vmov 0.0  }
  0x50   : > { %185 = vst [vmem:[#allocation2 + $0x8] sm:$0xff] %v2067_v0  ;;  %186 = vst [vmem:[#allocation2 + $0x10] sm:$0xff] %v2067_v0  ;;  %s1817_s23 = sshll.u32 %s2049_s12, 7  ;;  %s2407_s16 = scalar_lea.vmem [#allocation10], %s179_s27 }
  0x51   : > { %190 = vst [vmem:[#allocation2 + $0x30] sm:$0xff] %v2067_v0  ;;  %191 = vst [vmem:[#allocation2 + $0x38] sm:$0xff] %v2067_v0  ;;  %s2367_s24 = scalar_lea.vmem [#allocation5], %s1817_s23  ;;  %s2387_s29 = scalar_lea.vmem [#allocation8], %s1817_s23 }
  0x52   : > { %195 = vst [vmem:[#allocation2 + $0x58] sm:$0xff] %v2067_v0  ;;  %196 = vst [vmem:[#allocation2 + $0x60] sm:$0xff] %v2067_v0  ;;  %v397_v1 = vld [vmem:[%s2367_s24] sm:$0xff]  ;;  %v398_v2 = vld [vmem:[%s2367_s24 + $0x8] sm:$0xff]  ;;  %p1702_p13 = scmp.le.s32.totalorder %s2049_s12, 0 }
  0x53   : > { %200 = vst [vmem:[#allocation2 + $0x80] sm:$0xff] %v2067_v0  ;;  %201 = vst [vmem:[#allocation2 + $0x88] sm:$0xff] %v2067_v0  ;;  %v399_v3 = vld [vmem:[%s2367_s24 + $0x10] sm:$0xff]  ;;  %v400_v4 = vld [vmem:[%s2367_s24 + $0x18] sm:$0xff]  ;;  %s1703_s18 = sadd.s32 (!%p1702_p13), 4294967291, %s1700_s20 }
  0x54   : > { %205 = vst [vmem:[#allocation2 + $0xa8] sm:$0xff] %v2067_v0  ;;  %206 = vst [vmem:[#allocation2 + $0xb0] sm:$0xff] %v2067_v0  ;;  %v401_v5 = vld [vmem:[%s2367_s24 + $0x20] sm:$0xff]  ;;  %v402_v6 = vld [vmem:[%s2367_s24 + $0x28] sm:$0xff]  ;;  %s1704_s25 = sshll.u32 (!%p1702_p13), %s1703_s18, 4 }
  0x55   : > { %211 = vst [vmem:[#allocation2 + $0x210] sm:$0xff] %v2067_v0  ;;  %212 = vst [vmem:[#allocation2 + $0x218] sm:$0xff] %v2067_v0  ;;  %v403_v7 = vld [vmem:[%s2367_s24 + $0x30] sm:$0xff]  ;;  %v404_v8 = vld [vmem:[%s2367_s24 + $0x38] sm:$0xff]  ;;  %s470_s28 = scalar_lea.vmem (!%p1702_p13), [#allocation5], %s1704_s25  ;;  %s491_s30 = scalar_lea.vmem (!%p1702_p13), [#allocation8], %s1704_s25 }
  0x56   : > { %216 = vst [vmem:[#allocation2 + $0x238] sm:$0xff] %v2067_v0  ;;  %217 = vst [vmem:[#allocation2 + $0x240] sm:$0xff] %v2067_v0  ;;  %v405_v9 = vld [vmem:[%s2367_s24 + $0x40] sm:$0xff]  ;;  %v406_v10 = vld [vmem:[%s2367_s24 + $0x48] sm:$0xff] }
  0x57   : > { %221 = vst [vmem:[#allocation2 + $0x260] sm:$0xff] %v2067_v0  ;;  %222 = vst [vmem:[#allocation2 + $0x268] sm:$0xff] %v2067_v0  ;;  %v407_v11 = vld [vmem:[%s2367_s24 + $0x50] sm:$0xff]  ;;  %v408_v12 = vld [vmem:[%s2367_s24 + $0x58] sm:$0xff] }
  0x58   : > { %226 = vst [vmem:[#allocation2 + $0x288] sm:$0xff] %v2067_v0  ;;  %227 = vst [vmem:[#allocation2 + $0x290] sm:$0xff] %v2067_v0  ;;  %v409_v13 = vld [vmem:[%s2367_s24 + $0x60] sm:$0xff]  ;;  %v410_v14 = vld [vmem:[%s2367_s24 + $0x68] sm:$0xff] }
  0x59   : > { %231 = vst [vmem:[#allocation2 + $0x2b0] sm:$0xff] %v2067_v0  ;;  %232 = vst [vmem:[#allocation2 + $0x2b8] sm:$0xff] %v2067_v0  ;;  %v411_v15 = vld [vmem:[%s2367_s24 + $0x70] sm:$0xff]  ;;  %v412_v16 = vld [vmem:[%s2367_s24 + $0x78] sm:$0xff] }
  0x5a   : > { %235 = vst [vmem:[#allocation2] sm:$0xff] %v2067_v0  ;;  %240 = vst [vmem:[#allocation2 + $0xc8] sm:$0xff] %v2067_v0  ;;  %v431_v17 = vld [vmem:[%s2387_s29] sm:$0xff]  ;;  %v432_v18 = vld [vmem:[%s2387_s29 + $0x8] sm:$0xff] }
  0x5b   : > { %241 = vst [vmem:[#allocation2 + $0xf0] sm:$0xff] %v2067_v0  ;;  %242 = vst [vmem:[#allocation2 + $0x118] sm:$0xff] %v2067_v0  ;;  %v433_v19 = vld [vmem:[%s2387_s29 + $0x10] sm:$0xff]  ;;  %v434_v20 = vld [vmem:[%s2387_s29 + $0x18] sm:$0xff] }
  0x5c   : > { %243 = vst [vmem:[#allocation2 + $0x140] sm:$0xff] %v2067_v0  ;;  %244 = vst [vmem:[#allocation2 + $0x168] sm:$0xff] %v2067_v0  ;;  %v435_v21 = vld [vmem:[%s2387_s29 + $0x20] sm:$0xff]  ;;  %v436_v22 = vld [vmem:[%s2387_s29 + $0x28] sm:$0xff] }
  0x5d   : > { %245 = vst [vmem:[#allocation2 + $0x190] sm:$0xff] %v2067_v0  ;;  %246 = vst [vmem:[#allocation2 + $0x1b8] sm:$0xff] %v2067_v0  ;;  %v437_v23 = vld [vmem:[%s2387_s29 + $0x30] sm:$0xff]  ;;  %v438_v24 = vld [vmem:[%s2387_s29 + $0x38] sm:$0xff] }
  0x5e   : > { %247 = vst [vmem:[#allocation2 + $0x1e0] sm:$0xff] %v2067_v0  ;;  %263 = vst [vmem:[#allocation2 + $0xe0] sm:$0xff] %v2067_v0  ;;  %v439_v25 = vld [vmem:[%s2387_s29 + $0x40] sm:$0xff]  ;;  %v440_v26 = vld [vmem:[%s2387_s29 + $0x48] sm:$0xff] }
  0x5f   : > { %264 = vst [vmem:[#allocation2 + $0xe8] sm:$0xff] %v2067_v0  ;;  %265 = vst [vmem:[#allocation2 + $0x108] sm:$0xff] %v2067_v0  ;;  %v441_v27 = vld [vmem:[%s2387_s29 + $0x50] sm:$0xff]  ;;  %v442_v28 = vld [vmem:[%s2387_s29 + $0x58] sm:$0xff] }
  0x60   : > { %266 = vst [vmem:[#allocation2 + $0x110] sm:$0xff] %v2067_v0  ;;  %267 = vst [vmem:[#allocation2 + $0x130] sm:$0xff] %v2067_v0  ;;  %v443_v29 = vld [vmem:[%s2387_s29 + $0x60] sm:$0xff]  ;;  %v444_v30 = vld [vmem:[%s2387_s29 + $0x68] sm:$0xff] }
  0x61   : > { %268 = vst [vmem:[#allocation2 + $0x138] sm:$0xff] %v2067_v0  ;;  %269 = vst [vmem:[#allocation2 + $0x158] sm:$0xff] %v2067_v0  ;;  %v445_v31 = vld [vmem:[%s2387_s29 + $0x70] sm:$0xff]  ;;  %v446_v32 = vld [vmem:[%s2387_s29 + $0x78] sm:$0xff] }
  0x62   : > { %270 = vst [vmem:[#allocation2 + $0x160] sm:$0xff] %v2067_v0  ;;  %271 = vst [vmem:[#allocation2 + $0x180] sm:$0xff] %v2067_v0  ;;  %v471_v33 = vld [vmem:[%s470_s28] sm:$0xff] (!%p1702_p13)  ;;  %v472_v34 = vld [vmem:[%s470_s28 + $0x8] sm:$0xff] (!%p1702_p13) }
  0x63   : > { %272 = vst [vmem:[#allocation2 + $0x188] sm:$0xff] %v2067_v0  ;;  %273 = vst [vmem:[#allocation2 + $0x1a8] sm:$0xff] %v2067_v0  ;;  %v473_v35 = vld [vmem:[%s470_s28 + $0x10] sm:$0xff] (!%p1702_p13)  ;;  %v474_v36 = vld [vmem:[%s470_s28 + $0x18] sm:$0xff] (!%p1702_p13) }
  0x64   : > { %274 = vst [vmem:[#allocation2 + $0x1b0] sm:$0xff] %v2067_v0  ;;  %275 = vst [vmem:[#allocation2 + $0x1d0] sm:$0xff] %v2067_v0  ;;  %v475_v37 = vld [vmem:[%s470_s28 + $0x20] sm:$0xff] (!%p1702_p13)  ;;  %v476_v38 = vld [vmem:[%s470_s28 + $0x28] sm:$0xff] (!%p1702_p13) }
  0x65   : > { %276 = vst [vmem:[#allocation2 + $0x1d8] sm:$0xff] %v2067_v0  ;;  %277 = vst [vmem:[#allocation2 + $0x1f8] sm:$0xff] %v2067_v0  ;;  %v477_v39 = vld [vmem:[%s470_s28 + $0x30] sm:$0xff] (!%p1702_p13)  ;;  %v478_v40 = vld [vmem:[%s470_s28 + $0x38] sm:$0xff] (!%p1702_p13) }
  0x66   : > { %278 = vst [vmem:[#allocation2 + $0x200] sm:$0xff] %v2067_v0  ;;  %291 = vst [vmem:[#allocation2 + $0x2d8] sm:$0xff] %v2067_v0  ;;  %v479_v41 = vld [vmem:[%s470_s28 + $0x40] sm:$0xff] (!%p1702_p13)  ;;  %v480_v42 = vld [vmem:[%s470_s28 + $0x48] sm:$0xff] (!%p1702_p13) }
  0x67   : > { %292 = vst [vmem:[#allocation2 + $0x2e0] sm:$0xff] %v2067_v0  ;;  %296 = vst [vmem:[#allocation2 + $0x300] sm:$0xff] %v2067_v0  ;;  %v492_v43 = vld [vmem:[%s491_s30] sm:$0xff] (!%p1702_p13)  ;;  %v493_v44 = vld [vmem:[%s491_s30 + $0x8] sm:$0xff] (!%p1702_p13) }
  0x68   : > { %297 = vst [vmem:[#allocation2 + $0x308] sm:$0xff] %v2067_v0  ;;  %301 = vst [vmem:[#allocation2 + $0x328] sm:$0xff] %v2067_v0  ;;  %v494_v45 = vld [vmem:[%s491_s30 + $0x10] sm:$0xff] (!%p1702_p13)  ;;  %v495_v46 = vld [vmem:[%s491_s30 + $0x18] sm:$0xff] (!%p1702_p13) }
  0x69   : > { %302 = vst [vmem:[#allocation2 + $0x330] sm:$0xff] %v2067_v0  ;;  %306 = vst [vmem:[#allocation2 + $0x350] sm:$0xff] %v2067_v0  ;;  %v496_v47 = vld [vmem:[%s491_s30 + $0x20] sm:$0xff] (!%p1702_p13)  ;;  %v497_v48 = vld [vmem:[%s491_s30 + $0x28] sm:$0xff] (!%p1702_p13) }
  0x6a   : > { %307 = vst [vmem:[#allocation2 + $0x358] sm:$0xff] %v2067_v0  ;;  %311 = vst [vmem:[#allocation2 + $0x378] sm:$0xff] %v2067_v0  ;;  %v498_v49 = vld [vmem:[%s491_s30 + $0x30] sm:$0xff] (!%p1702_p13)  ;;  %v499_v50 = vld [vmem:[%s491_s30 + $0x38] sm:$0xff] (!%p1702_p13) }
  0x6b   : > { %312 = vst [vmem:[#allocation2 + $0x380] sm:$0xff] %v2067_v0  ;;  %317 = vst [vmem:[#allocation2 + $0x4e0] sm:$0xff] %v2067_v0  ;;  %v500_v51 = vld [vmem:[%s491_s30 + $0x40] sm:$0xff] (!%p1702_p13)  ;;  %v501_v52 = vld [vmem:[%s491_s30 + $0x48] sm:$0xff] (!%p1702_p13) }
  0x6c   : > { %318 = vst [vmem:[#allocation2 + $0x4e8] sm:$0xff] %v2067_v0  ;;  %322 = vst [vmem:[#allocation2 + $0x508] sm:$0xff] %v2067_v0 }
  0x6d   : > { %323 = vst [vmem:[#allocation2 + $0x510] sm:$0xff] %v2067_v0  ;;  %327 = vst [vmem:[#allocation2 + $0x530] sm:$0xff] %v2067_v0 }
  0x6e   : > { %328 = vst [vmem:[#allocation2 + $0x538] sm:$0xff] %v2067_v0  ;;  %332 = vst [vmem:[#allocation2 + $0x558] sm:$0xff] %v2067_v0 }
  0x6f   : > { %333 = vst [vmem:[#allocation2 + $0x560] sm:$0xff] %v2067_v0  ;;  %337 = vst [vmem:[#allocation2 + $0x580] sm:$0xff] %v2067_v0 }
  0x70   : > { %338 = vst [vmem:[#allocation2 + $0x588] sm:$0xff] %v2067_v0  ;;  %346 = vst [vmem:[#allocation2 + $0x398] sm:$0xff] %v2067_v0 }
  0x71   : > { %347 = vst [vmem:[#allocation2 + $0x3c0] sm:$0xff] %v2067_v0  ;;  %348 = vst [vmem:[#allocation2 + $0x3e8] sm:$0xff] %v2067_v0 }
  0x72   : > { %349 = vst [vmem:[#allocation2 + $0x410] sm:$0xff] %v2067_v0  ;;  %350 = vst [vmem:[#allocation2 + $0x438] sm:$0xff] %v2067_v0 }
  0x73   : > { %351 = vst [vmem:[#allocation2 + $0x460] sm:$0xff] %v2067_v0  ;;  %352 = vst [vmem:[#allocation2 + $0x488] sm:$0xff] %v2067_v0 }
  0x74   : > { %353 = vst [vmem:[#allocation2 + $0x4b0] sm:$0xff] %v2067_v0  ;;  %369 = vst [vmem:[#allocation2 + $0x3b0] sm:$0xff] %v2067_v0 }
  0x75   : > { %370 = vst [vmem:[#allocation2 + $0x3b8] sm:$0xff] %v2067_v0  ;;  %371 = vst [vmem:[#allocation2 + $0x3d8] sm:$0xff] %v2067_v0 }
  0x76   : > { %372 = vst [vmem:[#allocation2 + $0x3e0] sm:$0xff] %v2067_v0  ;;  %373 = vst [vmem:[#allocation2 + $0x400] sm:$0xff] %v2067_v0 }
  0x77   : > { %374 = vst [vmem:[#allocation2 + $0x408] sm:$0xff] %v2067_v0  ;;  %375 = vst [vmem:[#allocation2 + $0x428] sm:$0xff] %v2067_v0 }
  0x78   : > { %376 = vst [vmem:[#allocation2 + $0x430] sm:$0xff] %v2067_v0  ;;  %377 = vst [vmem:[#allocation2 + $0x450] sm:$0xff] %v2067_v0 }
  0x79   : > { %378 = vst [vmem:[#allocation2 + $0x458] sm:$0xff] %v2067_v0  ;;  %379 = vst [vmem:[#allocation2 + $0x478] sm:$0xff] %v2067_v0 }
  0x7a   : > { %380 = vst [vmem:[#allocation2 + $0x480] sm:$0xff] %v2067_v0  ;;  %381 = vst [vmem:[#allocation2 + $0x4a0] sm:$0xff] %v2067_v0 }
  0x7b   : > { %382 = vst [vmem:[#allocation2 + $0x4a8] sm:$0xff] %v2067_v0  ;;  %383 = vst [vmem:[#allocation2 + $0x4c8] sm:$0xff] %v2067_v0 }
  0x7c   : > { %384 = vst [vmem:[#allocation2 + $0x4d0] sm:$0xff] %v2067_v0  ;;  %236 = vst [vmem:[#allocation2 + $0x28] sm:$0xff] %v2067_v0 }
  0x7d   : > { %237 = vst [vmem:[#allocation2 + $0x50] sm:$0xff] %v2067_v0  ;;  %238 = vst [vmem:[#allocation2 + $0x78] sm:$0xff] %v2067_v0 }
  0x7e   : > { %239 = vst [vmem:[#allocation2 + $0xa0] sm:$0xff] %v2067_v0  ;;  %248 = vst [vmem:[#allocation2 + $0x208] sm:$0xff] %v2067_v0 }
  0x7f   : > { %249 = vst [vmem:[#allocation2 + $0x230] sm:$0xff] %v2067_v0  ;;  %250 = vst [vmem:[#allocation2 + $0x258] sm:$0xff] %v2067_v0 }
  0x80   : > { %251 = vst [vmem:[#allocation2 + $0x280] sm:$0xff] %v2067_v0  ;;  %252 = vst [vmem:[#allocation2 + $0x2a8] sm:$0xff] %v2067_v0 }
  0x81   : > { %253 = vst [vmem:[#allocation2 + $0x18] sm:$0xff] %v2067_v0  ;;  %254 = vst [vmem:[#allocation2 + $0x20] sm:$0xff] %v2067_v0 }
  0x82   : > { %255 = vst [vmem:[#allocation2 + $0x40] sm:$0xff] %v2067_v0  ;;  %256 = vst [vmem:[#allocation2 + $0x48] sm:$0xff] %v2067_v0 }
  0x83   : > { %257 = vst [vmem:[#allocation2 + $0x68] sm:$0xff] %v2067_v0  ;;  %258 = vst [vmem:[#allocation2 + $0x70] sm:$0xff] %v2067_v0 }
  0x84   : > { %259 = vst [vmem:[#allocation2 + $0x90] sm:$0xff] %v2067_v0  ;;  %260 = vst [vmem:[#allocation2 + $0x98] sm:$0xff] %v2067_v0 }
  0x85   : > { %261 = vst [vmem:[#allocation2 + $0xb8] sm:$0xff] %v2067_v0  ;;  %262 = vst [vmem:[#allocation2 + $0xc0] sm:$0xff] %v2067_v0 }
  0x86   : > { %279 = vst [vmem:[#allocation2 + $0x220] sm:$0xff] %v2067_v0  ;;  %280 = vst [vmem:[#allocation2 + $0x228] sm:$0xff] %v2067_v0 }
  0x87   : > { %281 = vst [vmem:[#allocation2 + $0x248] sm:$0xff] %v2067_v0  ;;  %282 = vst [vmem:[#allocation2 + $0x250] sm:$0xff] %v2067_v0 }
  0x88   : > { %283 = vst [vmem:[#allocation2 + $0x270] sm:$0xff] %v2067_v0  ;;  %284 = vst [vmem:[#allocation2 + $0x278] sm:$0xff] %v2067_v0 }
  0x89   : > { %285 = vst [vmem:[#allocation2 + $0x298] sm:$0xff] %v2067_v0  ;;  %286 = vst [vmem:[#allocation2 + $0x2a0] sm:$0xff] %v2067_v0 }
  0x8a   : > { %287 = vst [vmem:[#allocation2 + $0x2c0] sm:$0xff] %v2067_v0  ;;  %288 = vst [vmem:[#allocation2 + $0x2c8] sm:$0xff] %v2067_v0 }
  0x8b   : > { %341 = vst [vmem:[#allocation2 + $0x2d0] sm:$0xff] %v2067_v0  ;;  %342 = vst [vmem:[#allocation2 + $0x2f8] sm:$0xff] %v2067_v0 }
  0x8c   : > { %343 = vst [vmem:[#allocation2 + $0x320] sm:$0xff] %v2067_v0  ;;  %344 = vst [vmem:[#allocation2 + $0x348] sm:$0xff] %v2067_v0 }
  0x8d   : > { %345 = vst [vmem:[#allocation2 + $0x370] sm:$0xff] %v2067_v0  ;;  %354 = vst [vmem:[#allocation2 + $0x4d8] sm:$0xff] %v2067_v0 }
  0x8e   : > { %355 = vst [vmem:[#allocation2 + $0x500] sm:$0xff] %v2067_v0  ;;  %356 = vst [vmem:[#allocation2 + $0x528] sm:$0xff] %v2067_v0 }
  0x8f   : > { %357 = vst [vmem:[#allocation2 + $0x550] sm:$0xff] %v2067_v0  ;;  %358 = vst [vmem:[#allocation2 + $0x578] sm:$0xff] %v2067_v0 }
  0x90   : > { %359 = vst [vmem:[#allocation2 + $0x2e8] sm:$0xff] %v2067_v0  ;;  %360 = vst [vmem:[#allocation2 + $0x2f0] sm:$0xff] %v2067_v0 }
  0x91   : > { %361 = vst [vmem:[#allocation2 + $0x310] sm:$0xff] %v2067_v0  ;;  %362 = vst [vmem:[#allocation2 + $0x318] sm:$0xff] %v2067_v0 }
  0x92   : > { %363 = vst [vmem:[#allocation2 + $0x338] sm:$0xff] %v2067_v0  ;;  %364 = vst [vmem:[#allocation2 + $0x340] sm:$0xff] %v2067_v0 }
  0x93   : > { %365 = vst [vmem:[#allocation2 + $0x360] sm:$0xff] %v2067_v0  ;;  %366 = vst [vmem:[#allocation2 + $0x368] sm:$0xff] %v2067_v0 }
  0x94   : > { %367 = vst [vmem:[#allocation2 + $0x388] sm:$0xff] %v2067_v0  ;;  %368 = vst [vmem:[#allocation2 + $0x390] sm:$0xff] %v2067_v0 }
  0x95   : > { %385 = vst [vmem:[#allocation2 + $0x4f0] sm:$0xff] %v2067_v0  ;;  %386 = vst [vmem:[#allocation2 + $0x4f8] sm:$0xff] %v2067_v0 }
  0x96   : > { %387 = vst [vmem:[#allocation2 + $0x518] sm:$0xff] %v2067_v0  ;;  %388 = vst [vmem:[#allocation2 + $0x520] sm:$0xff] %v2067_v0 }
  0x97   : > { %389 = vst [vmem:[#allocation2 + $0x540] sm:$0xff] %v2067_v0  ;;  %390 = vst [vmem:[#allocation2 + $0x548] sm:$0xff] %v2067_v0 }
  0x98   : > { %391 = vst [vmem:[#allocation2 + $0x568] sm:$0xff] %v2067_v0  ;;  %392 = vst [vmem:[#allocation2 + $0x570] sm:$0xff] %v2067_v0 }
  0x99   : > { %393 = vst [vmem:[#allocation2 + $0x590] sm:$0xff] %v2067_v0  ;;  %394 = vst [vmem:[#allocation2 + $0x598] sm:$0xff] %v2067_v0 }
  0x9a   : > { %414 = vst [vmem:[#allocation2 + $0xd0] sm:$0xff] %v397_v1  ;;  %415 = vst [vmem:[#allocation2 + $0xd8] sm:$0xff] %v398_v2 }
  0x9b   : > { %416 = vst [vmem:[#allocation2 + $0xf8] sm:$0xff] %v399_v3  ;;  %417 = vst [vmem:[#allocation2 + $0x100] sm:$0xff] %v400_v4 }
  0x9c   : > { %418 = vst [vmem:[#allocation2 + $0x120] sm:$0xff] %v401_v5  ;;  %419 = vst [vmem:[#allocation2 + $0x128] sm:$0xff] %v402_v6 }
  0x9d   : > { %420 = vst [vmem:[#allocation2 + $0x148] sm:$0xff] %v403_v7  ;;  %421 = vst [vmem:[#allocation2 + $0x150] sm:$0xff] %v404_v8 }
  0x9e   : > { %422 = vst [vmem:[#allocation2 + $0x170] sm:$0xff] %v405_v9  ;;  %423 = vst [vmem:[#allocation2 + $0x178] sm:$0xff] %v406_v10 }
  0x9f   : > { %424 = vst [vmem:[#allocation2 + $0x198] sm:$0xff] %v407_v11  ;;  %425 = vst [vmem:[#allocation2 + $0x1a0] sm:$0xff] %v408_v12 }
  0xa0   : > { %426 = vst [vmem:[#allocation2 + $0x1c0] sm:$0xff] %v409_v13  ;;  %427 = vst [vmem:[#allocation2 + $0x1c8] sm:$0xff] %v410_v14 }
  0xa1   : > { %428 = vst [vmem:[#allocation2 + $0x1e8] sm:$0xff] %v411_v15  ;;  %429 = vst [vmem:[#allocation2 + $0x1f0] sm:$0xff] %v412_v16 }
  0xa2   : > { %448 = vst [vmem:[#allocation2 + $0x3a0] sm:$0xff] %v431_v17  ;;  %449 = vst [vmem:[#allocation2 + $0x3a8] sm:$0xff] %v432_v18 }
  0xa3   : > { %450 = vst [vmem:[#allocation2 + $0x3c8] sm:$0xff] %v433_v19  ;;  %451 = vst [vmem:[#allocation2 + $0x3d0] sm:$0xff] %v434_v20  ;;  %467 = sbr.rel (%p1702_p13) target bundleno = 180 (0xb4), region = 40 }
  0xa4   : > { %452 = vst [vmem:[#allocation2 + $0x3f0] sm:$0xff] %v435_v21  ;;  %453 = vst [vmem:[#allocation2 + $0x3f8] sm:$0xff] %v436_v22 }
  0xa5   : > { %454 = vst [vmem:[#allocation2 + $0x418] sm:$0xff] %v437_v23  ;;  %455 = vst [vmem:[#allocation2 + $0x420] sm:$0xff] %v438_v24 }
  0xa6   : > { %456 = vst [vmem:[#allocation2 + $0x440] sm:$0xff] %v439_v25  ;;  %457 = vst [vmem:[#allocation2 + $0x448] sm:$0xff] %v440_v26 }
  0xa7   : > { %458 = vst [vmem:[#allocation2 + $0x468] sm:$0xff] %v441_v27  ;;  %459 = vst [vmem:[#allocation2 + $0x470] sm:$0xff] %v442_v28 }
  0xa8   : > { %460 = vst [vmem:[#allocation2 + $0x490] sm:$0xff] %v443_v29  ;;  %461 = vst [vmem:[#allocation2 + $0x498] sm:$0xff] %v444_v30 }
  0xa9   : > { %462 = vst [vmem:[#allocation2 + $0x4b8] sm:$0xff] %v445_v31  ;;  %463 = vst [vmem:[#allocation2 + $0x4c0] sm:$0xff] %v446_v32 }
  0xaa   : > { %481 = vst [vmem:[#allocation2 + $0x8] sm:$0xff] %v471_v33  ;;  %482 = vst [vmem:[#allocation2 + $0x10] sm:$0xff] %v472_v34 }
  0xab   : > { %483 = vst [vmem:[#allocation2 + $0x30] sm:$0xff] %v473_v35  ;;  %484 = vst [vmem:[#allocation2 + $0x38] sm:$0xff] %v474_v36 }
  0xac   : > { %485 = vst [vmem:[#allocation2 + $0x58] sm:$0xff] %v475_v37  ;;  %486 = vst [vmem:[#allocation2 + $0x60] sm:$0xff] %v476_v38 }
  0xad   : > { %487 = vst [vmem:[#allocation2 + $0x80] sm:$0xff] %v477_v39  ;;  %488 = vst [vmem:[#allocation2 + $0x88] sm:$0xff] %v478_v40 }
  0xae   : > { %489 = vst [vmem:[#allocation2 + $0xa8] sm:$0xff] %v479_v41  ;;  %490 = vst [vmem:[#allocation2 + $0xb0] sm:$0xff] %v480_v42 }
  0xaf   : > { %502 = vst [vmem:[#allocation2 + $0x2d8] sm:$0xff] %v492_v43  ;;  %503 = vst [vmem:[#allocation2 + $0x2e0] sm:$0xff] %v493_v44 }
  0xb0   : > { %504 = vst [vmem:[#allocation2 + $0x300] sm:$0xff] %v494_v45  ;;  %505 = vst [vmem:[#allocation2 + $0x308] sm:$0xff] %v495_v46 }
  0xb1   : > { %506 = vst [vmem:[#allocation2 + $0x328] sm:$0xff] %v496_v47  ;;  %507 = vst [vmem:[#allocation2 + $0x330] sm:$0xff] %v497_v48 }
  0xb2   : > { %508 = vst [vmem:[#allocation2 + $0x350] sm:$0xff] %v498_v49  ;;  %509 = vst [vmem:[#allocation2 + $0x358] sm:$0xff] %v499_v50 }
  0xb3   : > { %510 = vst [vmem:[#allocation2 + $0x378] sm:$0xff] %v500_v51  ;;  %511 = vst [vmem:[#allocation2 + $0x380] sm:$0xff] %v501_v52 }
  0xb4 PF: > { %p1705_p1 = scmp.ge.s32.totalorder %s2049_s12, 1 }
  0xb5   : > { %v1708_v53 = vld [vmem:[%s2367_s24 + $0x80] sm:$0xff] (!%p1705_p1)  ;;  %v1709_v54 = vld [vmem:[%s2367_s24 + $0x88] sm:$0xff] (!%p1705_p1)  ;;  %v1710_v55 = vld [vmem:[%s2367_s24 + $0x90] sm:$0xff] (!%p1705_p1) }
  0xb6   : > { %515 = sbr.rel (%p1705_p1) target bundleno = 192 (0xc0), region = 44  ;;  %529 = vst [vmem:[#allocation2 + $0x210] sm:$0xff] (!%p1705_p1), %v1708_v53  ;;  %530 = vst [vmem:[#allocation2 + $0x218] sm:$0xff] (!%p1705_p1), %v1709_v54  ;;  %v1711_v56 = vld [vmem:[%s2367_s24 + $0x98] sm:$0xff] (!%p1705_p1)  ;;  %v1712_v57 = vld [vmem:[%s2367_s24 + $0xa0] sm:$0xff] (!%p1705_p1) }
  0xb7   : > { %531 = vst [vmem:[#allocation2 + $0x238] sm:$0xff] (!%p1705_p1), %v1710_v55  ;;  %v1713_v58 = vld [vmem:[%s2367_s24 + $0xa8] sm:$0xff] (!%p1705_p1)  ;;  %532 = vst [vmem:[#allocation2 + $0x240] sm:$0xff] (!%p1705_p1), %v1711_v56  ;;  %v1714_v59 = vld [vmem:[%s2367_s24 + $0xb0] sm:$0xff] (!%p1705_p1) }
  0xb8   : > { %533 = vst [vmem:[#allocation2 + $0x260] sm:$0xff] (!%p1705_p1), %v1712_v57  ;;  %534 = vst [vmem:[#allocation2 + $0x268] sm:$0xff] (!%p1705_p1), %v1713_v58  ;;  %v1715_v60 = vld [vmem:[%s2367_s24 + $0xb8] sm:$0xff] (!%p1705_p1)  ;;  %v1716_v61 = vld [vmem:[%s2367_s24 + $0xc0] sm:$0xff] (!%p1705_p1) }
  0xb9   : > { %535 = vst [vmem:[#allocation2 + $0x288] sm:$0xff] (!%p1705_p1), %v1714_v59  ;;  %536 = vst [vmem:[#allocation2 + $0x290] sm:$0xff] (!%p1705_p1), %v1715_v60  ;;  %v1717_v62 = vld [vmem:[%s2367_s24 + $0xc8] sm:$0xff] (!%p1705_p1)  ;;  %v1720_v63 = vld [vmem:[%s2387_s29 + $0x80] sm:$0xff] (!%p1705_p1) }
  0xba   : > { %537 = vst [vmem:[#allocation2 + $0x2b0] sm:$0xff] (!%p1705_p1), %v1716_v61  ;;  %v1721_v1 = vld [vmem:[%s2387_s29 + $0x88] sm:$0xff] (!%p1705_p1)  ;;  %538 = vst [vmem:[#allocation2 + $0x2b8] sm:$0xff] (!%p1705_p1), %v1717_v62  ;;  %v1722_v2 = vld [vmem:[%s2387_s29 + $0x90] sm:$0xff] (!%p1705_p1) }
  0xbb   : > { %550 = vst [vmem:[#allocation2 + $0x4e0] sm:$0xff] (!%p1705_p1), %v1720_v63  ;;  %551 = vst [vmem:[#allocation2 + $0x4e8] sm:$0xff] (!%p1705_p1), %v1721_v1  ;;  %v1723_v3 = vld [vmem:[%s2387_s29 + $0x98] sm:$0xff] (!%p1705_p1)  ;;  %v1724_v4 = vld [vmem:[%s2387_s29 + $0xa0] sm:$0xff] (!%p1705_p1) }
  0xbc   : > { %552 = vst [vmem:[#allocation2 + $0x508] sm:$0xff] (!%p1705_p1), %v1722_v2  ;;  %553 = vst [vmem:[#allocation2 + $0x510] sm:$0xff] (!%p1705_p1), %v1723_v3  ;;  %v1725_v5 = vld [vmem:[%s2387_s29 + $0xa8] sm:$0xff] (!%p1705_p1)  ;;  %v1726_v6 = vld [vmem:[%s2387_s29 + $0xb0] sm:$0xff] (!%p1705_p1) }
  0xbd   : > { %554 = vst [vmem:[#allocation2 + $0x530] sm:$0xff] %v1724_v4  ;;  %v1727_v7 = vld [vmem:[%s2387_s29 + $0xb8] sm:$0xff]  ;;  %555 = vst [vmem:[#allocation2 + $0x538] sm:$0xff] %v1725_v5  ;;  %v1728_v8 = vld [vmem:[%s2387_s29 + $0xc0] sm:$0xff] }
  0xbe   : > { %556 = vst [vmem:[#allocation2 + $0x558] sm:$0xff] %v1726_v6  ;;  %557 = vst [vmem:[#allocation2 + $0x560] sm:$0xff] %v1727_v7  ;;  %v1729_v9 = vld [vmem:[%s2387_s29 + $0xc8] sm:$0xff] }
  0xbf   : > { %558 = vst [vmem:[#allocation2 + $0x580] sm:$0xff] %v1728_v8  ;;  %559 = vst [vmem:[#allocation2 + $0x588] sm:$0xff] %v1729_v9 }
  0xc0 PF: > { %560 = vst [vmem:[#allocation4] sm:$0xff] %v2067_v0  ;;  %561 = vst [vmem:[#allocation4 + $0x8] sm:$0xff] %v2067_v0  ;;  %s2435_s3 = smov 0  }
  0xc1 LB: >> { %s568_s4 = smul.u32 40, %s2061_s3  ;;  %s567_s3 = sadd.s32 1, %s2061_s3   ;;  %s2061_s3 = sphi %s2435_s3, %s567_s3  }
  0xc2   : >> { %p564_p8 = scmp.ge.s32.totalorder %s567_s3, 8  }
  0xc3   : >> { %s2441_s5 = scalar_lea.vmem [#allocation2], %s568_s4  ;;  %s1814_s6 = sshll.u32 (%p564_p8), %s2049_s12, 4 }
  0xc4   : > { %s1527_s7 = sshll.u32 (%p564_p8), %s2407_s16, 4  ;;  %s3418_s15 = scalar_lea.hbm (%p564_p8), %s3470_s2, %s1814_s6  ;;  %s3420_s7 = int_to_ptr.vmem [resolvable:$true] %s1527_s7 }
  0xc5   : > { %s1513_s20 = scalar_lea.sflag (%p564_p8), [#allocation7], %s179_s27  ;;  %s1967_s23 = scalar_lea.vmem (%p564_p8), %s3420_s7, 16 }
  0xc6   : >> { %v570_v0 = vld [vmem:[%s2441_s5 + $0x3] sm:$0xff]  ;;  %v1734_v10 = vld [vmem:[%s2441_s5 + $0x2b] sm:$0xff]  ;;  %v1742_v11 = vld [vmem:[%s2441_s5 + $0x53] sm:$0xff]  ;;  %p1968_p10 = scmp.ne.s32.totalorder (%p564_p8), %s3420_s7, %s1967_s23  ;;  %p3878_p11 = scmp.ne.s32.totalorder (%p564_p8), %s3629_s19, 0 }
  0xc7   : >> { %v2446_v12 = vmul.f32 0.0010283801, %v570_v0  ;;  %v2448_v13 = vmul.f32 0.007598758, %v1734_v10  ;;  %v2450_v14 = vmul.f32 0.036000773, %v1742_v11 }
  0xc8   : >> { %v1750_v15 = vld [vmem:[%s2441_s5 + $0x7b] sm:$0xff]  ;;  %v1758_v16 = vld [vmem:[%s2441_s5 + $0xa3] sm:$0xff]  ;;  %v1766_v17 = vld [vmem:[%s2441_s5 + $0xcb] sm:$0xff]  ;;  %p1969_p2 = pnand (%p564_p8), %p1968_p10, %p3878_p11  ;;  %s2068_s12 = smov (%p564_p8), [#allocation10]  }
  0xc9   : >> { %3636 = vst [vmem:[#allocation14_spill] sm:$0xff] %v2446_v12  ;;  %3637 = vst [vmem:[#allocation15_spill] sm:$0xff] %v2448_v13  ;;  %v621_v18 = vadd.f32 %v2448_v13, %v2446_v12  ;;  %v2457_v19 = vmul.f32 0.10936069, %v1750_v15  ;;  %v2459_v20 = vmul.f32 0.21300554, %v1758_v16  ;;  %v588_v25 = vmul.f32 %v2446_v12, %v570_v0 }
  0xca   : >> { %3638 = vst [vmem:[#allocation16_spill] sm:$0xff] %v2450_v14  ;;  %v2461_v21 = vmul.f32 0.26601171, %v1766_v17  ;;  %v1774_v22 = vld [vmem:[%s2441_s5 + $0xf3] sm:$0xff]  ;;  %v1782_v23 = vld [vmem:[%s2441_s5 + $0x11b] sm:$0xff]  ;;  %v1790_v24 = vld [vmem:[%s2441_s5 + $0x143] sm:$0xff]  ;;  %v629_v26 = vmul.f32 %v1734_v10, %v2448_v13  ;;  %v682_v27 = vmul.f32 %v1742_v11, %v2450_v14  ;;  %p1970_p3 = pneg (%p564_p8), %p1969_p2 }
  0xcb   : >> { %3639 = vst [vmem:[#allocation17_spill] sm:$0xff] %v2457_v19  ;;  %3640 = vst [vmem:[#allocation18_spill] sm:$0xff] %v2459_v20  ;;  %v674_v28 = vadd.f32 %v2450_v14, %v621_v18  ;;  %v2470_v29 = vmul.f32 0.21300554, %v1774_v22  ;;  %v2472_v30 = vmul.f32 0.10936069, %v1782_v23  ;;  %v735_v36 = vmul.f32 %v1750_v15, %v2457_v19 }
  0xcc   : >> { %3641 = vst [vmem:[#allocation19_spill] sm:$0xff] %v2461_v21  ;;  %v2474_v31 = vmul.f32 0.036000773, %v1790_v24  ;;  %v1798_v32 = vld [vmem:[%s2441_s5 + $0x16b] sm:$0xff]  ;;  %v2478_v33 = vld [vmem:[%s2441_s5 + $0x193] sm:$0xff]  ;;  %v633_v35 = vadd.f32 %v629_v26, %v588_v25  ;;  %v788_v40 = vmul.f32 %v1758_v16, %v2459_v20  ;;  %v1743_v43 = vld [vmem:[%s2441_s5 + $0x5b] sm:$0xff]  ;;  %v841_v46 = vmul.f32 %v1766_v17, %v2461_v21 }
  0xcd   : >> { %3642 = vst [vmem:[#allocation20_spill] sm:$0xff] %v2470_v29  ;;  %3643 = vst [vmem:[#allocation21_spill] sm:$0xff] %v2472_v30  ;;  %v571_v34 = vld [vmem:[%s2441_s5 + $0xb] sm:$0xff]  ;;  %v727_v37 = vadd.f32 %v2457_v19, %v674_v28  ;;  %v2483_v38 = vmul.f32 0.007598758, %v1798_v32  ;;  %v1735_v42 = vld [vmem:[%s2441_s5 + $0x33] sm:$0xff]  ;;  %v894_v47 = vmul.f32 %v1774_v22, %v2470_v29  ;;  %v947_v51 = vmul.f32 %v1782_v23, %v2472_v30 }
  0xce   : >> { %3644 = vst [vmem:[#allocation22_spill] sm:$0xff] %v2474_v31  ;;  %v2485_v39 = vmul.f32 0.0010283801, %v571_v34  ;;  %v2489_v41 = vmul.f32 0.0010283801, %v2478_v33  ;;  %v1751_v44 = vld [vmem:[%s2441_s5 + $0x83] sm:$0xff]  ;;  %v686_v45 = vadd.f32 %v682_v27, %v633_v35  ;;  %v1000_v57 = vmul.f32 %v1790_v24, %v2474_v31 }
  0xcf   : >> { %3645 = vst [vmem:[#allocation23_spill] sm:$0xff] %v2483_v38  ;;  %v780_v48 = vadd.f32 %v2459_v20, %v727_v37  ;;  %v2497_v49 = vmul.f32 0.007598758, %v1735_v42  ;;  %v2499_v50 = vmul.f32 0.036000773, %v1743_v43  ;;  %v1759_v53 = vld [vmem:[%s2441_s5 + $0xab] sm:$0xff]  ;;  %v2513_v58 = vmul.f32 %v1798_v32, %v2483_v38 }
  0xd0   : >> { %3646 = vst [vmem:[#allocation24_spill] sm:$0xff] %v2485_v39  ;;  %3647 = vst [vmem:[#allocation25_spill] sm:$0xff] %v2489_v41  ;;  %v2502_v52 = vmul.f32 0.10936069, %v1751_v44  ;;  %v2506_v54 = vld [vmem:[%s2441_s5 + $0xd3] sm:$0xff]  ;;  %v2509_v55 = vld [vmem:[%s2441_s5 + $0xfb] sm:$0xff]  ;;  %v739_v56 = vadd.f32 %v735_v36, %v686_v45  ;;  %v589_v1 = vmul.f32 %v2485_v39, %v571_v34 }
  0xd1   : >> { %3648 = vst [vmem:[#allocation26_spill] sm:$0xff] %v2497_v49  ;;  %3649 = vst [vmem:[#allocation27_spill] sm:$0xff] %v2499_v50  ;;  %v833_v59 = vadd.f32 %v2461_v21, %v780_v48  ;;  %v622_v60 = vadd.f32 %v2497_v49, %v2485_v39  ;;  %v2518_v61 = vmul.f32 0.21300554, %v1759_v53  ;;  %v2521_v62 = vld [vmem:[%s2441_s5 + $0x123] sm:$0xff]  ;;  %v2524_v63 = vld [vmem:[%s2441_s5 + $0x14b] sm:$0xff]  ;;  %v630_v10 = vmul.f32 %v1735_v42, %v2497_v49 }
  0xd2   : >> { %3650 = vst [vmem:[#allocation28_spill] sm:$0xff] %v2502_v52  ;;  %v2528_v2 = vmul.f32 0.26601171, %v2506_v54  ;;  %v2531_v3 = vmul.f32 0.21300554, %v2509_v55  ;;  %v792_v5 = vadd.f32 %v788_v40, %v739_v56  ;;  %v2539_v8 = vld [vmem:[%s2441_s5 + $0x173] sm:$0xff]  ;;  %v683_v11 = vmul.f32 %v1743_v43, %v2499_v50 }
  0xd3   : >> { %3651 = vst [vmem:[#allocation29_spill] sm:$0xff] %v2518_v61  ;;  %v2534_v4 = vmul.f32 0.10936069, %v2521_v62  ;;  %v886_v6 = vadd.f32 %v2470_v29, %v833_v59  ;;  %v675_v7 = vadd.f32 %v2499_v50, %v622_v60  ;;  %v2542_v9 = vld [vmem:[%s2441_s5 + $0x19b] sm:$0xff]  ;;  %v2545_v0 = vld [vmem:[%s2441_s5 + $0x13] sm:$0xff]  ;;  %v2564_v25 = vld [vmem:[%s2441_s5 + $0x63] sm:$0xff]  ;;  %v634_v27 = vadd.f32 %v630_v10, %v589_v1 }
  0xd4   : >> { %3652 = vst [vmem:[#allocation30_spill] sm:$0xff] %v2528_v2  ;;  %3653 = vst [vmem:[#allocation31_spill] sm:$0xff] %v2531_v3  ;;  %v2550_v15 = vmul.f32 0.036000773, %v2524_v63  ;;  %v2553_v16 = vmul.f32 0.007598758, %v2539_v8  ;;  %v845_v18 = vadd.f32 %v841_v46, %v792_v5  ;;  %v736_v28 = vmul.f32 %v1751_v44, %v2502_v52 }
  0xd5   : >> { %3654 = vst [vmem:[#allocation32_spill] sm:$0xff] %v2534_v4  ;;  %v2556_v17 = vmul.f32 0.0010283801, %v2545_v0  ;;  %v939_v22 = vadd.f32 %v2472_v30, %v886_v6  ;;  %v728_v23 = vadd.f32 %v2502_v52, %v675_v7  ;;  %v2561_v24 = vld [vmem:[%s2441_s5 + $0x3b] sm:$0xff]  ;;  %v2567_v26 = vld [vmem:[%s2441_s5 + $0x8b] sm:$0xff]  ;;  %v2585_v43 = vld [vmem:[%s2441_s5 + $0xb3] sm:$0xff]  ;;  %v687_v46 = vadd.f32 %v683_v11, %v634_v27 }
  0xd6   : >> { %3655 = vst [vmem:[#allocation33_spill] sm:$0xff] %v2550_v15  ;;  %3656 = vst [vmem:[#allocation34_spill] sm:$0xff] %v2553_v16  ;;  %v2571_v32 = vmul.f32 0.0010283801, %v2542_v9  ;;  %v2574_v34 = vmul.f32 0.007598758, %v2561_v24  ;;  %v898_v36 = vadd.f32 %v894_v47, %v845_v18  ;;  %v789_v59 = vmul.f32 %v1759_v53, %v2518_v61 }
  0xd7   : >> { %3657 = vst [vmem:[#allocation35_spill] sm:$0xff] %v2556_v17  ;;  %v2577_v35 = vmul.f32 0.036000773, %v2564_v25  ;;  %v992_v37 = vadd.f32 %v2474_v31, %v939_v22  ;;  %v781_v40 = vadd.f32 %v2518_v61, %v728_v23  ;;  %v2582_v42 = vmul.f32 0.10936069, %v2567_v26  ;;  %v2588_v44 = vld [vmem:[%s2441_s5 + $0xdb] sm:$0xff] }
  0xd8   : >> { %3658 = vst [vmem:[#allocation36_spill] sm:$0xff] %v2571_v32  ;;  %3659 = vst [vmem:[#allocation37_spill] sm:$0xff] %v2574_v34  ;;  %v2591_v45 = vld [vmem:[%s2441_s5 + $0x103] sm:$0xff]  ;;  %v623_v48 = vadd.f32 %v2574_v34, %v2556_v17  ;;  %v2596_v47 = vmul.f32 0.21300554, %v2585_v43  ;;  %v2605_v5 = vld [vmem:[%s2441_s5 + $0x12b] sm:$0xff]  ;;  %v951_v7 = vadd.f32 %v947_v51, %v898_v36  ;;  %v740_v10 = vadd.f32 %v736_v28, %v687_v46 }
  0xd9   : >> { %3660 = vst [vmem:[#allocation38_spill] sm:$0xff] %v2577_v35  ;;  %3661 = vst [vmem:[#allocation39_spill] sm:$0xff] %v2582_v42  ;;  %v2599_v56 = vmul.f32 0.26601171, %v2588_v44  ;;  %v1045_v60 = vadd.f32 %v2483_v38, %v992_v37  ;;  %v834_v1 = vadd.f32 %v2528_v2, %v781_v40  ;;  %v2608_v6 = vld [vmem:[%s2441_s5 + $0x153] sm:$0xff]  ;;  %v2618_v53 = vld [vmem:[%s2441_s5 + $0x17b] sm:$0xff]  ;;  %v1106_v23 = vmul.f32 %v2478_v33, %v2489_v41 }
  0xda   : >> { %3662 = vst [vmem:[#allocation40_spill] sm:$0xff] %v2596_v47  ;;  %v676_v11 = vadd.f32 %v2577_v35, %v623_v48  ;;  %v2612_v18 = vmul.f32 0.21300554, %v2591_v45  ;;  %v2615_v22 = vmul.f32 0.10936069, %v2605_v5  ;;  %v2628_v36 = vld [vmem:[%s2441_s5 + $0x1b] sm:$0xff]  ;;  %v1004_v40 = vadd.f32 %v1000_v57, %v951_v7 }
  0xdb   : >> { %3663 = vst [vmem:[#allocation41_spill] sm:$0xff] %v2599_v56  ;;  %v1098_v27 = vadd.f32 %v2489_v41, %v1045_v60  ;;  %v887_v51 = vadd.f32 %v2531_v3, %v834_v1  ;;  %v2625_v28 = vmul.f32 0.036000773, %v2608_v6  ;;  %v2631_v37 = vld [vmem:[%s2441_s5 + $0x43] sm:$0xff]  ;;  %v2638_v33 = vmul.f32 0.0010283801, %v2628_v36 }
  0xdc   : >> { %3664 = vst [vmem:[#allocation42_spill] sm:$0xff] %v2612_v18  ;;  %3665 = vst [vmem:[#allocation43_spill] sm:$0xff] %v2615_v22  ;;  %v729_v46 = vadd.f32 %v2582_v42, %v676_v11  ;;  %v2635_v48 = vld [vmem:[%s2441_s5 + $0x1a3] sm:$0xff]  ;;  %v2641_v60 = vmul.f32 0.007598758, %v2631_v37  ;;  %v793_v1 = vadd.f32 %v789_v59, %v740_v10  ;;  %v2648_v57 = vld [vmem:[%s2441_s5 + $0x6b] sm:$0xff]  ;;  %v1057_v38 = vadd.f32 %v2513_v58, %v1004_v40 }
  0xdd   : >> { %3666 = vst [vmem:[#allocation44_spill] sm:$0xff] %v2625_v28  ;;  %3667 = vst [vmem:[#allocation45_spill] sm:$0xff] %v2638_v33  ;;  %v940_v41 = vadd.f32 %v2534_v4, %v887_v51  ;;  %v2645_v61 = vmul.f32 0.007598758, %v2618_v53  ;;  %v2651_v7 = vld [vmem:[%s2441_s5 + $0x93] sm:$0xff]  ;;  %v2654_v11 = vld [vmem:[%s2441_s5 + $0xbb] sm:$0xff]  ;;  %v842_v59 = vmul.f32 %v2506_v54, %v2528_v2  ;;  %v895_v14 = vmul.f32 %v2509_v55, %v2531_v3 }
  0xde   : >> { %3668 = vst [vmem:[#allocation46_spill] sm:$0xff] %v2641_v60  ;;  %1130 = vst [vmem:[#allocation3] sm:$0xff] %v1098_v27  ;;  %v782_v10 = vadd.f32 %v2596_v47, %v729_v46  ;;  %v624_v51 = vadd.f32 %v2641_v60, %v2638_v33  ;;  %v2663_v31 = vmul.f32 0.036000773, %v2648_v57  ;;  %v2666_v30 = vmul.f32 0.10936069, %v2651_v7 }
  0xdf   : >> { %3669 = vst [vmem:[#allocation47_spill] sm:$0xff] %v2645_v61  ;;  %v2669_v52 = vld [vmem:[%s2441_s5 + $0xe3] sm:$0xff]  ;;  %v2672_v29 = vld [vmem:[%s2441_s5 + $0x10b] sm:$0xff]  ;;  %v2674_v58 = vmul.f32 0.0010283801, %v1098_v27  ;;  %v993_v40 = vadd.f32 %v2550_v15, %v940_v41  ;;  %v2686_v49 = vld [vmem:[%s2441_s5 + $0x133] sm:$0xff]  ;;  %v2694_v41 = vadd.f32 %v1106_v23, %v1057_v38 }
  0xe0   : >> { %3670 = vst [vmem:[#allocation48_spill] sm:$0xff] %v2663_v31  ;;  %3671 = vst [vmem:[#allocation49_spill] sm:$0xff] %v2666_v30  ;;  %v2678_v54 = vmul.f32 0.0010283801, %v2635_v48  ;;  %v2681_v46 = vmul.f32 0.21300554, %v2654_v11  ;;  %v835_v2 = vadd.f32 %v2599_v56, %v782_v10  ;;  %v677_v50 = vadd.f32 %v2663_v31, %v624_v51 }
  0xe1   : >> { %3672 = vst [vmem:[#allocation50_spill] sm:$0xff] %v2669_v52  ;;  %3673 = vst [vmem:[#allocation51_spill] sm:$0xff] %v2672_v29  ;;  %v2689_v39 = vld [vmem:[%s2441_s5 + $0x15b] sm:$0xff]  ;;  %v2692_v27 = vld [vmem:[%s2441_s5 + $0x183] sm:$0xff]  ;;  %v1046_v21 = vadd.f32 %v2553_v16, %v993_v40  ;;  %v2698_v20 = vmul.f32 0.26601171, %v2669_v52 }
  0xe2   : >> { %3674 = vst [vmem:[#allocation52_spill] sm:$0xff] %v2674_v58  ;;  %3675 = vst [vmem:[#allocation53_spill] sm:$0xff] %v2678_v54  ;;  %v846_v58 = vadd.f32 %v842_v59, %v793_v1  ;;  %v2701_v19 = vmul.f32 0.21300554, %v2672_v29  ;;  %v2704_v10 = vmul.f32 0.10936069, %v2686_v49  ;;  %v888_v51 = vadd.f32 %v2612_v18, %v835_v2 }
  0xe3   : >> { %3676 = vst [vmem:[#allocation54_spill] sm:$0xff] %v2681_v46  ;;  %3677 = vst [vmem:[#allocation55_spill] sm:$0xff] %v2686_v49  ;;  %v730_v38 = vadd.f32 %v2666_v30, %v677_v50  ;;  %v2709_v23 = vmul.f32 0.036000773, %v2689_v39  ;;  %v2712_v1 = vld [vmem:[%s2441_s5 + $0x1ab] sm:$0xff]  ;;  %v2715_v59 = vld [vmem:[%s2441_s5 + $0x2d3] sm:$0xff]  ;;  %v2724_v13 = vadd.f32 %v2571_v32, %v1046_v21  ;;  %v948_v29 = vmul.f32 %v2521_v62, %v2534_v4 }
  0xe4   : >> { %3678 = vst [vmem:[#allocation56_spill] sm:$0xff] %v2689_v39  ;;  %3679 = vst [vmem:[#allocation57_spill] sm:$0xff] %v2692_v27  ;;  %v2718_v40 = vld [vmem:[%s2441_s5 + $0x2fb] sm:$0xff]  ;;  %v2727_v2 = vmul.f32 0.007598758, %v2692_v27  ;;  %v941_v39 = vadd.f32 %v2615_v22, %v888_v51  ;;  %v2738_v55 = vld [vmem:[%s2441_s5 + $0x323] sm:$0xff]  ;;  %v899_v27 = vadd.f32 %v895_v14, %v846_v58 }
  0xe5   : >> { %3680 = vst [vmem:[#allocation58_spill] sm:$0xff] %v2698_v20  ;;  %3681 = vst [vmem:[#allocation59_spill] sm:$0xff] %v2701_v19  ;;  %v2730_v50 = vmul.f32 0.0010283801, %v2715_v59  ;;  %v2733_v12 = vmul.f32 0.007598758, %v2718_v40  ;;  %v783_v49 = vadd.f32 %v2681_v46, %v730_v38 }
  0xe6   : >> { %3682 = vst [vmem:[#allocation60_spill] sm:$0xff] %v2704_v10  ;;  %3683 = vst [vmem:[#allocation61_spill] sm:$0xff] %v2709_v23  ;;  %v2741_v21 = vld [vmem:[%s2441_s5 + $0x34b] sm:$0xff]  ;;  %v2744_v3 = vld [vmem:[%s2441_s5 + $0x373] sm:$0xff]  ;;  %v2755_v38 = vmul.f32 0.036000773, %v2738_v55  ;;  %v994_v52 = vadd.f32 %v2625_v28, %v941_v39  ;;  %v952_v4 = vadd.f32 %v948_v29, %v899_v27 }
  0xe7   : >> { %3684 = vst [vmem:[#allocation62_spill] sm:$0xff] %v2712_v1  ;;  %3685 = vst [vmem:[#allocation63_spill] sm:$0xff] %v2715_v59  ;;  %v625_v51 = vadd.f32 %v2733_v12, %v2730_v50  ;;  %v2758_v59 = vmul.f32 0.10936069, %v2741_v21  ;;  %v836_v14 = vadd.f32 %v2698_v20, %v783_v49  ;;  %v2763_v62 = vld [vmem:[%s2441_s5 + $0x39b] sm:$0xff]  ;;  %v2766_v58 = vld [vmem:[%s2441_s5 + $0x3c3] sm:$0xff] }
  0xe8   : >> { %3686 = vst [vmem:[#allocation64_spill] sm:$0xff] %v2718_v40  ;;  %1140 = vst [vmem:[#allocation3 + $0x40] sm:$0xff] %v2694_v41  ;;  %v2750_v40 = vmul.f32 0.0010283801, %v2712_v1  ;;  %v1001_v1 = vmul.f32 %v2524_v63, %v2550_v15  ;;  %v2775_v39 = vmul.f32 0.21300554, %v2744_v3  ;;  %v1054_v63 = vmul.f32 %v2539_v8, %v2553_v16 }
  0xe9   : >> { %3687 = vst [vmem:[#allocation65_spill] sm:$0xff] %v2724_v13  ;;  %3688 = vst [vmem:[#allocation66_spill] sm:$0xff] %v2727_v2  ;;  %v2778_v49 = vmul.f32 0.26601171, %v2763_v62  ;;  %v889_v29 = vadd.f32 %v2701_v19, %v836_v14  ;;  %v2806_v8 = vld [vmem:[%s2441_s5 + $0x303] sm:$0xff]  ;;  %v1107_v16 = vmul.f32 %v2542_v9, %v2571_v32  ;;  %v631_v32 = vmul.f32 %v2561_v24, %v2574_v34  ;;  %s1971_s24 = sshll.u32 (%p564_p8), %s2068_s12, 4  ;;  %s1972_s24 = int_to_ptr.vmem [resolvable:$false] %s1971_s24 }
  0xea   : >> { %3689 = vst [vmem:[#allocation67_spill] sm:$0xff] %v2733_v12  ;;  %3690 = vst [vmem:[#allocation68_spill] sm:$0xff] %v2738_v55  ;;  %v2781_v55 = vmul.f32 0.21300554, %v2766_v58  ;;  %v1047_v12 = vadd.f32 %v2645_v61, %v994_v52  ;;  %v1005_v27 = vadd.f32 %v1001_v1, %v952_v4  ;;  %v2803_v1 = vld [vmem:[%s2441_s5 + $0x2db] sm:$0xff]  ;;  %s1973_s29 = scalar_lea.vmem (%p564_p8), %s1972_s24, 32  ;;  %p1974_p5 = scmp.lt.s32.totalorder (%p564_p8), %s3420_s7, %s1972_s24 }
  0xeb   : >> { %3691 = vst [vmem:[#allocation69_spill] sm:$0xff] %v2741_v21  ;;  %3692 = vst [vmem:[#allocation70_spill] sm:$0xff] %v2744_v3  ;;  %v678_v21 = vadd.f32 %v2755_v38, %v625_v51  ;;  %v2792_v3 = vld [vmem:[%s2441_s5 + $0x413] sm:$0xff]  ;;  %v942_v4 = vadd.f32 %v2704_v10, %v889_v29  ;;  %p1975_p6 = scmp.lt.s32.totalorder (%p564_p8), %s1973_s29, %s1967_s23 }
  0xec   : >> { %1131 = vst [vmem:[#allocation3 + $0x8] sm:$0xff] %v2724_v13  ;;  %3693 = vst [vmem:[#allocation71_spill] sm:$0xff] %v2750_v40  ;;  %v2769_v13 = vld [vmem:[%s2441_s5 + $0x3eb] sm:$0xff]  ;;  %v1100_v52 = vadd.f32 %v2678_v54, %v1047_v12  ;;  %v1058_v14 = vadd.f32 %v1054_v63, %v1005_v27  ;;  %v2818_v12 = vmul.f32 0.007598758, %v2806_v8  ;;  %v2825_v27 = vld [vmem:[%s2441_s5 + $0x353] sm:$0xff] }
  0xed   : >> { %3694 = vst [vmem:[#allocation72_spill] sm:$0xff] %v2758_v59  ;;  %3695 = vst [vmem:[#allocation73_spill] sm:$0xff] %v2763_v62  ;;  %v731_v51 = vadd.f32 %v2758_v59, %v678_v21  ;;  %v2789_v15 = vmul.f32 0.10936069, %v2769_v13  ;;  %v2795_v62 = vld [vmem:[%s2441_s5 + $0x43b] sm:$0xff]  ;;  %v2809_v21 = vld [vmem:[%s2441_s5 + $0x32b] sm:$0xff]  ;;  %v995_v10 = vadd.f32 %v2709_v23, %v942_v4  ;;  %p1976_p7 = por (%p564_p8), %p1975_p6, %p1974_p5 }
  0xee   : >> { %3696 = vst [vmem:[#allocation74_spill] sm:$0xff] %v2766_v58  ;;  %3697 = vst [vmem:[#allocation75_spill] sm:$0xff] %v2769_v13  ;;  %v2798_v58 = vld [vmem:[%s2441_s5 + $0x463] sm:$0xff]  ;;  %v2815_v59 = vmul.f32 0.0010283801, %v2803_v1  ;;  %v2828_v63 = vld [vmem:[%s2441_s5 + $0x37b] sm:$0xff]  ;;  %v2830_v9 = vadd.f32 %v1107_v16, %v1058_v14 }
  0xef   : >> { %3698 = vst [vmem:[#allocation76_spill] sm:$0xff] %v2778_v49  ;;  %3699 = vst [vmem:[#allocation77_spill] sm:$0xff] %v2789_v15  ;;  %v784_v13 = vadd.f32 %v2775_v39, %v731_v51  ;;  %v2821_v29 = vmul.f32 0.036000773, %v2809_v21  ;;  %v590_v51 = vmul.f32 %v2556_v17, %v2545_v0  ;;  %v2843_v4 = vmul.f32 0.10936069, %v2825_v27  ;;  %p1977_p9 = pnand (%p564_p8), %p1976_p7, %p1970_p3 }
  0xf0   : >> { %3700 = vst [vmem:[#allocation78_spill] sm:$0xff] %v2792_v3  ;;  %3701 = vst [vmem:[#allocation79_spill] sm:$0xff] %v2795_v62  ;;  %v2846_v16 = vld [vmem:[%s2441_s5 + $0x3a3] sm:$0xff]  ;;  %v2849_v14 = vld [vmem:[%s2441_s5 + $0x3cb] sm:$0xff]  ;;  %v1048_v0 = vadd.f32 %v2727_v2, %v995_v10  ;;  %v2853_v24 = vmul.f32 0.007598758, %v2795_v62  ;;  %v684_v62 = vmul.f32 %v2564_v25, %v2577_v35  ;;  %v737_v35 = vmul.f32 %v2567_v26, %v2582_v42 }
  0xf1   : >> { %3702 = vst [vmem:[#allocation80_spill] sm:$0xff] %v2798_v58  ;;  %3703 = vst [vmem:[#allocation81_spill] sm:$0xff] %v2806_v8  ;;  %v837_v8 = vadd.f32 %v2778_v49, %v784_v13  ;;  %v2856_v13 = vmul.f32 0.0010283801, %v2798_v58  ;;  %v2859_v34 = vmul.f32 0.21300554, %v2828_v63  ;;  %v635_v10 = vadd.f32 %v631_v32, %v590_v51 }
  0xf2   : >> { %3704 = vst [vmem:[#allocation82_spill] sm:$0xff] %v2809_v21  ;;  %1132 = vst [vmem:[#allocation3 + $0x10] sm:$0xff] %v1100_v52  ;;  %v2838_v21 = vmul.f32 0.036000773, %v2792_v3  ;;  %v626_v52 = vadd.f32 %v2818_v12, %v2815_v59  ;;  %v1101_v49 = vadd.f32 %v2750_v40, %v1048_v0  ;;  %v2871_v58 = vmul.f32 0.26601171, %v2846_v16 }
  0xf3   : >> { %3705 = vst [vmem:[#allocation83_spill] sm:$0xff] %v2825_v27  ;;  %3706 = vst [vmem:[#allocation84_spill] sm:$0xff] %v2828_v63  ;;  %v890_v17 = vadd.f32 %v2781_v55, %v837_v8  ;;  %v2865_v27 = vld [vmem:[%s2441_s5 + $0x3f3] sm:$0xff]  ;;  %v2874_v63 = vmul.f32 0.21300554, %v2849_v14  ;;  %v2882_v51 = vld [vmem:[%s2441_s5 + $0x443] sm:$0xff]  ;;  %v688_v0 = vadd.f32 %v684_v62, %v635_v10 }
  0xf4   : >> { %3707 = vst [vmem:[#allocation85_spill] sm:$0xff] %v2830_v9  ;;  %3708 = vst [vmem:[#allocation86_spill] sm:$0xff] %v2846_v16  ;;  %v679_v3 = vadd.f32 %v2821_v29, %v626_v52  ;;  %v2885_v25 = vld [vmem:[%s2441_s5 + $0x2e3] sm:$0xff]  ;;  %v2888_v52 = vld [vmem:[%s2441_s5 + $0x30b] sm:$0xff] }
  0xf5   : >> { %3709 = vst [vmem:[#allocation87_spill] sm:$0xff] %v2849_v14  ;;  %1141 = vst [vmem:[#allocation3 + $0x48] sm:$0xff] %v2830_v9  ;;  %v2877_v9 = vld [vmem:[%s2441_s5 + $0x41b] sm:$0xff]  ;;  %v943_v8 = vadd.f32 %v2789_v15, %v890_v17  ;;  %v2893_v14 = vmul.f32 0.10936069, %v2865_v27  ;;  %v790_v17 = vmul.f32 %v2585_v43, %v2596_v47  ;;  %v2906_v10 = vld [vmem:[%s2441_s5 + $0x333] sm:$0xff]  ;;  %v741_v42 = vadd.f32 %v737_v35, %v688_v0 }
  0xf6   : >> { %3710 = vst [vmem:[#allocation88_spill] sm:$0xff] %v2865_v27  ;;  %3711 = vst [vmem:[#allocation89_spill] sm:$0xff] %v2871_v58  ;;  %v732_v32 = vadd.f32 %v2843_v4, %v679_v3  ;;  %v2896_v16 = vmul.f32 0.0010283801, %v2885_v25  ;;  %v2899_v3 = vmul.f32 0.007598758, %v2888_v52  ;;  %v843_v27 = vmul.f32 %v2588_v44, %v2599_v56 }
  0xf7   : >> { %3712 = vst [vmem:[#allocation90_spill] sm:$0xff] %v2874_v63  ;;  %3713 = vst [vmem:[#allocation91_spill] sm:$0xff] %v2877_v9  ;;  %v996_v15 = vadd.f32 %v2838_v21, %v943_v8  ;;  %v2909_v26 = vld [vmem:[%s2441_s5 + $0x35b] sm:$0xff]  ;;  %v2922_v8 = vmul.f32 0.036000773, %v2906_v10  ;;  %v2930_v44 = vld [vmem:[%s2441_s5 + $0x3ab] sm:$0xff]  ;;  %v794_v0 = vadd.f32 %v790_v17, %v741_v42  ;;  %v896_v56 = vmul.f32 %v2591_v45, %v2612_v18 }
  0xf8   : >> { %3714 = vst [vmem:[#allocation92_spill] sm:$0xff] %v2882_v51  ;;  %3715 = vst [vmem:[#allocation93_spill] sm:$0xff] %v2885_v25  ;;  %v785_v62 = vadd.f32 %v2859_v34, %v732_v32  ;;  %v627_v43 = vadd.f32 %v2899_v3, %v2896_v16  ;;  %v2925_v32 = vmul.f32 0.10936069, %v2909_v26  ;;  %v949_v45 = vmul.f32 %v2605_v5, %v2615_v22  ;;  %v2951_v18 = vld [vmem:[%s2441_s5 + $0x46b] sm:$0xff] }
  0xf9   : >> { %3716 = vst [vmem:[#allocation94_spill] sm:$0xff] %v2888_v52  ;;  %1133 = vst [vmem:[#allocation3 + $0x18] sm:$0xff] %v1101_v49  ;;  %v2912_v49 = vld [vmem:[%s2441_s5 + $0x383] sm:$0xff]  ;;  %v2917_v52 = vmul.f32 0.036000773, %v2877_v9  ;;  %v1049_v47 = vadd.f32 %v2853_v24, %v996_v15  ;;  %v2942_v15 = vld [vmem:[%s2441_s5 + $0x3d3] sm:$0xff]  ;;  %v847_v17 = vadd.f32 %v843_v27, %v794_v0  ;;  %v1002_v22 = vmul.f32 %v2608_v6, %v2625_v28 }
  0xfa   : >> { %3717 = vst [vmem:[#allocation95_spill] sm:$0xff] %v2893_v14  ;;  %3718 = vst [vmem:[#allocation96_spill] sm:$0xff] %v2906_v10  ;;  %v838_v35 = vadd.f32 %v2871_v58, %v785_v62  ;;  %v2935_v9 = vmul.f32 0.007598758, %v2882_v51  ;;  %v680_v10 = vadd.f32 %v2922_v8, %v627_v43  ;;  %v2955_v51 = vmul.f32 0.26601171, %v2930_v44 }
  0xfb   : >> { %3719 = vst [vmem:[#allocation97_spill] sm:$0xff] %v2909_v26  ;;  %3720 = vst [vmem:[#allocation98_spill] sm:$0xff] %v2912_v49  ;;  %v2939_v26 = vmul.f32 0.21300554, %v2912_v49  ;;  %v2945_v62 = vadd.f32 %v2856_v13, %v1049_v47  ;;  %v2958_v49 = vld [vmem:[%s2441_s5 + $0x3fb] sm:$0xff]  ;;  %v2961_v58 = vld [vmem:[%s2441_s5 + $0x423] sm:$0xff]  ;;  %v900_v0 = vadd.f32 %v896_v56, %v847_v17 }
  0xfc   : >> { %3721 = vst [vmem:[#allocation99_spill] sm:$0xff] %v2925_v32  ;;  %3722 = vst [vmem:[#allocation100_spill] sm:$0xff] %v2930_v44  ;;  %v891_v42 = vadd.f32 %v2874_v63, %v838_v35  ;;  %v733_v43 = vadd.f32 %v2925_v32, %v680_v10  ;;  %v2966_v27 = vmul.f32 0.21300554, %v2942_v15  ;;  %v2969_v5 = vld [vmem:[%s2441_s5 + $0x2eb] sm:$0xff]  ;;  %v2972_v10 = vld [vmem:[%s2441_s5 + $0x313] sm:$0xff] }
  0xfd   : >> { %3723 = vst [vmem:[#allocation101_spill] sm:$0xff] %v2939_v26  ;;  %3724 = vst [vmem:[#allocation102_spill] sm:$0xff] %v2942_v15  ;;  %v2975_v35 = vld [vmem:[%s2441_s5 + $0x33b] sm:$0xff]  ;;  %v2981_v63 = vmul.f32 0.0010283801, %v2969_v5  ;;  %v2997_v6 = vld [vmem:[%s2441_s5 + $0x363] sm:$0xff] }
  0xfe   : >> { %3725 = vst [vmem:[#allocation103_spill] sm:$0xff] %v2951_v18  ;;  %3726 = vst [vmem:[#allocation104_spill] sm:$0xff] %v2955_v51  ;;  %v944_v47 = vadd.f32 %v2893_v14, %v891_v42  ;;  %v786_v44 = vadd.f32 %v2939_v26, %v733_v43  ;;  %v2984_v42 = vmul.f32 0.007598758, %v2972_v10  ;;  %v2987_v15 = vmul.f32 0.036000773, %v2975_v35 }
  0xff   : >> { %3727 = vst [vmem:[#allocation105_spill] sm:$0xff] %v2958_v49  ;;  %3728 = vst [vmem:[#allocation106_spill] sm:$0xff] %v2961_v58  ;;  %v2991_v32 = vmul.f32 0.0010283801, %v2951_v18  ;;  %v2994_v56 = vmul.f32 0.10936069, %v2958_v49  ;;  %v953_v43 = vadd.f32 %v949_v45, %v900_v0  ;;  %v1055_v49 = vmul.f32 %v2618_v53, %v2645_v61 }
 0x100   : >> { %1135 = vst [vmem:[#allocation3 + $0x20] sm:$0xff] %v2945_v62  ;;  %3729 = vst [vmem:[#allocation107_spill] sm:$0xff] %v2969_v5  ;;  %v997_v14 = vadd.f32 %v2917_v52, %v944_v47  ;;  %v3000_v17 = vld [vmem:[%s2441_s5 + $0x38b] sm:$0xff]  ;;  %v839_v28 = vadd.f32 %v2955_v51, %v786_v44  ;;  %v628_v47 = vadd.f32 %v2984_v42, %v2981_v63  ;;  %v3009_v18 = vmul.f32 0.10936069, %v2997_v6  ;;  %v1158_v0 = vld [vmem:[#allocation3 + $0x1] sm:$0xff] }
 0x101   : >> { %3730 = vst [vmem:[#allocation108_spill] sm:$0xff] %v2972_v10  ;;  %3731 = vst [vmem:[#allocation109_spill] sm:$0xff] %v2975_v35  ;;  %v3004_v10 = vld [vmem:[%s2441_s5 + $0x44b] sm:$0xff]  ;;  %v3012_v35 = vld [vmem:[%s2441_s5 + $0x3b3] sm:$0xff]  ;;  %v3018_v26 = vmul.f32 0.036000773, %v2961_v58  ;;  %v1108_v45 = vmul.f32 %v2635_v48, %v2678_v54  ;;  %v591_v61 = vmul.f32 %v2638_v33, %v2628_v36  ;;  %v632_v54 = vmul.f32 %v2631_v37, %v2641_v60 }
 0x102   : >> { %3732 = vst [vmem:[#allocation110_spill] sm:$0xff] %v2984_v42  ;;  %3733 = vst [vmem:[#allocation111_spill] sm:$0xff] %v2997_v6  ;;  %v1050_v5 = vadd.f32 %v2935_v9, %v997_v14  ;;  %v3021_v44 = vmul.f32 0.21300554, %v3000_v17  ;;  %v892_v6 = vadd.f32 %v2966_v27, %v839_v28  ;;  %v3027_v51 = vld [vmem:[%s2441_s5 + $0x473] sm:$0xff]  ;;  %v681_v42 = vadd.f32 %v2987_v15, %v628_v47  ;;  %v3031_v53 = vld [vmem:[%s2441_s5 + $0x3db] sm:$0xff] }
 0x103   : >> { %3734 = vst [vmem:[#allocation112_spill] sm:$0xff] %v3000_v17  ;;  %3735 = vst [vmem:[#allocation113_spill] sm:$0xff] %v3004_v10  ;;  %v1006_v14 = vadd.f32 %v1002_v22, %v953_v43  ;;  %v3039_v17 = vmul.f32 0.007598758, %v3004_v10  ;;  %v3042_v48 = vmul.f32 0.26601171, %v3012_v35 }
 0x104   : >> { %3736 = vst [vmem:[#allocation114_spill] sm:$0xff] %v3018_v26  ;;  %3737 = vst [vmem:[#allocation115_spill] sm:$0xff] %v3027_v51  ;;  %v3036_v58 = vadd.f32 %v2991_v32, %v1050_v5  ;;  %v1276_v28 = vmul.f32 0.0010283801, %v2694_v41  ;;  %v945_v47 = vadd.f32 %v2994_v56, %v892_v6  ;;  %v734_v22 = vadd.f32 %v3009_v18, %v681_v42  ;;  %v3048_v43 = vld [vmem:[%s2441_s5 + $0x403] sm:$0xff]  ;;  %v3069_v37 = vld [vmem:[%s2441_s5 + $0x453] sm:$0xff] }
 0x105   : >> { %3738 = vst [vmem:[#allocation116_spill] sm:$0xff] %v3031_v53  ;;  %3740 = vst [vmem:[#allocation118_spill] sm:$0xff] %v3048_v43  ;;  %v1278_v36 = vld [vmem:[#allocation3 + $0x41] sm:$0xff]  ;;  %v1059_v5 = vadd.f32 %v1055_v49, %v1006_v14  ;;  %v3052_v33 = vmul.f32 0.007598758, %v1158_v0  ;;  %v685_v42 = vmul.f32 %v2648_v57, %v2663_v31  ;;  %v3066_v14 = vld [vmem:[%s2441_s5 + $0x42b] sm:$0xff] }
 0x106   : >> { %3739 = vst [vmem:[#allocation117_spill] sm:$0xff] %v3036_v58  ;;  %1136 = vst [vmem:[#allocation3 + $0x28] sm:$0xff] %v3036_v58  ;;  %v3056_v10 = vmul.f32 0.0010283801, %v3027_v51  ;;  %v3059_v41 = vmul.f32 0.21300554, %v3031_v53  ;;  %v998_v6 = vadd.f32 %v3018_v26, %v945_v47  ;;  %v787_v49 = vadd.f32 %v3021_v44, %v734_v22 }
 0x107   : >> { %3741 = vst [vmem:[#allocation119_spill] sm:$0xff] %v3052_v33  ;;  %3743 = vst [vmem:[#allocation121_spill] sm:$0xff] %v3066_v14  ;;  %v3072_v0 = vld [vmem:[%s2441_s5 + $0x47b] sm:$0xff]  ;;  %v3074_v58 = vadd.f32 %v1108_v45, %v1059_v5  ;;  %v636_v33 = vadd.f32 %v632_v54, %v591_v61  ;;  %v3077_v60 = vmul.f32 0.0010283801, %v2945_v62  ;;  %v738_v47 = vmul.f32 %v2651_v7, %v2666_v30  ;;  %v1290_v26 = vld [vmem:[#allocation3 + $0x43] sm:$0xff] }
 0x108   : >> { %3742 = vst [vmem:[#allocation120_spill] sm:$0xff] %v3056_v10  ;;  %3744 = vst [vmem:[#allocation122_spill] sm:$0xff] %v3069_v37  ;;  %v3080_v51 = vmul.f32 0.10936069, %v3048_v43  ;;  %v1280_v57 = vmul.f32 0.007598758, %v1278_v36  ;;  %v1051_v22 = vadd.f32 %v3039_v17, %v998_v6  ;;  %v840_v31 = vadd.f32 %v3042_v48, %v787_v49 }
 0x109   : >> { %3745 = vst [vmem:[#allocation123_spill] sm:$0xff] %v3072_v0  ;;  %3746 = vst [vmem:[#allocation124_spill] sm:$0xff] %v3074_v58  ;;  %v1284_v53 = vld [vmem:[#allocation3 + $0x42] sm:$0xff]  ;;  %v689_v45 = vadd.f32 %v685_v42, %v636_v33  ;;  %v791_v61 = vmul.f32 %v2654_v11, %v2681_v46  ;;  %v3090_v54 = vmul.f32 0.036000773, %v3066_v14  ;;  %v3748_v36 = vld [vmem:[#allocation50_spill] sm:$0xff] }
 0x10a   : >> { %3747 = vst [vmem:[#allocation125_spill] sm:$0xff] %v3077_v60  ;;  %1142 = vst [vmem:[#allocation3 + $0x50] sm:$0xff] %v3074_v58  ;;  %v3093_v62 = vmul.f32 0.007598758, %v3069_v37  ;;  %v3096_v7 = vmul.f32 0.0010283801, %v3072_v0  ;;  %v844_v5 = vmul.f32 %v3748_v36, %v2698_v20  ;;  %v1104_v6 = vadd.f32 %v3056_v10, %v1051_v22 }
 0x10b   : >> { %v893_v49 = vadd.f32 %v3059_v41, %v840_v31  ;;  %v742_v33 = vadd.f32 %v738_v47, %v689_v45  ;;  %v3749_v42 = vld [vmem:[#allocation63_spill] sm:$0xff]  ;;  %v3104_v58 = vmul.f32 0.036000773, %v1284_v53  ;;  %v3106_v60 = vmul.f32 0.10936069, %v1290_v26  ;;  %v3753_v30 = vld [vmem:[#allocation64_spill] sm:$0xff] }
 0x10c   : >> { %v592_v11 = vmul.f32 %v3749_v42, %v2730_v50  ;;  %v3752_v46 = vld [vmem:[#allocation67_spill] sm:$0xff]  ;;  %v3754_v0 = vld [vmem:[#allocation68_spill] sm:$0xff]  ;;  %1137 = vst [vmem:[#allocation3 + $0x30] sm:$0xff] %v1104_v6  ;;  %v3113_v22 = vadd.f32 %v1280_v57, %v1276_v28  ;;  %v3761_v43 = vld [vmem:[#allocation69_spill] sm:$0xff] }
 0x10d   : >> { %3750 = vst [vmem:[#allocation50_spill] sm:$0xff] %v3104_v58  ;;  %3751 = vst [vmem:[#allocation63_spill] sm:$0xff] %v3106_v60  ;;  %v637_v37 = vmul.f32 %v3753_v30, %v3752_v46  ;;  %v690_v14 = vmul.f32 %v3754_v0, %v2755_v38  ;;  %v946_v36 = vadd.f32 %v3080_v51, %v893_v49  ;;  %v3756_v47 = vld [vmem:[#allocation51_spill] sm:$0xff]  ;;  %v3757_v50 = vld [vmem:[#allocation60_spill] sm:$0xff] }
 0x10e   : >> { %3755 = vst [vmem:[#allocation67_spill] sm:$0xff] %v3113_v22  ;;  %v795_v31 = vadd.f32 %v791_v61, %v742_v33  ;;  %v897_v45 = vmul.f32 %v3756_v47, %v2701_v19  ;;  %v3758_v53 = vld [vmem:[#allocation55_spill] sm:$0xff]  ;;  %v3759_v26 = vld [vmem:[#allocation56_spill] sm:$0xff]  ;;  %v3762_v28 = vld [vmem:[#allocation57_spill] sm:$0xff] }
 0x10f   : >> { %v950_v58 = vmul.f32 %v3758_v53, %v3757_v50  ;;  %v1003_v60 = vmul.f32 %v3759_v26, %v2709_v23  ;;  %v641_v20 = vadd.f32 %v637_v37, %v592_v11  ;;  %v3760_v46 = vld [vmem:[#allocation72_spill] sm:$0xff]  ;;  %v999_v38 = vadd.f32 %v3090_v54, %v946_v36  ;;  %v3763_v61 = vld [vmem:[#allocation70_spill] sm:$0xff]  ;;  %v3764_v26 = vld [vmem:[#allocation81_spill] sm:$0xff] }
 0x110   : >> { %v743_v10 = vmul.f32 %v3761_v43, %v3760_v46  ;;  %v848_v6 = vadd.f32 %v844_v5, %v795_v31  ;;  %v1056_v57 = vmul.f32 %v3762_v28, %v2727_v2  ;;  %v796_v49 = vmul.f32 %v3763_v61, %v2775_v39  ;;  %v1218_v33 = vld [vmem:[#allocation3 + $0x21] sm:$0xff]  ;;  %v3765_v11 = vld [vmem:[#allocation82_spill] sm:$0xff]  ;;  %v3768_v2 = vld [vmem:[#allocation73_spill] sm:$0xff] }
 0x111   : >> { %v694_v47 = vadd.f32 %v690_v14, %v641_v20  ;;  %v593_v53 = vmul.f32 %v2803_v1, %v2815_v59  ;;  %v638_v37 = vmul.f32 %v3764_v26, %v2818_v12  ;;  %v691_v46 = vmul.f32 %v3765_v11, %v2821_v29  ;;  %v3766_v31 = vld [vmem:[#allocation62_spill] sm:$0xff]  ;;  %v3767_v22 = vld [vmem:[#allocation76_spill] sm:$0xff]  ;;  %v3770_v50 = vld [vmem:[#allocation83_spill] sm:$0xff] }
 0x112   : >> { %v1052_v36 = vadd.f32 %v3093_v62, %v999_v38  ;;  %v901_v5 = vadd.f32 %v897_v45, %v848_v6  ;;  %v1109_v28 = vmul.f32 %v3766_v31, %v2750_v40  ;;  %v849_v39 = vmul.f32 %v3768_v2, %v3767_v22  ;;  %v3769_v20 = vld [vmem:[#allocation74_spill] sm:$0xff]  ;;  %v3772_v45 = vld [vmem:[#allocation77_spill] sm:$0xff]  ;;  %v3773_v6 = vld [vmem:[#allocation75_spill] sm:$0xff] }
 0x113   : >> { %v747_v23 = vadd.f32 %v743_v10, %v694_v47  ;;  %v902_v14 = vmul.f32 %v3769_v20, %v2781_v55  ;;  %v642_v59 = vadd.f32 %v638_v37, %v593_v53  ;;  %v744_v12 = vmul.f32 %v3770_v50, %v2843_v4  ;;  %v3774_v40 = vld [vmem:[#allocation78_spill] sm:$0xff]  ;;  %v3775_v47 = vld [vmem:[#allocation84_spill] sm:$0xff] }
 0x114   : >> { %v3143_v19 = vmul.f32 0.007598758, %v1218_v33  ;;  %v1105_v29 = vadd.f32 %v3096_v7, %v1052_v36  ;;  %v954_v38 = vadd.f32 %v950_v58, %v901_v5  ;;  %v955_v11 = vmul.f32 %v3773_v6, %v3772_v45  ;;  %v3776_v33 = vld [vmem:[#allocation94_spill] sm:$0xff]  ;;  %v3777_v58 = vld [vmem:[#allocation96_spill] sm:$0xff] }
 0x115   : >> { %v800_v31 = vadd.f32 %v796_v49, %v747_v23  ;;  %v1008_v22 = vmul.f32 %v3774_v40, %v2838_v21  ;;  %v695_v10 = vadd.f32 %v691_v46, %v642_v59  ;;  %v797_v55 = vmul.f32 %v3775_v47, %v2859_v34  ;;  %v3778_v23 = vld [vmem:[#allocation79_spill] sm:$0xff]  ;;  %v3779_v46 = vld [vmem:[#allocation89_spill] sm:$0xff]  ;;  %v3780_v59 = vld [vmem:[#allocation86_spill] sm:$0xff] }
 0x116   : >> { %3771 = vst [vmem:[#allocation64_spill] sm:$0xff] %v3143_v19  ;;  %1138 = vst [vmem:[#allocation3 + $0x38] sm:$0xff] %v1105_v29  ;;  %v1007_v53 = vadd.f32 %v1003_v60, %v954_v38  ;;  %v594_v4 = vmul.f32 %v2885_v25, %v2896_v16  ;;  %v639_v37 = vmul.f32 %v3776_v33, %v2899_v3  ;;  %v3781_v60 = vld [vmem:[#allocation80_spill] sm:$0xff]  ;;  %v3782_v16 = vld [vmem:[#allocation99_spill] sm:$0xff] }
 0x117   : >> { %v692_v36 = vmul.f32 %v3777_v58, %v2922_v8  ;;  %v853_v5 = vadd.f32 %v849_v39, %v800_v31  ;;  %v1061_v49 = vmul.f32 %v3778_v23, %v2853_v24  ;;  %v748_v21 = vadd.f32 %v744_v12, %v695_v10  ;;  %v3783_v19 = vld [vmem:[#allocation97_spill] sm:$0xff]  ;;  %v3784_v25 = vld [vmem:[#allocation90_spill] sm:$0xff]  ;;  %v3785_v8 = vld [vmem:[#allocation87_spill] sm:$0xff] }
 0x118   : >> { %v850_v45 = vmul.f32 %v3780_v59, %v3779_v46  ;;  %v1060_v34 = vadd.f32 %v1056_v57, %v1007_v53  ;;  %v1114_v29 = vmul.f32 %v3781_v60, %v2856_v13  ;;  %v643_v38 = vadd.f32 %v639_v37, %v594_v4  ;;  %v3786_v31 = vld [vmem:[#allocation95_spill] sm:$0xff]  ;;  %v3787_v58 = vld [vmem:[#allocation88_spill] sm:$0xff]  ;;  %v3789_v53 = vld [vmem:[#allocation101_spill] sm:$0xff] }
 0x119   : >> { %v745_v47 = vmul.f32 %v3783_v19, %v3782_v16  ;;  %v906_v3 = vadd.f32 %v902_v14, %v853_v5  ;;  %v801_v33 = vadd.f32 %v797_v55, %v748_v21  ;;  %v903_v39 = vmul.f32 %v3785_v8, %v3784_v25  ;;  %v3788_v10 = vld [vmem:[#allocation91_spill] sm:$0xff]  ;;  %v3790_v59 = vld [vmem:[#allocation98_spill] sm:$0xff]  ;;  %v3793_v5 = vld [vmem:[#allocation108_spill] sm:$0xff] }
 0x11a   : >> { %v956_v24 = vmul.f32 %v3787_v58, %v3786_v31  ;;  %v1113_v12 = vadd.f32 %v1109_v28, %v1060_v34  ;;  %v1009_v46 = vmul.f32 %v3788_v10, %v2917_v52  ;;  %v696_v57 = vadd.f32 %v692_v36, %v643_v38  ;;  %v3791_v16 = vld [vmem:[#allocation107_spill] sm:$0xff]  ;;  %v3792_v55 = vld [vmem:[#allocation110_spill] sm:$0xff]  ;;  %v3794_v25 = vld [vmem:[#allocation92_spill] sm:$0xff] }
 0x11b   : >> { %v798_v13 = vmul.f32 %v3790_v59, %v3789_v53  ;;  %v959_v4 = vadd.f32 %v955_v11, %v906_v3  ;;  %v854_v37 = vadd.f32 %v850_v45, %v801_v33  ;;  %v595_v14 = vmul.f32 %v3791_v16, %v2981_v63  ;;  %v3795_v34 = vld [vmem:[#allocation104_spill] sm:$0xff]  ;;  %v3797_v36 = vld [vmem:[#allocation109_spill] sm:$0xff]  ;;  %v3798_v45 = vld [vmem:[#allocation111_spill] sm:$0xff] }
 0x11c   : >> { %v640_v21 = vmul.f32 %v3793_v5, %v3792_v55  ;;  %1143 = vst [vmem:[#allocation3 + $0x58] sm:$0xff] %v1113_v12  ;;  %v1062_v31 = vmul.f32 %v3794_v25, %v2935_v9  ;;  %v749_v28 = vadd.f32 %v745_v47, %v696_v57  ;;  %v3796_v58 = vld [vmem:[#allocation100_spill] sm:$0xff]  ;;  %v693_v38 = vmul.f32 %v3797_v36, %v2987_v15  ;;  %v3799_v3 = vld [vmem:[#allocation103_spill] sm:$0xff]  ;;  %v3800_v5 = vld [vmem:[#allocation102_spill] sm:$0xff] }
 0x11d   : >> { %v851_v52 = vmul.f32 %v3796_v58, %v3795_v34  ;;  %v1012_v53 = vadd.f32 %v1008_v22, %v959_v4  ;;  %v907_v11 = vadd.f32 %v903_v39, %v854_v37  ;;  %v746_v63 = vmul.f32 %v3798_v45, %v3009_v18  ;;  %v3801_v47 = vld [vmem:[#allocation105_spill] sm:$0xff]  ;;  %v3802_v15 = vld [vmem:[#allocation112_spill] sm:$0xff]  ;;  %v3803_v4 = vld [vmem:[#allocation14_spill] sm:$0xff] }
 0x11e   : >> { %v644_v33 = vadd.f32 %v640_v21, %v595_v14  ;;  %v1115_v55 = vmul.f32 %v3799_v3, %v2991_v32  ;;  %v802_v12 = vadd.f32 %v798_v13, %v749_v28  ;;  %v904_v9 = vmul.f32 %v3800_v5, %v2966_v27  ;;  %v3804_v13 = vld [vmem:[#allocation15_spill] sm:$0xff]  ;;  %v3806_v28 = vld [vmem:[#allocation114_spill] sm:$0xff] }
 0x11f   : >> { %v957_v57 = vmul.f32 %v3801_v47, %v2994_v56  ;;  %v1065_v34 = vadd.f32 %v1061_v49, %v1012_v53  ;;  %v960_v16 = vadd.f32 %v956_v24, %v907_v11  ;;  %v799_v22 = vmul.f32 %v3802_v15, %v3021_v44  ;;  %v3805_v56 = vld [vmem:[#allocation16_spill] sm:$0xff]  ;;  %v3808_v53 = vld [vmem:[#allocation17_spill] sm:$0xff] }
 0x120   : >> { %v697_v58 = vadd.f32 %v693_v38, %v644_v33  ;;  %v855_v39 = vadd.f32 %v851_v52, %v802_v12  ;;  %v852_v18 = vmul.f32 %v3012_v35, %v3042_v48  ;;  %v596_v32 = vmul.f32 %v3749_v42, %v3803_v4  ;;  %v3807_v38 = vld [vmem:[#allocation106_spill] sm:$0xff]  ;;  %v3809_v42 = vld [vmem:[#allocation113_spill] sm:$0xff] }
 0x121   : >> { %v645_v37 = vmul.f32 %v3753_v30, %v3804_v13  ;;  %v1118_v27 = vadd.f32 %v1114_v29, %v1065_v34  ;;  %v1013_v14 = vadd.f32 %v1009_v46, %v960_v16  ;;  %v698_v49 = vmul.f32 %v3754_v0, %v3805_v56  ;;  %v3810_v29 = vld [vmem:[#allocation116_spill] sm:$0xff]  ;;  %v3812_v0 = vld [vmem:[#allocation115_spill] sm:$0xff] }
 0x122   : >> { %v750_v21 = vadd.f32 %v746_v63, %v697_v58  ;;  %v908_v24 = vadd.f32 %v904_v9, %v855_v39  ;;  %v1010_v44 = vmul.f32 %v3807_v38, %v3806_v28  ;;  %v751_v48 = vmul.f32 %v3761_v43, %v3808_v53  ;;  %v3811_v16 = vld [vmem:[#allocation120_spill] sm:$0xff]  ;;  %v3813_v9 = vld [vmem:[#allocation18_spill] sm:$0xff]  ;;  %v3820_v56 = vld [vmem:[#allocation27_spill] sm:$0xff] }
 0x123   : >> { %v649_v52 = vadd.f32 %v645_v37, %v596_v32  ;;  %1145 = vst [vmem:[#allocation3 + $0x60] sm:$0xff] %v1118_v27  ;;  %v1066_v11 = vadd.f32 %v1062_v31, %v1013_v14  ;;  %v1063_v33 = vmul.f32 %v3809_v42, %v3039_v17  ;;  %v905_v58 = vmul.f32 %v3810_v29, %v3059_v41  ;;  %v3814_v31 = vld [vmem:[#allocation118_spill] sm:$0xff]  ;;  %v3815_v17 = vld [vmem:[#allocation121_spill] sm:$0xff]  ;;  %v3816_v41 = vld [vmem:[#allocation19_spill] sm:$0xff] }
 0x124   : >> { %v803_v30 = vadd.f32 %v799_v22, %v750_v21  ;;  %v961_v46 = vadd.f32 %v957_v57, %v908_v24  ;;  %v1116_v63 = vmul.f32 %v3812_v0, %v3811_v16  ;;  %v804_v34 = vmul.f32 %v3763_v61, %v3813_v9  ;;  %v3817_v37 = vld [vmem:[#allocation24_spill] sm:$0xff]  ;;  %v3819_v21 = vld [vmem:[#allocation26_spill] sm:$0xff]  ;;  %v3822_v28 = vld [vmem:[#allocation123_spill] sm:$0xff] }
 0x125   : >> { %v702_v12 = vadd.f32 %v698_v49, %v649_v52  ;;  %v3214_v39 = vadd.f32 %v1115_v55, %v1066_v11  ;;  %v958_v4 = vmul.f32 %v3814_v31, %v3080_v51  ;;  %v1011_v22 = vmul.f32 %v3815_v17, %v3090_v54  ;;  %v3818_v55 = vld [vmem:[#allocation122_spill] sm:$0xff]  ;;  %v3823_v52 = vld [vmem:[#allocation20_spill] sm:$0xff]  ;;  %v3827_v9 = vld [vmem:[#allocation23_spill] sm:$0xff] }
 0x126   : >> { %v856_v43 = vadd.f32 %v852_v18, %v803_v30  ;;  %v1014_v32 = vadd.f32 %v1010_v44, %v961_v46  ;;  %v857_v57 = vmul.f32 %v3768_v2, %v3816_v41  ;;  %v597_v14 = vmul.f32 %v2803_v1, %v3817_v37  ;;  %v3821_v49 = vld [vmem:[#allocation82_spill] sm:$0xff]  ;;  %v3824_v30 = vld [vmem:[#allocation28_spill] sm:$0xff]  ;;  %v3825_v46 = vld [vmem:[#allocation21_spill] sm:$0xff] }
 0x127   : >> { %v755_v13 = vadd.f32 %v751_v48, %v702_v12  ;;  %1146 = vst [vmem:[#allocation3 + $0x68] sm:$0xff] %v3214_v39  ;;  %v1064_v18 = vmul.f32 %v3818_v55, %v3093_v62  ;;  %v646_v51 = vmul.f32 %v3764_v26, %v3819_v21  ;;  %v699_v54 = vmul.f32 %v3821_v49, %v3820_v56  ;;  %v3826_v16 = vld [vmem:[#allocation22_spill] sm:$0xff]  ;;  %v3832_v41 = vld [vmem:[#allocation37_spill] sm:$0xff] }
 0x128   : >> { %v909_v61 = vadd.f32 %v905_v58, %v856_v43  ;;  %v1067_v24 = vadd.f32 %v1063_v33, %v1014_v32  ;;  %v1117_v44 = vmul.f32 %v3822_v28, %v3096_v7  ;;  %v910_v1 = vmul.f32 %v3769_v20, %v3823_v52  ;;  %v3829_v43 = vld [vmem:[#allocation93_spill] sm:$0xff]  ;;  %v3831_v32 = vld [vmem:[#allocation84_spill] sm:$0xff]  ;;  %v3834_v37 = vld [vmem:[#allocation38_spill] sm:$0xff] }
 0x129   : >> { %v808_v2 = vadd.f32 %v804_v34, %v755_v13  ;;  %v3235_v53 = vmul.f32 0.0010283801, %v1118_v27  ;;  %v650_v11 = vadd.f32 %v646_v51, %v597_v14  ;;  %v752_v62 = vmul.f32 %v3770_v50, %v3824_v30  ;;  %v3828_v34 = vld [vmem:[#allocation35_spill] sm:$0xff]  ;;  %v3835_v14 = vld [vmem:[#allocation96_spill] sm:$0xff]  ;;  %v3837_v51 = vld [vmem:[#allocation30_spill] sm:$0xff] }
 0x12a   : >> { %v962_v48 = vadd.f32 %v958_v4, %v909_v61  ;;  %v3239_v58 = vadd.f32 %v1116_v63, %v1067_v24  ;;  %v963_v33 = vmul.f32 %v3773_v6, %v3825_v46  ;;  %v1016_v7 = vmul.f32 %v3774_v40, %v3826_v16  ;;  %v3830_v63 = vld [vmem:[#allocation29_spill] sm:$0xff]  ;;  %v3838_v56 = vld [vmem:[#allocation86_spill] sm:$0xff]  ;;  %v3839_v24 = vld [vmem:[#allocation31_spill] sm:$0xff] }
 0x12b   : >> { %v861_v26 = vadd.f32 %v857_v57, %v808_v2  ;;  %v1069_v20 = vmul.f32 %v3778_v23, %v3827_v9  ;;  %v703_v27 = vadd.f32 %v699_v54, %v650_v11  ;;  %v598_v4 = vmul.f32 %v3829_v43, %v3828_v34  ;;  %v3833_v57 = vld [vmem:[#allocation94_spill] sm:$0xff]  ;;  %v3836_v61 = vld [vmem:[#allocation25_spill] sm:$0xff]  ;;  %v3841_v30 = vld [vmem:[#allocation32_spill] sm:$0xff] }
 0x12c   : >> { %v1015_v12 = vadd.f32 %v1011_v22, %v962_v48  ;;  %1147 = vst [vmem:[#allocation3 + $0x70] sm:$0xff] %v3239_v58  ;;  %v805_v13 = vmul.f32 %v3831_v32, %v3830_v63  ;;  %v647_v6 = vmul.f32 %v3833_v57, %v3832_v41  ;;  %v700_v40 = vmul.f32 %v3835_v14, %v3834_v37  ;;  %v3845_v34 = vld [vmem:[#allocation40_spill] sm:$0xff]  ;;  %v3849_v63 = vld [vmem:[#allocation42_spill] sm:$0xff]  ;;  %v3850_v32 = vld [vmem:[#allocation45_spill] sm:$0xff] }
 0x12d   : >> { %v914_v50 = vadd.f32 %v910_v1, %v861_v26  ;;  %v1122_v23 = vmul.f32 %v3781_v60, %v3836_v61  ;;  %v756_v21 = vadd.f32 %v752_v62, %v703_v27  ;;  %v858_v49 = vmul.f32 %v3838_v56, %v3837_v51  ;;  %v3840_v1 = vld [vmem:[#allocation39_spill] sm:$0xff]  ;;  %v3842_v26 = vld [vmem:[#allocation88_spill] sm:$0xff]  ;;  %v3844_v60 = vld [vmem:[#allocation34_spill] sm:$0xff] }
 0x12e   : >> { %v1068_v22 = vadd.f32 %v1064_v18, %v1015_v12  ;;  %v911_v2 = vmul.f32 %v3785_v8, %v3839_v24  ;;  %v651_v52 = vadd.f32 %v647_v6, %v598_v4  ;;  %v753_v48 = vmul.f32 %v3783_v19, %v3840_v1  ;;  %v3843_v18 = vld [vmem:[#allocation33_spill] sm:$0xff]  ;;  %v1338_v12 = vld [vmem:[#allocation3 + $0x61] sm:$0xff]  ;;  %v3852_v37 = vld [vmem:[#allocation46_spill] sm:$0xff] }
 0x12f   : >> { %v967_v54 = vadd.f32 %v963_v33, %v914_v50  ;;  %v964_v46 = vmul.f32 %v3842_v26, %v3841_v30  ;;  %v1017_v16 = vmul.f32 %v3788_v10, %v3843_v18  ;;  %v1070_v62 = vmul.f32 %v3794_v25, %v3844_v60  ;;  %v3846_v43 = vld [vmem:[#allocation36_spill] sm:$0xff]  ;;  %v3851_v41 = vld [vmem:[#allocation107_spill] sm:$0xff]  ;;  %v3856_v51 = vld [vmem:[#allocation49_spill] sm:$0xff] }
 0x130   : >> { %v1121_v11 = vadd.f32 %v1117_v44, %v1068_v22  ;;  %v809_v33 = vadd.f32 %v805_v13, %v756_v21  ;;  %v704_v27 = vadd.f32 %v700_v40, %v651_v52  ;;  %v806_v8 = vmul.f32 %v3790_v59, %v3845_v34  ;;  %v3847_v44 = vld [vmem:[#allocation41_spill] sm:$0xff]  ;;  %v3848_v4 = vld [vmem:[#allocation100_spill] sm:$0xff]  ;;  %v3854_v22 = vld [vmem:[#allocation43_spill] sm:$0xff] }
 0x131   : >> { %v1020_v9 = vadd.f32 %v1016_v7, %v967_v54  ;;  %v1123_v19 = vmul.f32 %v3799_v3, %v3846_v43  ;;  %v859_v50 = vmul.f32 %v3848_v4, %v3847_v44  ;;  %v912_v10 = vmul.f32 %v3800_v5, %v3849_v63  ;;  %v1344_v57 = vld [vmem:[#allocation3 + $0x62] sm:$0xff]  ;;  %v3858_v30 = vld [vmem:[#allocation47_spill] sm:$0xff]  ;;  %v3859_v26 = vld [vmem:[#allocation54_spill] sm:$0xff] }
 0x132   : >> { %1148 = vst [vmem:[#allocation3 + $0x78] sm:$0xff] %v1121_v11  ;;  %v599_v25 = vmul.f32 %v3851_v41, %v3850_v32  ;;  %v862_v13 = vadd.f32 %v858_v49, %v809_v33  ;;  %v757_v6 = vadd.f32 %v753_v48, %v704_v27  ;;  %v3853_v14 = vld [vmem:[#allocation108_spill] sm:$0xff]  ;;  %v3282_v40 = vmul.f32 0.007598758, %v1338_v12  ;;  %v3860_v18 = vld [vmem:[#allocation71_spill] sm:$0xff]  ;;  %v3305_v12 = vld [vmem:[#allocation3 + $0xa] sm:$0xff] }
 0x133   : >> { %v1073_v7 = vadd.f32 %v1069_v20, %v1020_v9  ;;  %v648_v59 = vmul.f32 %v3853_v14, %v3852_v37  ;;  %v965_v3 = vmul.f32 %v3801_v47, %v3854_v22  ;;  %v3855_v61 = vld [vmem:[#allocation48_spill] sm:$0xff]  ;;  %v754_v5 = vmul.f32 %v3798_v45, %v3856_v51  ;;  %v3861_v33 = vld [vmem:[#allocation65_spill] sm:$0xff]  ;;  %v3863_v34 = vld [vmem:[#allocation119_spill] sm:$0xff] }
 0x134   : >> { %v701_v21 = vmul.f32 %v3797_v36, %v3855_v61  ;;  %v915_v54 = vadd.f32 %v911_v2, %v862_v13  ;;  %v810_v20 = vadd.f32 %v806_v8, %v757_v6  ;;  %v1159_v24 = vld [vmem:[#allocation3 + $0x9] sm:$0xff]  ;;  %v3292_v1 = vmul.f32 0.036000773, %v1344_v57  ;;  %v3864_v4 = vld [vmem:[#allocation58_spill] sm:$0xff] }
 0x135   : >> { %v3290_v56 = vadd.f32 %v1122_v23, %v1073_v7  ;;  %v652_v49 = vadd.f32 %v648_v59, %v599_v25  ;;  %v1164_v52 = vld [vmem:[#allocation3 + $0x2] sm:$0xff]  ;;  %v1071_v47 = vmul.f32 %v3809_v42, %v3858_v30  ;;  %v807_v36 = vmul.f32 %v3802_v15, %v3859_v26  ;;  %v1171_v22 = vld [vmem:[#allocation3 + $0xb] sm:$0xff] }
 0x136   : >> { %v3857_v48 = vld [vmem:[#allocation44_spill] sm:$0xff]  ;;  %v968_v45 = vadd.f32 %v964_v46, %v915_v54  ;;  %v863_v23 = vadd.f32 %v859_v50, %v810_v20  ;;  %v3303_v60 = vmul.f32 %v3822_v28, %v3860_v18  ;;  %v3308_v27 = vmul.f32 0.007598758, %v1159_v24  ;;  %v3865_v28 = vld [vmem:[#allocation59_spill] sm:$0xff]  ;;  %v3868_v20 = vld [vmem:[#allocation61_spill] sm:$0xff] }
 0x137   : >> { %v1018_v11 = vmul.f32 %v3807_v38, %v3857_v48  ;;  %1150 = vst [vmem:[#allocation3 + $0x80] sm:$0xff] %v3290_v56  ;;  %v705_v2 = vadd.f32 %v701_v21, %v652_v49  ;;  %v1170_v9 = vld [vmem:[#allocation3 + $0x3] sm:$0xff]  ;;  %v1157_v38 = vmul.f32 0.0010283801, %v3861_v33  ;;  %v1166_v15 = vmul.f32 0.036000773, %v1164_v52 }
 0x138   : >> { %v3862_v42 = vld [vmem:[#allocation52_spill] sm:$0xff]  ;;  %v1021_v43 = vadd.f32 %v1017_v16, %v968_v45  ;;  %v916_v44 = vadd.f32 %v912_v10, %v863_v23  ;;  %v860_v50 = vmul.f32 %v3012_v35, %v3864_v4  ;;  %v913_v32 = vmul.f32 %v3810_v29, %v3865_v28  ;;  %v3866_v16 = vld [vmem:[#allocation53_spill] sm:$0xff]  ;;  %v3869_v24 = vld [vmem:[#allocation66_spill] sm:$0xff] }
 0x139   : >> { %v1162_v8 = vadd.f32 %v3863_v34, %v3862_v42  ;;  %v758_v46 = vadd.f32 %v754_v5, %v705_v2  ;;  %v1176_v63 = vld [vmem:[#allocation3 + $0x4] sm:$0xff]  ;;  %v1163_v41 = vadd.f32 %v3308_v27, %v1157_v38  ;;  %v1172_v57 = vmul.f32 0.10936069, %v1170_v9 }
 0x13a   : >> { %v1074_v7 = vadd.f32 %v1070_v62, %v1021_v43  ;;  %v969_v13 = vadd.f32 %v965_v3, %v916_v44  ;;  %v1167_v37 = vmul.f32 0.036000773, %v3305_v12  ;;  %v1182_v14 = vld [vmem:[#allocation3 + $0x5] sm:$0xff]  ;;  %v1124_v10 = vmul.f32 %v3812_v0, %v3866_v16 }
 0x13b   : >> { %v1168_v25 = vadd.f32 %v1166_v15, %v1162_v8  ;;  %v811_v6 = vadd.f32 %v807_v36, %v758_v46  ;;  %v3867_v59 = vld [vmem:[#allocation60_spill] sm:$0xff]  ;;  %v1178_v21 = vmul.f32 0.21300554, %v1176_v63  ;;  %v1019_v49 = vmul.f32 %v3815_v17, %v3868_v20  ;;  %v3871_v17 = vld [vmem:[#allocation125_spill] sm:$0xff] }
 0x13c   : >> { %v966_v35 = vmul.f32 %v3814_v31, %v3867_v59  ;;  %v3322_v29 = vadd.f32 %v1123_v19, %v1074_v7  ;;  %v1022_v51 = vadd.f32 %v1018_v11, %v969_v13  ;;  %v1169_v54 = vadd.f32 %v1167_v37, %v1163_v41  ;;  %v1188_v62 = vld [vmem:[#allocation3 + $0x6] sm:$0xff] }
 0x13d   : >> { %v1174_v61 = vadd.f32 %v1172_v57, %v1168_v25  ;;  %v864_v5 = vadd.f32 %v860_v50, %v811_v6  ;;  %v1219_v3 = vld [vmem:[#allocation3 + $0x29] sm:$0xff]  ;;  %v1072_v52 = vmul.f32 %v3818_v55, %v3869_v24  ;;  %v1184_v48 = vmul.f32 0.26601171, %v1182_v14 }
 0x13e   : >> { %v1224_v30 = vld [vmem:[#allocation3 + $0x22] sm:$0xff]  ;;  %1151 = vst [vmem:[#allocation3 + $0x88] sm:$0xff] %v3322_v29  ;;  %v1075_v31 = vadd.f32 %v1071_v47, %v1022_v51  ;;  %v1173_v19 = vmul.f32 0.10936069, %v1171_v22  ;;  %v3870_v11 = vld [vmem:[#allocation117_spill] sm:$0xff]  ;;  %v1342_v13 = vadd.f32 %v3282_v40, %v3235_v53 }
 0x13f   : >> { %v1180_v0 = vadd.f32 %v1178_v21, %v1174_v61  ;;  %v917_v26 = vadd.f32 %v913_v32, %v864_v5  ;;  %v1194_v36 = vld [vmem:[#allocation3 + $0x7] sm:$0xff]  ;;  %v1217_v45 = vmul.f32 0.0010283801, %v3870_v11  ;;  %v1190_v18 = vmul.f32 0.21300554, %v1188_v62 }
 0x140   : >> { %v1350_v23 = vld [vmem:[#allocation3 + $0x63] sm:$0xff]  ;;  %v3330_v9 = vmul.f32 0.007598758, %v1219_v3  ;;  %v3334_v34 = vadd.f32 %v1124_v10, %v1075_v31  ;;  %v1175_v15 = vadd.f32 %v1173_v19, %v1169_v54  ;;  %v1177_v43 = vld [vmem:[#allocation3 + $0xc] sm:$0xff]  ;;  %v1226_v44 = vmul.f32 0.036000773, %v1224_v30 }
 0x141   : >> { %v1186_v2 = vadd.f32 %v1184_v48, %v1180_v0  ;;  %v3872_v38 = vld [vmem:[#allocation64_spill] sm:$0xff]  ;;  %v970_v8 = vadd.f32 %v966_v35, %v917_v26  ;;  %v1225_v47 = vld [vmem:[#allocation3 + $0x2a] sm:$0xff]  ;;  %v1196_v4 = vmul.f32 0.10936069, %v1194_v36  ;;  %v1201_v50 = vmul.f32 0.036000773, %v3861_v33 }
 0x142   : >> { %v1222_v42 = vadd.f32 %v3872_v38, %v3871_v17  ;;  %v1230_v55 = vld [vmem:[#allocation3 + $0x23] sm:$0xff]  ;;  %v1223_v63 = vadd.f32 %v3330_v9, %v1217_v45  ;;  %v3338_v32 = vmul.f32 0.10936069, %v1350_v23  ;;  %1152 = vst [vmem:[#allocation3 + $0x90] sm:$0xff] %v3334_v34  ;;  %v1179_v6 = vmul.f32 0.21300554, %v1177_v43 }
 0x143   : >> { %v1192_v46 = vadd.f32 %v1190_v18, %v1186_v2  ;;  %v1236_v28 = vld [vmem:[#allocation3 + $0x24] sm:$0xff]  ;;  %v1023_v41 = vadd.f32 %v1019_v49, %v970_v8  ;;  %v1232_v57 = vmul.f32 0.10936069, %v1230_v55  ;;  %v1227_v14 = vmul.f32 0.036000773, %v1225_v47  ;;  %v1237_v61 = vld [vmem:[#allocation3 + $0x2c] sm:$0xff] }
 0x144   : >> { %v1228_v25 = vadd.f32 %v1226_v44, %v1222_v42  ;;  %v1242_v7 = vld [vmem:[#allocation3 + $0x25] sm:$0xff]  ;;  %v1210_v59 = vmul.f32 0.0010283801, %v3305_v12  ;;  %v1238_v21 = vmul.f32 0.21300554, %v1236_v28  ;;  %v3344_v51 = vadd.f32 %v1179_v6, %v1175_v15  ;;  %v3874_v19 = vld [vmem:[#allocation67_spill] sm:$0xff] }
 0x145   : >> { %v1198_v37 = vadd.f32 %v1196_v4, %v1192_v46  ;;  %v1248_v16 = vld [vmem:[#allocation3 + $0x26] sm:$0xff]  ;;  %v1076_v33 = vadd.f32 %v1072_v52, %v1023_v41  ;;  %v1229_v54 = vadd.f32 %v1227_v14, %v1223_v63  ;;  %v1244_v24 = vmul.f32 0.26601171, %v1242_v7  ;;  %v3875_v36 = vld [vmem:[#allocation50_spill] sm:$0xff]  ;;  %v3876_v8 = vld [vmem:[#allocation63_spill] sm:$0xff] }
 0x146   : >> { %v1279_v10 = vld [vmem:[#allocation3 + $0x49] sm:$0xff]  ;;  %v1234_v22 = vadd.f32 %v1232_v57, %v1228_v25  ;;  %v3350_v31 = vmul.f32 0.21300554, %v1237_v61  ;;  %v1250_v26 = vmul.f32 0.21300554, %v1248_v16  ;;  %v1288_v45 = vadd.f32 %v3875_v36, %v3874_v19 }
 0x147   : >> { %v1231_v35 = vld [vmem:[#allocation3 + $0x2b] sm:$0xff]  ;;  %v1203_v5 = vadd.f32 %v1201_v50, %v1198_v37  ;;  %v1129_v40 = vadd.f32 %v3303_v60, %v1076_v33  ;;  %v3348_v0 = vmul.f32 0.007598758, %v1279_v10  ;;  %v1261_v18 = vmul.f32 0.036000773, %v3870_v11  ;;  %v1404_v19 = vld [vmem:[#allocation3 + $0x82] sm:$0xff] }
 0x148   : >> { %v1254_v62 = vld [vmem:[#allocation3 + $0x27] sm:$0xff]  ;;  %v1240_v49 = vadd.f32 %v1238_v21, %v1234_v22  ;;  %v1233_v30 = vmul.f32 0.10936069, %v1231_v35  ;;  %v1294_v15 = vadd.f32 %v3876_v8, %v1288_v45  ;;  %v1270_v63 = vmul.f32 0.0010283801, %v1225_v47 }
 0x149   : >> { %v3873_v3 = vld [vmem:[#allocation85_spill] sm:$0xff]  ;;  %1153 = vst [vmem:[#allocation3 + $0x98] sm:$0xff] %v1129_v40  ;;  %v1256_v2 = vmul.f32 0.10936069, %v1254_v62  ;;  %v1207_v42 = vadd.f32 %v1203_v5, %v3308_v27  ;;  %v1337_v57 = vmul.f32 0.0010283801, %v3214_v39  ;;  %v1348_v16 = vadd.f32 %v3292_v1, %v1342_v13 }
 0x14a   : >> { %v1277_v20 = vmul.f32 0.0010283801, %v3873_v3  ;;  %v1296_v53 = vld [vmem:[#allocation3 + $0x44] sm:$0xff]  ;;  %v1246_v23 = vadd.f32 %v1244_v24, %v1240_v49  ;;  %v3357_v55 = vadd.f32 %v1233_v30, %v1229_v54  ;;  %v1297_v43 = vld [vmem:[#allocation3 + $0x4c] sm:$0xff]  ;;  %v1321_v1 = vmul.f32 0.036000773, %v3873_v3 }
 0x14b   : >> { %v1285_v52 = vld [vmem:[#allocation3 + $0x4a] sm:$0xff]  ;;  %v1298_v44 = vmul.f32 0.21300554, %v1296_v53  ;;  %v3365_v37 = vmul.f32 0.21300554, %v1297_v43  ;;  %v3368_v10 = vadd.f32 %v1210_v59, %v1207_v42  ;;  %v1354_v54 = vadd.f32 %v3338_v32, %v1348_v16  ;;  %v1398_v53 = vld [vmem:[#allocation3 + $0x81] sm:$0xff] }
 0x14c   : >> { %v1291_v12 = vld [vmem:[#allocation3 + $0x4b] sm:$0xff]  ;;  %v1283_v60 = vadd.f32 %v3348_v0, %v1277_v20  ;;  %v1252_v50 = vadd.f32 %v1250_v26, %v1246_v23  ;;  %v1287_v28 = vmul.f32 0.036000773, %v1285_v52  ;;  %v1330_v13 = vmul.f32 0.0010283801, %v1285_v52  ;;  %v1410_v36 = vld [vmem:[#allocation3 + $0x83] sm:$0xff] }
 0x14d   : >> { %v1302_v48 = vld [vmem:[#allocation3 + $0x45] sm:$0xff]  ;;  %v1293_v41 = vmul.f32 0.10936069, %v1291_v12  ;;  %v1300_v11 = vadd.f32 %v1298_v44, %v1294_v15  ;;  %v1400_v42 = vmul.f32 0.007598758, %v1398_v53 }
 0x14e   : >> { %v1308_v17 = vld [vmem:[#allocation3 + $0x46] sm:$0xff]  ;;  %v1304_v25 = vmul.f32 0.26601171, %v1302_v48  ;;  %v1258_v27 = vadd.f32 %v1256_v2, %v1252_v50  ;;  %v1289_v6 = vadd.f32 %v1287_v28, %v1283_v60  ;;  %v1381_v15 = vmul.f32 0.036000773, %v3214_v39 }
 0x14f   : >> { %v1339_v38 = vld [vmem:[#allocation3 + $0x69] sm:$0xff]  ;;  %v1310_v35 = vmul.f32 0.21300554, %v1308_v17  ;;  %v1406_v44 = vmul.f32 0.036000773, %v1404_v19 }
 0x150   : >> { %v3360_v46 = vld [vmem:[#allocation3 + $0x6a] sm:$0xff]  ;;  %v3363_v7 = vmul.f32 0.007598758, %v1339_v38  ;;  %v1306_v33 = vadd.f32 %v1304_v25, %v1300_v11  ;;  %v1263_v21 = vadd.f32 %v1261_v18, %v1258_v27  ;;  %v3374_v59 = vadd.f32 %v1293_v41, %v1289_v6 }
 0x151   : >> { %v1356_v4 = vld [vmem:[#allocation3 + $0x64] sm:$0xff]  ;;  %v1347_v5 = vmul.f32 0.036000773, %v3360_v46  ;;  %v1357_v23 = vld [vmem:[#allocation3 + $0x6c] sm:$0xff]  ;;  %v1396_v18 = vmul.f32 0.0010283801, %v3290_v56 }
 0x152   : >> { %v1314_v14 = vld [vmem:[#allocation3 + $0x47] sm:$0xff]  ;;  %v1343_v47 = vadd.f32 %v3363_v7, %v1337_v57  ;;  %v1358_v62 = vmul.f32 0.21300554, %v1356_v4  ;;  %v1312_v40 = vadd.f32 %v1310_v35, %v1306_v33  ;;  %v1267_v45 = vadd.f32 %v1263_v21, %v3330_v9 }
 0x153   : >> { %v1362_v22 = vld [vmem:[#allocation3 + $0x65] sm:$0xff]  ;;  %v1316_v49 = vmul.f32 0.10936069, %v1314_v14  ;;  %v1397_v38 = vmul.f32 0.0010283801, %v3322_v29  ;;  %v1402_v4 = vadd.f32 %v1400_v42, %v1396_v18  ;;  %v1205_v42 = vld [vmem:[#allocation3 + $0x11] sm:$0xff] }
 0x154   : >> { %v1368_v61 = vld [vmem:[#allocation3 + $0x66] sm:$0xff]  ;;  %v1349_v24 = vadd.f32 %v1347_v5, %v1343_v47  ;;  %v1360_v48 = vadd.f32 %v1358_v62, %v1354_v54  ;;  %v1364_v30 = vmul.f32 0.26601171, %v1362_v22  ;;  %v1412_v56 = vmul.f32 0.10936069, %v1410_v36 }
 0x155   : >> { %v1374_v20 = vld [vmem:[#allocation3 + $0x67] sm:$0xff]  ;;  %v1318_v32 = vadd.f32 %v1316_v49, %v1312_v40  ;;  %v1370_v2 = vmul.f32 0.21300554, %v1368_v61  ;;  %v1272_v41 = vadd.f32 %v1270_v63, %v1267_v45  ;;  %v1359_v6 = vmul.f32 0.21300554, %v1357_v23  ;;  %v1195_v45 = vld [vmem:[#allocation3 + $0xf] sm:$0xff] }
 0x156   : >> { %v1351_v12 = vld [vmem:[#allocation3 + $0x6b] sm:$0xff]  ;;  %v1366_v52 = vadd.f32 %v1364_v30, %v1360_v48  ;;  %v1376_v17 = vmul.f32 0.10936069, %v1374_v20  ;;  %v1408_v16 = vadd.f32 %v1406_v44, %v1402_v4  ;;  %v1390_v63 = vmul.f32 0.0010283801, %v3360_v46 }
 0x157   : >> { %v1399_v26 = vld [vmem:[#allocation3 + $0x89] sm:$0xff]  ;;  %v1323_v8 = vadd.f32 %v1321_v1, %v1318_v32  ;;  %v1353_v25 = vmul.f32 0.10936069, %v1351_v12  ;;  %v3389_v40 = vmul.f32 %v1272_v41, %v3368_v10  ;;  %v1468_v49 = vmul.f32 %v3368_v10, %v3368_v10 }
 0x158   : >> { %v3378_v60 = vld [vmem:[#allocation3 + $0x8a] sm:$0xff]  ;;  %v3382_v43 = vmul.f32 0.007598758, %v1399_v26  ;;  %v1372_v9 = vadd.f32 %v1370_v2, %v1366_v52  ;;  %v1414_v62 = vadd.f32 %v1412_v56, %v1408_v16  ;;  %v1470_v1 = vmul.f32 %v1272_v41, %v1272_v41 }
 0x159   : >> { %v1416_v3 = vld [vmem:[#allocation3 + $0x84] sm:$0xff]  ;;  %v1407_v50 = vmul.f32 0.036000773, %v3378_v60  ;;  %v1327_v11 = vadd.f32 %v1323_v8, %v3348_v0  ;;  %v1417_v39 = vld [vmem:[#allocation3 + $0x8c] sm:$0xff]  ;;  %v1355_v47 = vadd.f32 %v1353_v25, %v1349_v24  ;;  %v1241_v10 = vadd.f32 %v3350_v31, %v3357_v55 }
 0x15a   : >> { %v1411_v28 = vld [vmem:[#allocation3 + $0x8b] sm:$0xff]  ;;  %v1403_v57 = vadd.f32 %v3382_v43, %v1397_v38  ;;  %v1378_v14 = vadd.f32 %v1376_v17, %v1372_v9  ;;  %v1418_v33 = vmul.f32 0.21300554, %v1416_v3  ;;  %v1419_v53 = vmul.f32 0.21300554, %v1417_v39 }
 0x15b   : >> { %v1422_v27 = vld [vmem:[#allocation3 + $0x85] sm:$0xff]  ;;  %v1332_v35 = vadd.f32 %v1330_v13, %v1327_v11  ;;  %v1413_v61 = vmul.f32 0.10936069, %v1411_v28  ;;  %v1183_v5 = vld [vmem:[#allocation3 + $0xd] sm:$0xff]  ;;  %v1472_v46 = vadd.f32 %v1470_v1, %v1468_v49  ;;  %v1361_v52 = vadd.f32 %v1359_v6, %v1355_v47 }
 0x15c   : >> { %v1409_v22 = vadd.f32 %v1407_v50, %v1403_v57  ;;  %v1428_v21 = vld [vmem:[#allocation3 + $0x86] sm:$0xff]  ;;  %v1383_v54 = vadd.f32 %v1381_v15, %v1378_v14  ;;  %v1424_v0 = vmul.f32 0.26601171, %v1422_v27  ;;  %v1189_v13 = vld [vmem:[#allocation3 + $0xe] sm:$0xff]  ;;  %v1420_v12 = vadd.f32 %v1418_v33, %v1414_v62 }
 0x15d   : >> { %v1434_v20 = vld [vmem:[#allocation3 + $0x87] sm:$0xff]  ;;  %v1430_v48 = vmul.f32 0.21300554, %v1428_v21  ;;  %v1185_v30 = vmul.f32 0.26601171, %v1183_v5  ;;  %v1476_v36 = vsub.f32 %v1332_v35, %v1468_v49  ;;  %v1200_v38 = vld [vmem:[#allocation3 + $0x10] sm:$0xff] }
 0x15e   : >> { %v1387_v24 = vadd.f32 %v1383_v54, %v3363_v7  ;;  %v1415_v26 = vadd.f32 %v1413_v61, %v1409_v22  ;;  %v1436_v19 = vmul.f32 0.10936069, %v1434_v20  ;;  %v1426_v23 = vadd.f32 %v1424_v0, %v1420_v12  ;;  %v1243_v3 = vld [vmem:[#allocation3 + $0x2d] sm:$0xff] }
 0x15f   : >> { %v1187_v2 = vadd.f32 %v1185_v30, %v3344_v51  ;;  %v1191_v18 = vmul.f32 0.21300554, %v1189_v13  ;;  %v1301_v7 = vadd.f32 %v3365_v37, %v3374_v59  ;;  %v1441_v17 = vmul.f32 0.036000773, %v3322_v29  ;;  %v1209_v8 = vld [vmem:[#allocation3 + $0x12] sm:$0xff] }
 0x160   : >> { %v1392_v32 = vadd.f32 %v1390_v63, %v1387_v24  ;;  %v1432_v15 = vadd.f32 %v1430_v48, %v1426_v23  ;;  %v1197_v4 = vmul.f32 0.10936069, %v1195_v45  ;;  %v1249_v50 = vld [vmem:[#allocation3 + $0x2e] sm:$0xff]  ;;  %v3400_v56 = vadd.f32 %v1419_v53, %v1415_v26 }
 0x161   : >> { %v1193_v9 = vadd.f32 %v1191_v18, %v1187_v2  ;;  %v1303_v51 = vld [vmem:[#allocation3 + $0x4d] sm:$0xff]  ;;  %v1450_v31 = vmul.f32 0.0010283801, %v3378_v60  ;;  %v1474_v55 = vadd.f32 0.0001, %v1472_v46  ;;  %v3877_v46 = vld [vmem:[#allocation124_spill] sm:$0xff] }
 0x162   : >> { %v1478_v44 = vsub.f32 %v1392_v32, %v1470_v1  ;;  %v1309_v28 = vld [vmem:[#allocation3 + $0x4e] sm:$0xff]  ;;  %v1245_v41 = vmul.f32 0.26601171, %v1243_v3  ;;  %v1438_v37 = vadd.f32 %v1436_v19, %v1432_v15  ;;  %v1202_v29 = vmul.f32 0.036000773, %v1200_v38 }
 0x163   : >> { %v1199_v11 = vadd.f32 %v1197_v4, %v1193_v9  ;;  %v1255_v25 = vld [vmem:[#allocation3 + $0x2f] sm:$0xff]  ;;  %v1206_v6 = vmul.f32 0.007598758, %v1205_v42  ;;  %v1211_v14 = vmul.f32 0.0010283801, %v1209_v8 }
 0x164   : >> { %v1480_v59 = vadd.f32 %v1478_v44, %v1476_v36  ;;  %v1260_v57 = vld [vmem:[#allocation3 + $0x30] sm:$0xff]  ;;  %v1247_v16 = vadd.f32 %v1245_v41, %v1241_v10  ;;  %v1251_v39 = vmul.f32 0.21300554, %v1249_v50  ;;  %v1443_v33 = vadd.f32 %v1441_v17, %v1438_v37 }
 0x165   : >> { %v1315_v27 = vld [vmem:[#allocation3 + $0x4f] sm:$0xff]  ;;  %v1204_v47 = vadd.f32 %v1202_v29, %v1199_v11  ;;  %v1305_v61 = vmul.f32 0.26601171, %v1303_v51  ;;  %v1257_v5 = vmul.f32 0.10936069, %v1255_v25 }
 0x166   : >> { %v1482_v35 = vadd.f32 0.0009, %v1480_v59  ;;  %v1265_v22 = vld [vmem:[#allocation3 + $0x31] sm:$0xff]  ;;  %v1253_v60 = vadd.f32 %v1251_v39, %v1247_v16  ;;  %v1262_v54 = vmul.f32 0.036000773, %v1260_v57  ;;  %v1447_v62 = vadd.f32 %v1443_v33, %v3382_v43 }
 0x167   : >> { %v1363_v21 = vld [vmem:[#allocation3 + $0x6d] sm:$0xff]  ;;  %v1311_v63 = vmul.f32 0.21300554, %v1309_v28  ;;  %v1208_v20 = vadd.f32 %v1206_v6, %v1204_v47  ;;  %v1307_v49 = vadd.f32 %v1305_v61, %v1301_v7  ;;  %v1266_v12 = vmul.f32 0.007598758, %v1265_v22 }
 0x168   : >> { %v1484_v0 = vmul.f32 %v1482_v35, %v1474_v55  ;;  %v1269_v53 = vld [vmem:[#allocation3 + $0x32] sm:$0xff]  ;;  %v1259_v24 = vadd.f32 %v1257_v5, %v1253_v60  ;;  %v1317_v48 = vmul.f32 0.10936069, %v1315_v27  ;;  %v1365_v30 = vmul.f32 0.26601171, %v1363_v21 }
 0x169   : >> { %v1369_v1 = vld [vmem:[#allocation3 + $0x6e] sm:$0xff]  ;;  %v1452_v26 = vadd.f32 %v1450_v31, %v1447_v62  ;;  %v1313_v19 = vadd.f32 %v1311_v63, %v1307_v49  ;;  %v1322_v36 = vmul.f32 0.036000773, %v3877_v46  ;;  %v1271_v23 = vmul.f32 0.0010283801, %v1269_v53 }
 0x16a   : >> { %v1375_v13 = vld [vmem:[#allocation3 + $0x6f] sm:$0xff]  ;;  %1907 = vrcp.f32 %v1484_v0  ;;  %v1264_v32 = vadd.f32 %v1262_v54, %v1259_v24  ;;  %v1367_v43 = vadd.f32 %v1365_v30, %v1361_v52  ;;  %v1371_v18 = vmul.f32 0.21300554, %v1369_v1 }
 0x16b   : >> { %v1423_v45 = vld [vmem:[#allocation3 + $0x8d] sm:$0xff]  ;;  %v1460_v10 = vsub.f32 %v1452_v26, %v3389_v40  ;;  %v1213_v7 = vadd.f32 %v1211_v14, %v1208_v20  ;;  %v1319_v17 = vadd.f32 %v1317_v48, %v1313_v19  ;;  %v1377_v38 = vmul.f32 0.10936069, %v1375_v13 }
 0x16c   : >> { %v1325_v2 = vld [vmem:[#allocation3 + $0x51] sm:$0xff]  ;;  %v1268_v8 = vadd.f32 %v1266_v12, %v1264_v32  ;;  %v1373_v44 = vadd.f32 %v1371_v18, %v1367_v43  ;;  %v1382_v9 = vmul.f32 0.036000773, %v3239_v58  ;;  %v1425_v50 = vmul.f32 0.26601171, %v1423_v45  ;;  %v1496_v12 = vld [vmem:[#allocation4] sm:$0xff] }
 0x16d   : >> { %v1429_v3 = vld [vmem:[#allocation3 + $0x8e] sm:$0xff]  ;;  %v1324_v51 = vadd.f32 %v1322_v36, %v1319_v17  ;;  %v1326_v28 = vmul.f32 0.007598758, %v1325_v2  ;;  %v1462_v57 = vmul.f32 2.0, %v1460_v10  ;;  %v1469_v14 = vmul.f32 %v1213_v7, %v1213_v7 }
 0x16e   : >> { %v1435_v42 = vld [vmem:[#allocation3 + $0x8f] sm:$0xff]  ;;  %v1431_v31 = vmul.f32 0.21300554, %v1429_v3  ;;  %v1273_v55 = vadd.f32 %v1271_v23, %v1268_v8  ;;  %v1379_v52 = vadd.f32 %v1377_v38, %v1373_v44  ;;  %v1427_v41 = vadd.f32 %v1425_v50, %v3400_v56 }
 0x16f   : >> { %v1329_v15 = vld [vmem:[#allocation3 + $0x52] sm:$0xff]  ;;  %v1437_v37 = vmul.f32 0.10936069, %v1435_v42  ;;  %v1328_v59 = vadd.f32 %v1326_v28, %v1324_v51  ;;  %v1456_v58 = vmul.f32 2.0, %v3389_v40  ;;  %v1442_v39 = vmul.f32 0.036000773, %v3334_v34 }
 0x170   : >> { %v1385_v4 = vld [vmem:[#allocation3 + $0x71] sm:$0xff]  ;;  %v1331_v11 = vmul.f32 0.0010283801, %v1329_v15  ;;  %v1384_v27 = vadd.f32 %v1382_v9, %v1379_v52  ;;  %v1433_v6 = vadd.f32 %v1431_v31, %v1427_v41  ;;  %v1471_v61 = vmul.f32 %v1273_v55, %v1273_v55  ;;  %v1497_v15 = vld [vmem:[#allocation4 + $0x8] sm:$0xff] }
 0x171   : >> { %v1386_v29 = vmul.f32 0.007598758, %v1385_v4  ;;  %v1389_v25 = vld [vmem:[#allocation3 + $0x72] sm:$0xff]  ;;  %v1464_v21 = vadd.f32 0.0009, %v1462_v57  ;;  %v1455_v32 = vmul.f32 %v1273_v55, %v1213_v7 }
 0x172   : >> { %v1333_v16 = vadd.f32 %v1331_v11, %v1328_v59  ;;  %v1391_v35 = vmul.f32 0.0010283801, %v1389_v25  ;;  %v1439_v47 = vadd.f32 %v1437_v37, %v1433_v6  ;;  %v1445_v22 = vld [vmem:[#allocation3 + $0x91] sm:$0xff]  ;;  %v1458_v20 = vadd.f32 0.0001, %v1456_v58 }
 0x173   : >> { %v1388_v33 = vadd.f32 %v1386_v29, %v1384_v27  ;;  %v1446_v62 = vmul.f32 0.007598758, %v1445_v22  ;;  %v1449_v49 = vld [vmem:[#allocation3 + $0x92] sm:$0xff]  ;;  %v1473_v1 = vadd.f32 %v1471_v61, %v1469_v14  ;;  %v1457_v43 = vmul.f32 2.0, %v1455_v32 }
 0x174   : >> { %v1908_v56 = vpop.eup %1907  ;;  %v1477_v54 = vsub.f32 %v1333_v16, %v1469_v14  ;;  %v1444_v63 = vadd.f32 %v1442_v39, %v1439_v47  ;;  %v1466_v13 = vmul.f32 %v1464_v21, %v1458_v20  ;;  %v1451_v30 = vmul.f32 0.0010283801, %v1449_v49 }
 0x175   : >> { %v1488_v60 = vmul.f32 %v1908_v56, %v1484_v0  ;;  %v1393_v5 = vadd.f32 %v1391_v35, %v1388_v33  ;;  %v1475_v19 = vadd.f32 0.0001, %v1473_v1  ;;  %v1459_v17 = vadd.f32 0.0001, %v1457_v43 }
 0x176   : >> { %v1448_v48 = vadd.f32 %v1446_v62, %v1444_v63 }
 0x177   : >> { %v1490_v53 = vsub.f32 2.0, %v1488_v60  ;;  %v1479_v40 = vsub.f32 %v1393_v5, %v1471_v61 }
 0x178   : >> { %v1453_v45 = vadd.f32 %v1451_v30, %v1448_v48 }
 0x179   : >> { %v1492_v24 = vmul.f32 %v1908_v56, %v1490_v53  ;;  %v1481_v34 = vadd.f32 %v1479_v40, %v1477_v54 }
 0x17a   : >> { %v1461_v23 = vsub.f32 %v1453_v45, %v1455_v32 }
 0x17b   : >> { %v1494_v26 = vmul.f32 %v1492_v24, %v1466_v13  ;;  %v1483_v46 = vadd.f32 0.0009, %v1481_v34 }
 0x17c   : >> { %v1463_v2 = vmul.f32 2.0, %v1461_v23 }
 0x17d   : >> { %v1498_v36 = vadd.f32 %v1496_v12, %v1494_v26  ;;  %v1485_v0 = vmul.f32 %v1483_v46, %v1475_v19 }
 0x17e   : >> { %v1465_v3 = vadd.f32 0.0009, %v1463_v2 }
 0x17f   : >> { %1500 = vst [vmem:[#allocation4] sm:$0xff] %v1498_v36  ;;  %1909 = vrcp.f32 %v1485_v0 }
 0x180   : >> { %v1467_v42 = vmul.f32 %v1465_v3, %v1459_v17 }
 0x186   : > { %v1502_v7 = vld [vmem:[#allocation4] sm:$0xff] (%p564_p8) }
 0x189   : >> { %v1910_v18 = vpop.eup %1909 }
 0x18a   : >> { %v1489_v10 = vmul.f32 %v1910_v18, %v1485_v0 }
 0x18c   : >> { %v1491_v38 = vsub.f32 2.0, %v1489_v10 }
 0x18e   : >> { %v1493_v8 = vmul.f32 %v1910_v18, %v1491_v38  ;;  %566 = sbr.rel (!%p564_p8) target bundleno = 193 (0xc1), region = 123 }
 0x190   : >> { %v1495_v44 = vmul.f32 %v1493_v8, %v1467_v42 }
 0x192   : >> { %v1499_v9 = vadd.f32 %v1497_v15, %v1495_v44 }
 0x194   : >> { %1501 = vst [vmem:[#allocation4 + $0x8] sm:$0xff] %v1499_v9 }
 0x19b   : > { %v1503_v4 = vld [vmem:[#allocation4 + $0x8] sm:$0xff] }
 0x19c   : > { %v1504_v50 = vadd.f32 %v1503_v4, %v1502_v7 }
 0x19e   : > { %v1505_v51 = vrot.slane %v1504_v50, 4 }
 0x1a0   : > { %v1506_v28 = vadd.f32 %v1505_v51, %v1504_v50 }
 0x1a2   : > { %v1507_v31 = vrot.slane %v1506_v28, 2 }
 0x1a4   : > { %v1508_v55 = vadd.f32 %v1507_v31, %v1506_v28 }
 0x1a6   : > { %v1509_v52 = vrot.slane %v1508_v55, 1 }
 0x1a8   : > { %v1510_v41 = vadd.f32 %v1509_v52, %v1508_v55 }
 0x1aa   : > { %1511 = vst [vmem:[%s2407_s16] sm:$0x1] %v1510_v41 }
 0x1ab   : > { %1980 = shalt.err (!%p1977_p9)
}
 0x1ac   : > { %s1981_s27 = scalar_lea.hbm %s3418_s15, 16  ;;  %s1985_s25 = scalar_lea.hbm %s3470_s2, 32 }
 0x1ad   : > { %p1982_p12 = scmp.ne.s32.totalorder %s3418_s15, %s1981_s27  ;;  %p1986_p13 = scmp.lt.u32.totalorder %s3418_s15, %s3470_s2 }
 0x1ae   : > { %p1987_p1 = scmp.lt.u32.totalorder %s1985_s25, %s1981_s27  ;;  %p1989_p10 = scmp.lt.u32.totalorder %s1981_s27, %s3418_s15 }
 0x1af   : > { %p1983_p0 = pnand %p1982_p12, %p3878_p11 }
 0x1b0   : > { %p1988_p8 = por %p1987_p1, %p1986_p13 }
 0x1b1   : > { %p1984_p4 = pneg %p1983_p0 }
 0x1b2   : > { %p1990_p2 = por %p1989_p10, %p1988_p8 }
 0x1b4   : > { %p1991_p3 = pnand %p1990_p2, %p1984_p4 }
 0x1b6   : > { %1994 = shalt.err (!%p1991_p3)
}
 0x1b7   : > { %1828 = dma.vmem_to_hbm [thread:$0]  (%p3878_p11), %s3420_s7, 16, %s3418_s15, %s1513_s20  }
 0x1b8 PF: > { %p1845_p5 = scmp.ge.s32.totalorder %s2057_s14, 2  ;;  %s1539_s3 = sand.u32 1, %s2037_s9  }
 0x1b9   : > { %p3879_p6 = scmp.ne.s32.totalorder %s3630_s21, 0  ;;  %s1540_s4 = scalar_lea.sflag [#allocation7], %s1539_s3 }
 0x1bb   : > { %p1838_p7 = pnand %p1845_p5, %p3879_p6 }
 0x1bd   : > { %2032 = dma.done.wait (!%p1838_p7), %s1540_s4, 16  }
 0x1be   : > { %2034 = vsyncadd (!%p1838_p7), %s1540_s4, 4294967280  ;;  %s17_s14 = sadd.s32 1, %s2057_s14   ;;  %s3880_s9 = smov %s2041_s10 }
 0x1bf   : > { %p14_p9 = scmp.ge.s32.totalorder %s17_s14, 4   ;;  %s3881_s10 = smov %s2045_s11 }
 0x1c0   : > { %s3882_s11 = smov %s2137_s22  ;;  %s3883_s12 = smov %s2053_s13 }
 0x1c1   : > { %s3884_s13 = smov %s3886_s17  ;;  %16 = sbr.rel (!%p14_p9) target bundleno = 6 (0x6), region = 134 }
 0x1c8   :  { %1544 = vsyncpa [#allocation6], 1 }
 0x1c9   :  { %1546 = vsyncpa [#allocation6 + $0x1], 1 }
 0x1ca   :  { %1547 = vsyncpa [#allocation9], 1 }
 0x1cb   :  { %1548 = vsyncpa [#allocation7], 1 }
 0x1cc   :  { %1550 = vsyncpa [#allocation7 + $0x1], 1 }

</bundles_post_ra>
